<compile_context>
chip_gen: v7x
topology: tpu7x:2x2x1
jax: 0.10.0
libtpu: 0.0.40
codegen_flags: <defaults>
</compile_context>

<pallas_src>
import functools
import math

import jax
import jax.numpy as jnp
from jax import lax
from jax.experimental import pallas as pl
from jax.experimental.pallas import tpu as pltpu


def _round_up(a, b):
    return (a + b - 1) // b * b


def _mln_kernel(x_ref, c_ref, wr_ref, br_ref, wgb_ref, bgb_ref, o_ref, *,
                eps, f_dim, f_pad, apply_ln):
    # ---- LayerNorm(x) over the last dim (no affine); stats in f32 on the VPU ----
    x = x_ref[...].astype(jnp.float32)                            # (tm, f_dim)
    if apply_ln:
        mean = jnp.mean(x, axis=-1, keepdims=True)
        cen = x - mean
        var = jnp.mean(cen * cen, axis=-1, keepdims=True)
        xn = cen * lax.rsqrt(var + eps)
    else:
        xn = x

    # ---- reduce: ReLU(c @ Wr + br). bf16 MXU operands, f32 accumulation ----
    # (On v5e the bf16 casts run on the f32 VALU and hide under the HBM wait.)
    h = jnp.dot(c_ref[...].astype(jnp.bfloat16), wr_ref[...],
                preferred_element_type=jnp.float32) + br_ref[...]
    h = jnp.maximum(h, 0.0)                                       # (tm, f_dim) f32

    # ---- fused gamma|beta projection: one matmul vs packed (f_dim, 2*f_pad) slab ----
    gb = jnp.dot(h.astype(jnp.bfloat16), wgb_ref[...],
                 preferred_element_type=jnp.float32) + bgb_ref[...]

    # ---- modulate: gamma * xn + beta (split at f_pad => always 128-lane aligned) ----
    gamma = gb[:, :f_dim]
    beta = gb[:, f_pad:f_pad + f_dim]
    o_ref[...] = (gamma * xn + beta).astype(o_ref.dtype)


def mln_forward(x, c, params, *, use_ln=True, tm=1024, eps=1e-5, out_dtype=None):
    """x: (..., f_dim), c: (..., c_dim) with identical leading dims."""
    f_dim = x.shape[-1]
    c_dim = c.shape[-1]
    lead = x.shape[:-1]
    assert c.shape[:-1] == lead, "x and c must share leading dims"
    out_dtype = x.dtype if out_dtype is None else jnp.dtype(out_dtype)

    M = math.prod(lead) if lead else 1
    x2 = x.reshape(M, f_dim)
    c2 = c.reshape(M, c_dim)

    # ---- pack parameters once: bf16 MXU weights, lane-aligned fused gamma|beta slab ----
    f_pad = _round_up(f_dim, 128)          # keep the gamma/beta column split lane-aligned
    wr = params["wr"].astype(jnp.bfloat16)                        # (c_dim, f_dim)
    wg, wb = params["wg"], params["wb"]
    bg, bb = params["bg"], params["bb"]
    if f_pad != f_dim:
        colpad = ((0, 0), (0, f_pad - f_dim))
        wg = jnp.pad(wg, colpad)
        wb = jnp.pad(wb, colpad)
        bg = jnp.pad(bg, (0, f_pad - f_dim))
        bb = jnp.pad(bb, (0, f_pad - f_dim))
    wgb = jnp.concatenate([wg, wb], axis=1).astype(jnp.bfloat16)  # (f_dim, 2*f_pad)
    br = params["br"].reshape(1, f_dim).astype(jnp.float32)
    bgb = jnp.concatenate([bg, bb]).reshape(1, 2 * f_pad).astype(jnp.float32)

    # ---- row tile: big to amortize ~0.35us/step pipeline overhead (HBM-bound kernel),
    #      multiple of 8, but never so big that the grid can't spread over 2 TCs ----
    tm = max(8, min(tm, _round_up(M, 8)))
    tm = _round_up(tm, 8)
    while tm > 256 and pl.cdiv(M, tm) < 4:
        tm = _round_up(tm // 2, 8)
    grid = (pl.cdiv(M, tm),)   # ragged tail handled by partial-block masking (no pad/slice)

    # ---- generation-aware VMEM cap (leave ~25% headroom: 96MiB v5e/v6e, 48MiB v7x) ----
    try:
        phys_vmem = pltpu.get_tpu_info().vmem_capacity_bytes
    except Exception:
        phys_vmem = 64 << 20   # conservative (v7x-sized) fallback
    vmem_cap = (phys_vmem * 3) // 4

    row_x = pl.BlockSpec((tm, f_dim), lambda i: (i, 0))
    row_c = pl.BlockSpec((tm, c_dim), lambda i: (i, 0))
    row_o = pl.BlockSpec((tm, f_dim), lambda i: (i, 0))

    def _build(single_buffer_weights):
        if single_buffer_weights:
            const = lambda shp: pl.BlockSpec(shp, lambda i: (0, 0),
                                             pipeline_mode=pl.Buffered(1))
        else:
            const = lambda shp: pl.BlockSpec(shp, lambda i: (0, 0))

        # VMEM budget: double-buffered streamed tiles + weight slabs + f32 intermediates.
        weight_bytes = ((c_dim * f_dim + f_dim * 2 * f_pad) * 2      # bf16 weights
                        + (f_dim + 2 * f_pad) * 4)                   # f32 biases
        if not single_buffer_weights:
            weight_bytes *= 2
        streamed = 2 * tm * (f_dim * x2.dtype.itemsize
                             + c_dim * c2.dtype.itemsize
                             + f_dim * out_dtype.itemsize)
        scratch = tm * (3 * f_dim + 2 * f_pad) * 4                   # x/xn/h + gb in f32
        est = streamed + weight_bytes + scratch
        vmem_limit = int(min(vmem_cap, max(2 * est, 32 << 20)))

        return pl.pallas_call(
            functools.partial(_mln_kernel, eps=eps, f_dim=f_dim, f_pad=f_pad,
                              apply_ln=use_ln),
            out_shape=jax.ShapeDtypeStruct((M, f_dim), out_dtype),
            grid_spec=pltpu.PrefetchScalarGridSpec(
                num_scalar_prefetch=0,
                grid=grid,
                in_specs=[
                    row_x,                          # x rows (streamed)
                    row_c,                          # c rows (streamed)
                    const((c_dim, f_dim)),          # Wr (bf16, resident)
                    const((1, f_dim)),              # br (f32, resident)
                    const((f_dim, 2 * f_pad)),      # Wg|Wb packed (bf16, resident)
                    const((1, 2 * f_pad)),          # bg|bb packed (f32, resident)
                ],
                out_specs=row_o,
            ),
            compiler_params=pltpu.CompilerParams(
                dimension_semantics=("parallel",),
                vmem_limit_bytes=vmem_limit),
        )

    try:
        out = _build(single_buffer_weights=True)(x2, c2, wr, br, wgb, bgb)
    except Exception:
        # pl.Buffered(1) not supported by this jax/backend combo: fall back to the
        # default double-buffered weight slabs (slightly more VMEM, same results).
        out = _build(single_buffer_weights=False)(x2, c2, wr, br, wgb, bgb)

    return out.reshape(*lead, f_dim)


def init_params(key, c_dim, f_dim, dtype=jnp.float32):
    # Deterministic synthetic init. (The real module's reset_parameters() zeros the
    # gamma/beta weights which would make the forward degenerate; random values
    # exercise the full compute path while keeping identical semantics.)
    k1, k2, k3 = jax.random.split(key, 3)
    scale = 0.1
    return {
        "wr": (jax.random.normal(k1, (c_dim, f_dim)) * scale).astype(dtype),
        "br": jnp.zeros((f_dim,), dtype),
        "wg": (jax.random.normal(k2, (f_dim, f_dim)) * scale).astype(dtype),
        "bg": jnp.ones((f_dim,), dtype),
        "wb": (jax.random.normal(k3, (f_dim, f_dim)) * scale).astype(dtype),
        "bb": jnp.zeros((f_dim,), dtype),
    }


def mln_reference_f32(x, c, params, eps=1e-5):
    # Pure f32 reference (the module's exact math).
    mean = jnp.mean(x, axis=-1, keepdims=True)
    var = jnp.mean((x - mean) ** 2, axis=-1, keepdims=True)
    xn = (x - mean) / jnp.sqrt(var + eps)
    h = jax.nn.relu(c @ params["wr"] + params["br"])
    gamma = h @ params["wg"] + params["bg"]
    beta = h @ params["wb"] + params["bb"]
    return gamma * xn + beta


def mln_reference_matched(x, c, params, eps=1e-5):
    # Same arithmetic as the kernel: bf16 MXU operands, f32 accumulation.
    mean = jnp.mean(x, axis=-1, keepdims=True)
    var = jnp.mean((x - mean) ** 2, axis=-1, keepdims=True)
    xn = (x - mean) * lax.rsqrt(var + eps)
    h = jax.nn.relu(jnp.dot(c.astype(jnp.bfloat16), params["wr"].astype(jnp.bfloat16),
                            preferred_element_type=jnp.float32) + params["br"])
    hb = h.astype(jnp.bfloat16)
    gamma = jnp.dot(hb, params["wg"].astype(jnp.bfloat16),
                    preferred_element_type=jnp.float32) + params["bg"]
    beta = jnp.dot(hb, params["wb"].astype(jnp.bfloat16),
                   preferred_element_type=jnp.float32) + params["bb"]
    return gamma * xn + beta


if __name__ == "__main__":
    # Small but lane-dense shapes consistent with the module (f_dim default is 256).
    B, N = 2, 256
    c_dim, f_dim = 128, 256

    key = jax.random.PRNGKey(0)
    kx, kc, kp = jax.random.split(key, 3)
    x = jax.random.normal(kx, (B, N, f_dim), jnp.float32)
    c = jax.random.normal(kc, (B, N, c_dim), jnp.float32)
    params = init_params(kp, c_dim, f_dim)

    out = mln_forward(x, c, params)
    out = jax.block_until_ready(out)
    assert out.shape == (B, N, f_dim)
    assert bool(jnp.all(jnp.isfinite(out)))

    # Tight check against a reference using the same bf16-operand / f32-accum arithmetic.
    ref = mln_reference_matched(x, c, params)
    assert jnp.allclose(out, ref, atol=2e-3, rtol=2e-3), "mismatch vs matched reference"

    # Loose sanity check against the pure-f32 module math (bf16 operand rounding only).
    ref32 = mln_reference_f32(x, c, params)
    assert jnp.allclose(out, ref32, atol=2.5e-1, rtol=5e-2), "mismatch vs f32 reference"

    # Ragged-M case: no wrapper pad/slice any more; the partial tail block must be
    # handled correctly by the kernel (valid rows exact, tail rows dropped).
    Br, Nr = 2, 77
    xr = jax.random.normal(kx, (Br, Nr, f_dim), jnp.float32)
    cr = jax.random.normal(kc, (Br, Nr, c_dim), jnp.float32)
    out_r = jax.block_until_ready(mln_forward(xr, cr, params))
    assert out_r.shape == (Br, Nr, f_dim)
    assert bool(jnp.all(jnp.isfinite(out_r)))
    ref_r = mln_reference_matched(xr, cr, params)
    assert jnp.allclose(out_r, ref_r, atol=2e-3, rtol=2e-3), "ragged-tail mismatch"

    print("KERNEL_OK")
</pallas_src>

<mosaic_0001>
module attributes {stable_mosaic.version = 11 : i64} {
  func.func @_mln_kernel(%arg0: i32, %arg1: memref<256x256xf32, #tpu.memory_space<vmem>>, %arg2: memref<256x128xf32, #tpu.memory_space<vmem>>, %arg3: memref<128x256xbf16, #tpu.memory_space<vmem>>, %arg4: memref<1x256xf32, #tpu.memory_space<vmem>>, %arg5: memref<256x512xbf16, #tpu.memory_space<vmem>>, %arg6: memref<1x512xf32, #tpu.memory_space<vmem>>, %arg7: memref<256x256xf32, #tpu.memory_space<vmem>>) attributes {dimension_semantics = [#tpu.dimension_semantics<parallel>], iteration_bounds = array<i64: 2>, scalar_prefetch = 0 : i64, scratch_operands = 0 : i64, tpu.core_type = #tpu.core_type<tc>, window_params = [{transform_indices = @transform_0, window_bounds = array<i64: 256, 256>}, {transform_indices = @transform_1, window_bounds = array<i64: 256, 128>}, {pipeline_mode = #tpu.pipeline_mode<synchronous>, transform_indices = @transform_2, window_bounds = array<i64: 128, 256>}, {pipeline_mode = #tpu.pipeline_mode<synchronous>, transform_indices = @transform_3, window_bounds = array<i64: 1, 256>}, {pipeline_mode = #tpu.pipeline_mode<synchronous>, transform_indices = @transform_4, window_bounds = array<i64: 256, 512>}, {pipeline_mode = #tpu.pipeline_mode<synchronous>, transform_indices = @transform_5, window_bounds = array<i64: 1, 512>}, {transform_indices = @transform_6, window_bounds = array<i64: 256, 256>}]} {
    %c0 = arith.constant 0 : index
    %c0_0 = arith.constant 0 : index
    %0 = vector.load %arg1[%c0, %c0_0] : memref<256x256xf32, #tpu.memory_space<vmem>>, vector<256x256xf32>
    %cst = arith.constant dense<0.000000e+00> : vector<256xf32>
    %1 = vector.multi_reduction <add>, %0, %cst [1] : vector<256x256xf32> to vector<256xf32>
    %2 = vector.shape_cast %1 : vector<256xf32> to vector<256x1xf32>
    %cst_1 = arith.constant 2.560000e+02 : f32
    %3 = vector.broadcast %cst_1 : f32 to vector<256x1xf32>
    %4 = arith.divf %2, %3 : vector<256x1xf32>
    %5 = vector.broadcast %4 : vector<256x1xf32> to vector<256x256xf32>
    %6 = arith.subf %0, %5 : vector<256x256xf32>
    %7 = arith.mulf %6, %6 : vector<256x256xf32>
    %cst_2 = arith.constant dense<0.000000e+00> : vector<256xf32>
    %8 = vector.multi_reduction <add>, %7, %cst_2 [1] : vector<256x256xf32> to vector<256xf32>
    %9 = vector.shape_cast %8 : vector<256xf32> to vector<256x1xf32>
    %cst_3 = arith.constant 2.560000e+02 : f32
    %10 = vector.broadcast %cst_3 : f32 to vector<256x1xf32>
    %11 = arith.divf %9, %10 : vector<256x1xf32>
    %cst_4 = arith.constant 9.99999974E-6 : f32
    %12 = vector.broadcast %cst_4 : f32 to vector<256x1xf32>
    %13 = arith.addf %11, %12 : vector<256x1xf32>
    %14 = math.rsqrt %13 : vector<256x1xf32>
    %15 = vector.broadcast %14 : vector<256x1xf32> to vector<256x256xf32>
    %16 = arith.mulf %6, %15 : vector<256x256xf32>
    %c0_5 = arith.constant 0 : index
    %c0_6 = arith.constant 0 : index
    %17 = vector.load %arg2[%c0_5, %c0_6] : memref<256x128xf32, #tpu.memory_space<vmem>>, vector<256x128xf32>
    %18 = arith.truncf %17 : vector<256x128xf32> to vector<256x128xbf16>
    %c0_7 = arith.constant 0 : index
    %c0_8 = arith.constant 0 : index
    %19 = vector.load %arg3[%c0_7, %c0_8] : memref<128x256xbf16, #tpu.memory_space<vmem>>, vector<128x256xbf16>
    %cst_9 = arith.constant dense<0.000000e+00> : vector<256x256xf32>
    %20 = tpu.matmul %18, %19, %cst_9 {dimension_numbers = #tpu.dot_dimension_numbers<[1], [0], [0], [1], [0, 0, 1, 1], [], []>} : vector<256x128xbf16>, vector<128x256xbf16>, vector<256x256xf32> -> vector<256x256xf32>
    %c0_10 = arith.constant 0 : index
    %c0_11 = arith.constant 0 : index
    %21 = vector.load %arg4[%c0_10, %c0_11] : memref<1x256xf32, #tpu.memory_space<vmem>>, vector<1x256xf32>
    %22 = vector.broadcast %21 : vector<1x256xf32> to vector<256x256xf32>
    %23 = arith.addf %20, %22 : vector<256x256xf32>
    %cst_12 = arith.constant 0.000000e+00 : f32
    %24 = vector.broadcast %cst_12 : f32 to vector<256x256xf32>
    %25 = arith.maximumf %23, %24 : vector<256x256xf32>
    %26 = arith.truncf %25 : vector<256x256xf32> to vector<256x256xbf16>
    %c0_13 = arith.constant 0 : index
    %c0_14 = arith.constant 0 : index
    %27 = vector.load %arg5[%c0_13, %c0_14] : memref<256x512xbf16, #tpu.memory_space<vmem>>, vector<256x512xbf16>
    %cst_15 = arith.constant dense<0.000000e+00> : vector<256x512xf32>
    %28 = tpu.matmul %26, %27, %cst_15 {dimension_numbers = #tpu.dot_dimension_numbers<[1], [0], [0], [1], [0, 0, 1, 1], [], []>} : vector<256x256xbf16>, vector<256x512xbf16>, vector<256x512xf32> -> vector<256x512xf32>
    %c0_16 = arith.constant 0 : index
    %c0_17 = arith.constant 0 : index
    %29 = vector.load %arg6[%c0_16, %c0_17] : memref<1x512xf32, #tpu.memory_space<vmem>>, vector<1x512xf32>
    %30 = vector.broadcast %29 : vector<1x512xf32> to vector<256x512xf32>
    %31 = arith.addf %28, %30 : vector<256x512xf32>
    %32 = vector.extract_strided_slice %31 {offsets = [0, 0], sizes = [256, 256], strides = [1, 1]} : vector<256x512xf32> to vector<256x256xf32>
    %33 = vector.extract_strided_slice %31 {offsets = [0, 256], sizes = [256, 256], strides = [1, 1]} : vector<256x512xf32> to vector<256x256xf32>
    %34 = arith.mulf %32, %16 : vector<256x256xf32>
    %35 = arith.addf %34, %33 : vector<256x256xf32>
    %c0_18 = arith.constant 0 : index
    %c0_19 = arith.constant 0 : index
    %36 = vector.load %arg7[%c0_18, %c0_19] : memref<256x256xf32, #tpu.memory_space<vmem>>, vector<256x256xf32>
    tpu.vector_store %arg7[%c0_18, %c0_19], %35 {strides = array<i32>} : memref<256x256xf32, #tpu.memory_space<vmem>>, vector<256x256xf32>,
    return
  }
  func.func @transform_0(%arg0: i32) -> (i32, i32) {
    %c0_i32 = arith.constant 0 : i32
    %c0_i32_0 = arith.constant 0 : i32
    return %arg0, %c0_i32 : i32, i32
  }
  func.func @transform_1(%arg0: i32) -> (i32, i32) {
    %c0_i32 = arith.constant 0 : i32
    %c0_i32_0 = arith.constant 0 : i32
    return %arg0, %c0_i32 : i32, i32
  }
  func.func @transform_2(%arg0: i32) -> (i32, i32) {
    %c0_i32 = arith.constant 0 : i32
    %c0_i32_0 = arith.constant 0 : i32
    %c0_i32_1 = arith.constant 0 : i32
    return %c0_i32, %c0_i32_0 : i32, i32
  }
  func.func @transform_3(%arg0: i32) -> (i32, i32) {
    %c0_i32 = arith.constant 0 : i32
    %c0_i32_0 = arith.constant 0 : i32
    %c0_i32_1 = arith.constant 0 : i32
    return %c0_i32, %c0_i32_0 : i32, i32
  }
  func.func @transform_4(%arg0: i32) -> (i32, i32) {
    %c0_i32 = arith.constant 0 : i32
    %c0_i32_0 = arith.constant 0 : i32
    %c0_i32_1 = arith.constant 0 : i32
    return %c0_i32, %c0_i32_0 : i32, i32
  }
  func.func @transform_5(%arg0: i32) -> (i32, i32) {
    %c0_i32 = arith.constant 0 : i32
    %c0_i32_0 = arith.constant 0 : i32
    %c0_i32_1 = arith.constant 0 : i32
    return %c0_i32, %c0_i32_0 : i32, i32
  }
  func.func @transform_6(%arg0: i32) -> (i32, i32) {
    %c0_i32 = arith.constant 0 : i32
    %c0_i32_0 = arith.constant 0 : i32
    return %arg0, %c0_i32 : i32, i32
  }
}

module attributes {stable_mosaic.version = 11 : i64} {
  func.func @_mln_kernel(%arg0: i32, %arg1: memref<256x256xf32, #tpu.memory_space<vmem>>, %arg2: memref<256x128xf32, #tpu.memory_space<vmem>>, %arg3: memref<128x256xbf16, #tpu.memory_space<vmem>>, %arg4: memref<1x256xf32, #tpu.memory_space<vmem>>, %arg5: memref<256x512xbf16, #tpu.memory_space<vmem>>, %arg6: memref<1x512xf32, #tpu.memory_space<vmem>>, %arg7: memref<256x256xf32, #tpu.memory_space<vmem>>) attributes {dimension_semantics = [#tpu.dimension_semantics<parallel>], iteration_bounds = array<i64: 2>, scalar_prefetch = 0 : i64, scratch_operands = 0 : i64, tpu.core_type = #tpu.core_type<tc>, window_params = [{transform_indices = @transform_0, window_bounds = array<i64: 256, 256>}, {transform_indices = @transform_1, window_bounds = array<i64: 256, 128>}, {pipeline_mode = #tpu.pipeline_mode<synchronous>, transform_indices = @transform_2, window_bounds = array<i64: 128, 256>}, {pipeline_mode = #tpu.pipeline_mode<synchronous>, transform_indices = @transform_3, window_bounds = array<i64: 1, 256>}, {pipeline_mode = #tpu.pipeline_mode<synchronous>, transform_indices = @transform_4, window_bounds = array<i64: 256, 512>}, {pipeline_mode = #tpu.pipeline_mode<synchronous>, transform_indices = @transform_5, window_bounds = array<i64: 1, 512>}, {transform_indices = @transform_6, window_bounds = array<i64: 256, 256>}]} {
    %c0 = arith.constant 0 : index
    %c0_0 = arith.constant 0 : index
    %0 = vector.load %arg1[%c0, %c0_0] : memref<256x256xf32, #tpu.memory_space<vmem>>, vector<256x256xf32>
    %cst = arith.constant dense<0.000000e+00> : vector<256xf32>
    %1 = vector.multi_reduction <add>, %0, %cst [1] : vector<256x256xf32> to vector<256xf32>
    %2 = vector.shape_cast %1 : vector<256xf32> to vector<256x1xf32>
    %cst_1 = arith.constant 2.560000e+02 : f32
    %3 = vector.broadcast %cst_1 : f32 to vector<256x1xf32>
    %4 = arith.divf %2, %3 : vector<256x1xf32>
    %5 = vector.broadcast %4 : vector<256x1xf32> to vector<256x256xf32>
    %6 = arith.subf %0, %5 : vector<256x256xf32>
    %7 = arith.mulf %6, %6 : vector<256x256xf32>
    %cst_2 = arith.constant dense<0.000000e+00> : vector<256xf32>
    %8 = vector.multi_reduction <add>, %7, %cst_2 [1] : vector<256x256xf32> to vector<256xf32>
    %9 = vector.shape_cast %8 : vector<256xf32> to vector<256x1xf32>
    %cst_3 = arith.constant 2.560000e+02 : f32
    %10 = vector.broadcast %cst_3 : f32 to vector<256x1xf32>
    %11 = arith.divf %9, %10 : vector<256x1xf32>
    %cst_4 = arith.constant 9.99999974E-6 : f32
    %12 = vector.broadcast %cst_4 : f32 to vector<256x1xf32>
    %13 = arith.addf %11, %12 : vector<256x1xf32>
    %14 = math.rsqrt %13 : vector<256x1xf32>
    %15 = vector.broadcast %14 : vector<256x1xf32> to vector<256x256xf32>
    %16 = arith.mulf %6, %15 : vector<256x256xf32>
    %c0_5 = arith.constant 0 : index
    %c0_6 = arith.constant 0 : index
    %17 = vector.load %arg2[%c0_5, %c0_6] : memref<256x128xf32, #tpu.memory_space<vmem>>, vector<256x128xf32>
    %18 = arith.truncf %17 : vector<256x128xf32> to vector<256x128xbf16>
    %c0_7 = arith.constant 0 : index
    %c0_8 = arith.constant 0 : index
    %19 = vector.load %arg3[%c0_7, %c0_8] : memref<128x256xbf16, #tpu.memory_space<vmem>>, vector<128x256xbf16>
    %cst_9 = arith.constant dense<0.000000e+00> : vector<256x256xf32>
    %20 = tpu.matmul %18, %19, %cst_9 {dimension_numbers = #tpu.dot_dimension_numbers<[1], [0], [0], [1], [0, 0, 1, 1], [], []>} : vector<256x128xbf16>, vector<128x256xbf16>, vector<256x256xf32> -> vector<256x256xf32>
    %c0_10 = arith.constant 0 : index
    %c0_11 = arith.constant 0 : index
    %21 = vector.load %arg4[%c0_10, %c0_11] : memref<1x256xf32, #tpu.memory_space<vmem>>, vector<1x256xf32>
    %22 = vector.broadcast %21 : vector<1x256xf32> to vector<256x256xf32>
    %23 = arith.addf %20, %22 : vector<256x256xf32>
    %cst_12 = arith.constant 0.000000e+00 : f32
    %24 = vector.broadcast %cst_12 : f32 to vector<256x256xf32>
    %25 = arith.maximumf %23, %24 : vector<256x256xf32>
    %26 = arith.truncf %25 : vector<256x256xf32> to vector<256x256xbf16>
    %c0_13 = arith.constant 0 : index
    %c0_14 = arith.constant 0 : index
    %27 = vector.load %arg5[%c0_13, %c0_14] : memref<256x512xbf16, #tpu.memory_space<vmem>>, vector<256x512xbf16>
    %cst_15 = arith.constant dense<0.000000e+00> : vector<256x512xf32>
    %28 = tpu.matmul %26, %27, %cst_15 {dimension_numbers = #tpu.dot_dimension_numbers<[1], [0], [0], [1], [0, 0, 1, 1], [], []>} : vector<256x256xbf16>, vector<256x512xbf16>, vector<256x512xf32> -> vector<256x512xf32>
    %c0_16 = arith.constant 0 : index
    %c0_17 = arith.constant 0 : index
    %29 = vector.load %arg6[%c0_16, %c0_17] : memref<1x512xf32, #tpu.memory_space<vmem>>, vector<1x512xf32>
    %30 = vector.broadcast %29 : vector<1x512xf32> to vector<256x512xf32>
    %31 = arith.addf %28, %30 : vector<256x512xf32>
    %32 = vector.extract_strided_slice %31 {offsets = [0, 0], sizes = [256, 256], strides = [1, 1]} : vector<256x512xf32> to vector<256x256xf32>
    %33 = vector.extract_strided_slice %31 {offsets = [0, 256], sizes = [256, 256], strides = [1, 1]} : vector<256x512xf32> to vector<256x256xf32>
    %34 = arith.mulf %32, %16 : vector<256x256xf32>
    %35 = arith.addf %34, %33 : vector<256x256xf32>
    %c0_18 = arith.constant 0 : index
    %c0_19 = arith.constant 0 : index
    %36 = vector.load %arg7[%c0_18, %c0_19] : memref<256x256xf32, #tpu.memory_space<vmem>>, vector<256x256xf32>
    tpu.vector_store %arg7[%c0_18, %c0_19], %35 {strides = array<i32>} : memref<256x256xf32, #tpu.memory_space<vmem>>, vector<256x256xf32>,
    return
  }
  func.func @transform_0(%arg0: i32) -> (i32, i32) {
    %c0_i32 = arith.constant 0 : i32
    %c0_i32_0 = arith.constant 0 : i32
    return %arg0, %c0_i32 : i32, i32
  }
  func.func @transform_1(%arg0: i32) -> (i32, i32) {
    %c0_i32 = arith.constant 0 : i32
    %c0_i32_0 = arith.constant 0 : i32
    return %arg0, %c0_i32 : i32, i32
  }
  func.func @transform_2(%arg0: i32) -> (i32, i32) {
    %c0_i32 = arith.constant 0 : i32
    %c0_i32_0 = arith.constant 0 : i32
    %c0_i32_1 = arith.constant 0 : i32
    return %c0_i32, %c0_i32_0 : i32, i32
  }
  func.func @transform_3(%arg0: i32) -> (i32, i32) {
    %c0_i32 = arith.constant 0 : i32
    %c0_i32_0 = arith.constant 0 : i32
    %c0_i32_1 = arith.constant 0 : i32
    return %c0_i32, %c0_i32_0 : i32, i32
  }
  func.func @transform_4(%arg0: i32) -> (i32, i32) {
    %c0_i32 = arith.constant 0 : i32
    %c0_i32_0 = arith.constant 0 : i32
    %c0_i32_1 = arith.constant 0 : i32
    return %c0_i32, %c0_i32_0 : i32, i32
  }
  func.func @transform_5(%arg0: i32) -> (i32, i32) {
    %c0_i32 = arith.constant 0 : i32
    %c0_i32_0 = arith.constant 0 : i32
    %c0_i32_1 = arith.constant 0 : i32
    return %c0_i32, %c0_i32_0 : i32, i32
  }
  func.func @transform_6(%arg0: i32) -> (i32, i32) {
    %c0_i32 = arith.constant 0 : i32
    %c0_i32_0 = arith.constant 0 : i32
    return %arg0, %c0_i32 : i32, i32
  }
}

</mosaic_0001>

<bundles_post_ra>
// kernel: tpu_custom_call.1
= control target key start
LH: loop header
LB: loop body
LE: loop exit
PB: predicated region body
PF: predicated region fallthrough
CT: control target
= control target key end

     0   :  { %s4449_s0 = inlined_call_operand.hbm [shape: f32[512,256], index: 0, kind: input, shape index: {}]   ;;  %s4450_s1 = inlined_call_operand.hbm [shape: f32[512,128], index: 1, kind: input, shape index: {}]   ;;  %s4451_s2 = inlined_call_operand.hbm [shape: bf16[128,256], index: 2, kind: input, shape index: {}]   ;;  %s4452_s3 = inlined_call_operand.vmem [shape: f32[1,256], index: 3, kind: input, shape index: {}]   ;;  %s4453_s4 = inlined_call_operand.hbm [shape: bf16[256,512], index: 4, kind: input, shape index: {}]   ;;  %s4454_s5 = inlined_call_operand.vmem [shape: f32[1,512], index: 5, kind: input, shape index: {}]   ;;  %s4455_s6 = inlined_call_operand.hbm [shape: f32[512,256], index: 6, kind: output, shape index: {}]  }
   0x1   :  { %4528 = sst [smem:[#allocation58_spill]] %s4449_s0 }
   0x2   :  { %4529 = sst [smem:[#allocation59_spill]] %s4451_s2 }
   0x3   :  { %4530 = sst [smem:[#allocation60_spill]] %s4453_s4 }
   0x4   :  { %11 = vsyncpa [#allocation3], 0 }
   0x5   :  { %13 = vsyncpa [#allocation3 + $0x1], 0 }
   0x6   :  { %14 = vsyncpa [#allocation6], 0 }
   0x7   :  { %16 = vsyncpa [#allocation6 + $0x1], 0 }
   0x8   :  { %17 = vsyncpa [#allocation9], 0 }
   0x9   :  { %18 = vsyncpa [#allocation4], 0 }
   0xa   :  { %20 = vsyncpa [#allocation4 + $0x1], 0  ;;  %s3111_s21 = smov 0   ;;  %s3113_s22 = smov 0  }
   0xb   :  { %s3115_s23 = smov 0   ;;  %s3117_s24 = smov 0  }
   0xc LB: > { %s3132_s25 = sadd.s32 4294967295, %s3062_s24   ;;  %s2480_s26 = sadd.s32 4294967294, %s3062_s24   ;;  %s3062_s24 = sphi %s3117_s24, %s4684_s24   ;;  %s3058_s23 = sphi %s3115_s23, %s4683_s23   ;;  %s3054_s22 = sphi %s3113_s22, %s4682_s22   ;;  %s3050_s21 = sphi %s3111_s21, %s4681_s21  }
   0xd   : > { %p46_p0 = scmp.ne.s32.totalorder %s3054_s22, %s3050_s21  ;;  %p4456_p1 = scmp.eq.s32.totalorder %s3132_s25, 0 }
   0xe   : > { %p186_p3 = scmp.eq.s32.totalorder %s2480_s26, 1  ;;  %p2481_p5 = scmp.ge.s32.totalorder %s3062_s24, 1 }
   0xf   : > { %p3141_p4 = por %p4456_p1, %p46_p0  ;;  %p193_p7 = scmp.lt.s32.totalorder %s3062_s24, 3 }
  0x10   : > { %p3146_p6 = por %p186_p3, %p46_p0  ;;  %s3064_s30 = smov [#allocation7]  }
  0x11   : > { %s4531_s27 = scalar_select %p3141_p4, 1, 0 }
  0x12   : > { %s4532_s28 = scalar_select %p3146_p6, 1, 0 }
  0x13   : > { %p3151_p8 = pnand %p2481_p5, %p193_p7  ;;  %s205_s7 = sshll.u32 %s3064_s30, 4  ;;  %s3155_s7 = int_to_ptr.vmem [resolvable:$true] %s205_s7 }
  0x14   : > { %s3065_s9 = smov [#allocation8]   ;;  %s4535_s2 = sld [smem:[#allocation59_spill]] }
  0x15   : > { %p2619_p9 = pneg %p3151_p8  ;;  %s221_s10 = sshll.u32 %s3065_s9, 4  ;;  %s3166_s10 = int_to_ptr.vmem [resolvable:$true] %s221_s10 }
  0x17   : > { %p3162_p11 = pnand %p2619_p9, %p4456_p1 }
  0x19   : > { %p2870_p13 = pneg %p3162_p11 }
  0x1a   : > { %s2868_s13 = scalar_lea.hbm %s4535_s2, 2048 }
  0x1b   : > { %p2869_p12 = scmp.ne.s32.totalorder %s4535_s2, %s2868_s13  ;;  %p2875_p5 = scmp.lt.u32.totalorder %s2868_s13, %s4535_s2 }
  0x1d   : > { %p2871_p0 = pnand %p2870_p13, %p2869_p12 }
  0x1f   : > { %p2872_p3 = pneg %p2871_p0 }
  0x21   : > { %p2877_p7 = pnand %p2875_p5, %p2872_p3 }
  0x23   : > { %2880 = shalt.err (!%p2877_p7)
}
  0x24   : > { %s2881_s18 = scalar_lea.vmem %s3155_s7, 2048  ;;  %p2889_p2 = scmp.lt.s32.totalorder %s3155_s7, %s3155_s7 }
  0x25   : > { %p2882_p9 = scmp.ne.s32.totalorder %s3155_s7, %s2881_s18  ;;  %p2890_p12 = scmp.lt.s32.totalorder %s2881_s18, %s2881_s18 }
  0x27   : > { %p2884_p10 = pnand %p2882_p9, %p2870_p13  ;;  %p2891_p0 = por %p2890_p12, %p2889_p2 }
  0x29   : > { %p2885_p1 = pneg %p2884_p10 }
  0x2b   : > { %p2892_p6 = pnand %p2891_p0, %p2885_p1 }
  0x2d   : > { %2895 = shalt.err (!%p2892_p6)
}
  0x2e   : > { %s4457_s19 = smov 128   ;;  %s4458_s20 = smov 8  }
  0x2f   : > { %2622 = dma.hbm_to_vmem [thread:$0]  (!%p3162_p11), %s4535_s2, 2048, %s3155_s7, [#allocation6], %s4457_s19, %s4457_s19, %s4458_s20  }
  0x30   : > { %s4536_s4 = sld [smem:[#allocation60_spill]] }
  0x36   : > { %s2896_s12 = scalar_lea.hbm %s4536_s4, 8192 }
  0x37   : > { %p2897_p1 = scmp.ne.s32.totalorder %s4536_s4, %s2896_s12  ;;  %p2903_p10 = scmp.lt.u32.totalorder %s2896_s12, %s4536_s4 }
  0x39   : > { %p2899_p2 = pnand %p2897_p1, %p2870_p13 }
  0x3b   : > { %p2900_p6 = pneg %p2899_p2 }
  0x3d   : > { %p2905_p3 = pnand %p2903_p10, %p2900_p6 }
  0x3f   : > { %2908 = shalt.err (!%p2905_p3)
}
  0x40   : > { %s2909_s7 = scalar_lea.vmem %s3166_s10, 8192  ;;  %p2917_p12 = scmp.lt.s32.totalorder %s3166_s10, %s3166_s10 }
  0x41   : > { %p2910_p5 = scmp.ne.s32.totalorder %s3166_s10, %s2909_s7  ;;  %p2918_p0 = scmp.lt.s32.totalorder %s2909_s7, %s2909_s7 }
  0x43   : > { %p2912_p7 = pnand %p2910_p5, %p2870_p13  ;;  %p2919_p1 = por %p2918_p0, %p2917_p12 }
  0x45   : > { %p2913_p9 = pneg %p2912_p7 }
  0x47   : > { %p2920_p2 = pnand %p2919_p1, %p2913_p9 }
  0x49   : > { %2923 = shalt.err (!%p2920_p2)
}
  0x4a   : > { %s4459_s17 = smov 256   ;;  %s4460_s18 = smov 16  }
  0x4b   : > { %2625 = dma.hbm_to_vmem [thread:$0]  (!%p3162_p11), %s4536_s4, 8192, %s3166_s10, [#allocation9], %s4459_s17, %s4459_s17, %s4460_s18  }
  0x4c   : > { %s3227_s9 = sadd.s32 1, %s3062_s24   ;;  %s33_s12 = sadd.s32 1, %s3058_s23 }
  0x4d   : > { %s30_s11 = ssub.s32 %s3062_s24, %s3227_s9  ;;  %p40_p6 = scmp.ne.s32.totalorder %s3058_s23, %s3054_s22 }
  0x4e   : > { %p31_p13 = scmp.eq.s32.totalorder %s30_s11, 0  ;;  %p41_p10 = scmp.eq.s32.totalorder %s3062_s24, 0 }
  0x4f   : > { %p4538_p5 = scmp.eq.s32.totalorder %s3132_s25, 1  ;;  %p2639_p9 = scmp.lt.s32.totalorder %s3062_s24, 2 }
  0x50   : > { %s3236_s13 = scalar_select %p31_p13, %s3058_s23, %s33_s12  }
  0x51   : > { %p42_p3 = por %p41_p10, %p40_p6  ;;  %p3240_p7 = por %p4538_p5, %p40_p6 }
  0x52   : > { %4537 = sst [smem:[#allocation16_spill]] %s3236_s13  ;;  %s3246_s14 = sand.u32 1, %s3058_s23  }
  0x53   : > { %s4539_s8 = scalar_select %p3240_p7, 1, 0 }
  0x54   : > { %s2485_s10 = sshll.u32 %s3246_s14, 9  ;;  %s2585_s15 = sshll.u32 %s3062_s24, 13 }
  0x55   : > { %s4540_s0 = sld [smem:[#allocation58_spill]]  ;;  %s242_s30 = scalar_lea.vmem [#allocation2], %s2485_s10 }
  0x56   : > { %s250_s11 = sshll.u32 %s242_s30, 4  ;;  %p3257_p11 = pnand %p2639_p9, %p42_p3  ;;  %s3255_s11 = int_to_ptr.vmem [resolvable:$true] %s250_s11 }
  0x57   : > { %s2489_s20 = sshll.u32 %s3246_s14, 8  ;;  %s239_s17 = scalar_lea.sflag [#allocation3], %s3246_s14 }
  0x58   : > { %p2926_p0 = pneg %p3257_p11 }
  0x5b   : > { %s3253_s26 = scalar_lea.hbm %s4540_s0, %s2585_s15  ;;  %s2929_s7 = scalar_lea.hbm %s4540_s0, 16384 }
  0x5c   : > { %s2924_s16 = scalar_lea.hbm %s3253_s26, 8192  ;;  %p2930_p13 = scmp.lt.u32.totalorder %s3253_s26, %s4540_s0 }
  0x5d   : > { %p2925_p12 = scmp.ne.s32.totalorder %s3253_s26, %s2924_s16  ;;  %p2931_p6 = scmp.lt.u32.totalorder %s2929_s7, %s2924_s16 }
  0x5e   : > { %p2933_p3 = scmp.lt.u32.totalorder %s2924_s16, %s3253_s26 }
  0x5f   : > { %p2927_p1 = pnand %p2926_p0, %p2925_p12  ;;  %p2932_p10 = por %p2931_p6, %p2930_p13 }
  0x61   : > { %p2928_p2 = pneg %p2927_p1  ;;  %p2934_p5 = por %p2933_p3, %p2932_p10 }
  0x63   : > { %p2935_p9 = pnand %p2934_p5, %p2928_p2 }
  0x65   : > { %2938 = shalt.err (!%p2935_p9)
}
  0x66   : > { %s2939_s19 = scalar_lea.vmem %s3255_s11, 8192  ;;  %s3070_s10 = smov [#allocation2]  }
  0x67   : > { %p2940_p12 = scmp.ne.s32.totalorder %s3255_s11, %s2939_s19  ;;  %s2944_s15 = sshll.u32 %s3070_s10, 4  ;;  %s2945_s15 = int_to_ptr.vmem [resolvable:$false] %s2944_s15 }
  0x68   : > { %s2946_s18 = scalar_lea.vmem %s2945_s15, 16384  ;;  %p2947_p4 = scmp.lt.s32.totalorder %s3255_s11, %s2945_s15 }
  0x69   : > { %p2942_p1 = pnand %p2940_p12, %p2926_p0  ;;  %p2948_p13 = scmp.lt.s32.totalorder %s2946_s18, %s2939_s19 }
  0x6b   : > { %p2943_p7 = pneg %p2942_p1  ;;  %p2949_p6 = por %p2948_p13, %p2947_p4 }
  0x6d   : > { %p2950_p10 = pnand %p2949_p6, %p2943_p7 }
  0x6f   : > { %2953 = shalt.err (!%p2950_p10)
}
  0x70   : > { %s4542_s16 = smov 16   ;;  %s4543_s7 = smov 256  }
  0x71   : > { %2629 = dma.hbm_to_vmem [thread:$0]  (!%p3257_p11), %s3253_s26, 8192, %s3255_s11, %s239_s17, %s4543_s7, %s4543_s7, %s4542_s16  }
  0x72   : > { %s2586_s30 = sshll.u32 %s3062_s24, 12  ;;  %s264_s18 = scalar_lea.vmem [#allocation5], %s2489_s20 }
  0x73   : > { %s3298_s15 = scalar_lea.hbm %s4450_s1, %s2586_s30  ;;  %s271_s0 = sshll.u32 %s264_s18, 4  ;;  %s3302_s0 = int_to_ptr.vmem [resolvable:$true] %s271_s0 }
  0x74   : > { %s4544_s2 = sand.u32 1, %s3062_s24   ;;  %s2954_s13 = scalar_lea.hbm %s3298_s15, 4096 }
  0x75   : > { %s3306_s4 = scalar_lea.sflag [#allocation6], %s4544_s2  ;;  %p2955_p4 = scmp.ne.s32.totalorder %s3298_s15, %s2954_s13 }
  0x76   : > { %s2959_s14 = scalar_lea.hbm %s4450_s1, 8192  ;;  %p2960_p3 = scmp.lt.u32.totalorder %s3298_s15, %s4450_s1 }
  0x77   : > { %p2957_p7 = pnand %p2955_p4, %p2926_p0  ;;  %p2961_p5 = scmp.lt.u32.totalorder %s2959_s14, %s2954_s13 }
  0x78   : > { %p2963_p12 = scmp.lt.u32.totalorder %s2954_s13, %s3298_s15 }
  0x79   : > { %p2958_p2 = pneg %p2957_p7  ;;  %p2962_p9 = por %p2961_p5, %p2960_p3 }
  0x7b   : > { %p2964_p1 = por %p2963_p12, %p2962_p9 }
  0x7d   : > { %p2965_p13 = pnand %p2964_p1, %p2958_p2 }
  0x7f   : > { %2968 = shalt.err (!%p2965_p13)
}
  0x80   : > { %s2969_s2 = scalar_lea.vmem %s3302_s0, 4096  ;;  %s3071_s20 = smov [#allocation5]  }
  0x81   : > { %p2970_p6 = scmp.ne.s32.totalorder %s3302_s0, %s2969_s2  ;;  %s2974_s7 = sshll.u32 %s3071_s20, 4  ;;  %s2975_s7 = int_to_ptr.vmem [resolvable:$false] %s2974_s7 }
  0x82   : > { %s2976_s30 = scalar_lea.vmem %s2975_s7, 8192  ;;  %p2977_p7 = scmp.lt.s32.totalorder %s3302_s0, %s2975_s7 }
  0x83   : > { %p2972_p10 = pnand %p2970_p6, %p2926_p0  ;;  %p2978_p3 = scmp.lt.s32.totalorder %s2976_s30, %s2969_s2 }
  0x85   : > { %p2973_p4 = pneg %p2972_p10  ;;  %p2979_p5 = por %p2978_p3, %p2977_p7 }
  0x87   : > { %p2980_p9 = pnand %p2979_p5, %p2973_p4 }
  0x89   : > { %2983 = shalt.err (!%p2980_p9)
}
  0x8a   : > { %s4545_s13 = smov 8   ;;  %s4546_s10 = smov 128  }
  0x8b   : > { %2632 = dma.hbm_to_vmem [thread:$0]  (!%p3257_p11), %s3298_s15, 4096, %s3302_s0, %s3306_s4, %s4546_s10, %s4546_s10, %s4545_s13  }
  0x8c   : > { %283 = sbr.rel (%p3151_p8) target bundleno = 772 (0x304), region = 44 }
  0x93   : > { %s3338_s19 = sand.u32 1, %s3054_s22   ;;  %p4547_p0 = scmp.ne.s32.totalorder %s4531_s27, 0 }
  0x94   : > { %s2493_s18 = sshll.u32 %s3338_s19, 9  ;;  %s286_s17 = scalar_lea.sflag [#allocation3], %s3338_s19 }
  0x95   : > { %s3344_s12 = scalar_lea.vmem [#allocation2], %s2493_s18 }
  0x96   : > { %3029 = dma.done.wait (%p4547_p0), %s286_s17, 8192  }
  0x97   : > { %3031 = vsyncadd (%p4547_p0), %s286_s17, 4294959104  ;;  %s294_s0 = sand.u32 1, %s3132_s25   ;;  %s2494_s4 = sshll.u32 %s3338_s19, 8 }
  0x98   : > { %s295_s29 = scalar_lea.sflag [#allocation6], %s294_s0  ;;  %s3352_s15 = scalar_lea.vmem [#allocation5], %s2494_s4 }
  0x99   : > { %3033 = dma.done.wait (%p4547_p0), %s295_s29, 4096  }
  0x9a   : > { %3035 = vsyncadd (%p4547_p0), %s295_s29, 4294963200  ;;  %p4548_p8 = scmp.eq.s32.totalorder %s3132_s25, 0 }
  0x9c   : > { %3037 = dma.done.wait (%p4548_p8), [#allocation6], 2048   ;;  %p4549_p11 = pmov %p4548_p8 }
  0x9d   : > { %p4550_p2 = pmov %p4548_p8 }
  0x9e   : > { %3039 = vsyncadd (%p4549_p11), [#allocation6], 4294965248 }
  0x9f   : > { %3041 = dma.done.wait (%p4550_p2), [#allocation9], 8192   ;;  %p4551_p12 = pmov %p4550_p2 }
  0xa0   : > { %v4463_v0 = vmov 0   ;;  %v2684_v1 = vld [vmem:[#allocation7 + $0x4] ss:$8 sps:$4 sm:$0xff]   ;;  %v2686_v2 = vld [vmem:[#allocation7] ss:$8 sps:$4 sm:$0xff]   ;;  %v3383_v15 = vld [vmem:[%s3344_s12 + $0x10] sm:$0xff] }
  0xa1   : > { %3043 = vsyncadd (%p4551_p12), [#allocation9], 4294959104  ;;  %1109 = vmatprep.mubr.bf16.mxu0 %v4463_v0  ;;  %1189 = vmatprep.mubr.bf16.mxu1 %v4463_v0  ;;  %v2687_v3 = vld [vmem:[#allocation7 + $0x14] ss:$8 sps:$4 sm:$0xff]   ;;  %v2689_v4 = vld [vmem:[#allocation7 + $0x10] ss:$8 sps:$4 sm:$0xff]  }
  0xa2   : > { %1077 = vmatprep.subr.bf16.mxu0 %v2684_v1  ;;  %2589 = vmatprep.subr.bf16.mxu1 %v2684_v1  ;;  %v2690_v5 = vld [vmem:[#allocation7 + $0x24] ss:$8 sps:$4 sm:$0xff]   ;;  %v2692_v6 = vld [vmem:[#allocation7 + $0x20] ss:$8 sps:$4 sm:$0xff]   ;;  %v2693_v7 = vld [vmem:[#allocation7 + $0x34] ss:$8 sps:$4 sm:$0xff]  }
  0xa3   : > { %1078 = vmatpush1.bf16.msra.mxu0 %v2686_v2  ;;  %2597 = vmatpush1.bf16.msra.mxu1 %v2686_v2  ;;  %v2695_v8 = vld [vmem:[#allocation7 + $0x30] ss:$8 sps:$4 sm:$0xff]   ;;  %v2696_v9 = vld [vmem:[#allocation7 + $0x44] ss:$8 sps:$4 sm:$0xff]   ;;  %v2698_v16 = vld [vmem:[#allocation7 + $0x40] ss:$8 sps:$4 sm:$0xff]  }
  0xa4   : > { %1079 = vmatprep.subr.bf16.mxu0 %v2687_v3  ;;  %2590 = vmatprep.subr.bf16.mxu1 %v2687_v3  ;;  %v3369_v10 = vld [vmem:[%s3344_s12] sm:$0xff]  ;;  %v3372_v11 = vld [vmem:[%s3344_s12 + $0x8] sm:$0xff]  ;;  %v3388_v18 = vld [vmem:[%s3344_s12 + $0x18] sm:$0xff]  ;;  %s4152_s16 = scalar_lea.vmem [#allocation10], %s2493_s18  ;;  %s2588_s2 = sshll.u32 %s3132_s25, 13 }
  0xa5   : > { %v408_v12 = vadd.f32 %v3372_v11, %v3369_v10  ;;  %v3377_v13 = vld [vmem:[%s3344_s12 + $0x20] sm:$0xff]  ;;  %v3380_v14 = vld [vmem:[%s3344_s12 + $0x28] sm:$0xff]  ;;  %v2699_v19 = vld [vmem:[#allocation7 + $0x54] ss:$8 sps:$4 sm:$0xff]   ;;  %v411_v20 = vadd.f32 %v3388_v18, %v3383_v15  ;;  %s2365_s20 = sshll.u32 %s4152_s16, 4  ;;  %s4400_s13 = scalar_lea.hbm %s4455_s6, %s2588_s2  ;;  %s4402_s20 = int_to_ptr.vmem [resolvable:$true] %s2365_s20 }
  0xa6   : > { %v414_v17 = vadd.f32 %v3380_v14, %v3377_v13  ;;  %v3393_v21 = vld [vmem:[%s3344_s12 + $0x30] sm:$0xff]  ;;  %v3396_v22 = vld [vmem:[%s3344_s12 + $0x38] sm:$0xff]  ;;  %v3401_v24 = vld [vmem:[%s3344_s12 + $0x40] sm:$0xff]  ;;  %s2351_s25 = scalar_lea.sflag [#allocation4], %s3338_s19  ;;  %s2984_s10 = scalar_lea.vmem %s4402_s20, 8192 }
  0xa7   : > { %1080 = vmatpush1.bf16.msra.mxu0 %v2689_v4  ;;  %2598 = vmatpush1.bf16.msra.mxu1 %v2689_v4  ;;  %v417_v23 = vadd.f32 %v3396_v22, %v3393_v21  ;;  %v3404_v25 = vld [vmem:[%s3344_s12 + $0x48] sm:$0xff]  ;;  %v3407_v26 = vld [vmem:[%s3344_s12 + $0x50] sm:$0xff]  ;;  %v3410_v27 = vld [vmem:[%s3344_s12 + $0x58] sm:$0xff]  ;;  %p2985_p1 = scmp.ne.s32.totalorder %s4402_s20, %s2984_s10  ;;  %p4677_p13 = scmp.ne.s32.totalorder %s4539_s8, 0 }
  0xa8   : > { %1081 = vmatprep.subr.bf16.mxu0 %v2690_v5  ;;  %2591 = vmatprep.subr.bf16.mxu1 %v2690_v5  ;;  %v2701_v28 = vld [vmem:[#allocation7 + $0x50] ss:$8 sps:$4 sm:$0xff]   ;;  %v2702_v29 = vld [vmem:[#allocation7 + $0x64] ss:$8 sps:$4 sm:$0xff]   ;;  %v420_v30 = vadd.f32 %v3404_v25, %v3401_v24  ;;  %v423_v31 = vadd.f32 %v3410_v27, %v3407_v26  ;;  %v2704_v36 = vld [vmem:[#allocation7 + $0x60] ss:$8 sps:$4 sm:$0xff]  }
  0xa9   : > { %409 = vadd.xlane.f32.xlu0 %v408_v12  ;;  %415 = vadd.xlane.f32.xlu1 %v414_v17  ;;  %v3417_v32 = vld [vmem:[%s3344_s12 + $0x60] sm:$0xff]  ;;  %v3420_v33 = vld [vmem:[%s3344_s12 + $0x68] sm:$0xff]  ;;  %v3423_v34 = vld [vmem:[%s3344_s12 + $0x70] sm:$0xff]  ;;  %p2986_p6 = pnand %p2985_p1, %p4677_p13  ;;  %s3073_s18 = smov [#allocation10]  }
  0xaa   : > { %v3426_v35 = vld [vmem:[%s3344_s12 + $0x78] sm:$0xff]  ;;  %v426_v38 = vadd.f32 %v3420_v33, %v3417_v32  ;;  %v3433_v41 = vld [vmem:[%s3344_s12 + $0x80] sm:$0xff]  ;;  %v3436_v42 = vld [vmem:[%s3344_s12 + $0x88] sm:$0xff]  ;;  %s2988_s17 = sshll.u32 %s3073_s18, 4  ;;  %s2989_s17 = int_to_ptr.vmem [resolvable:$false] %s2988_s17 }
  0xab   : > { %1082 = vmatpush1.bf16.msra.mxu0 %v2692_v6  ;;  %2599 = vmatpush1.bf16.msra.mxu1 %v2692_v6  ;;  %v2705_v37 = vld [vmem:[#allocation7 + $0x74] ss:$8 sps:$4 sm:$0xff]   ;;  %v2707_v39 = vld [vmem:[#allocation7 + $0x70] ss:$8 sps:$4 sm:$0xff]   ;;  %v429_v40 = vadd.f32 %v3426_v35, %v3423_v34  ;;  %v921_v43 = vld [vmem:[%s3352_s15] sm:$0xff]  ;;  %v432_v49 = vadd.f32 %v3436_v42, %v3433_v41  ;;  %p2987_p10 = pneg %p2986_p6  ;;  %p2991_p4 = scmp.lt.s32.totalorder %s4402_s20, %s2989_s17 }
  0xac   : > { %1083 = vmatprep.subr.bf16.mxu0 %v2693_v7  ;;  %2592 = vmatprep.subr.bf16.mxu1 %v2693_v7  ;;  %v3440_v44 = vld [vmem:[%s3344_s12 + $0x90] sm:$0xff]  ;;  %v3443_v45 = vld [vmem:[%s3344_s12 + $0x98] sm:$0xff]  ;;  %v922_v46 = vld [vmem:[%s3352_s15 + $0x8] sm:$0xff] }
  0xad   : > { %412 = vadd.xlane.f32.xlu0 %v411_v20  ;;  %418 = vadd.xlane.f32.xlu1 %v417_v23  ;;  %v937_v47 = vld [vmem:[%s3352_s15 + $0x80] sm:$0xff]  ;;  %v938_v48 = vld [vmem:[%s3352_s15 + $0x88] sm:$0xff]  ;;  %v435_v50 = vadd.f32 %v3443_v45, %v3440_v44  ;;  %v953_v53 = vpack.c.bf16 %v922_v46, %v921_v43  ;;  %v3459_v54 = vld [vmem:[%s3344_s12 + $0xb0] sm:$0xff] }
  0xae   : > { %v3453_v51 = vld [vmem:[%s3344_s12 + $0xa0] sm:$0xff]  ;;  %v3456_v52 = vld [vmem:[%s3344_s12 + $0xa8] sm:$0xff]  ;;  %v3462_v55 = vld [vmem:[%s3344_s12 + $0xb8] sm:$0xff]  ;;  %v961_v56 = vpack.c.bf16 %v938_v48, %v937_v47 }
  0xaf   : > { %1084 = vmatpush1.bf16.msra.mxu0 %v2695_v8  ;;  %2600 = vmatpush1.bf16.msra.mxu1 %v2695_v8  ;;  %v438_v57 = vadd.f32 %v3456_v52, %v3453_v51  ;;  %v441_v58 = vadd.f32 %v3462_v55, %v3459_v54  ;;  %v3469_v59 = vld [vmem:[%s3344_s12 + $0xc0] sm:$0xff]  ;;  %v3472_v60 = vld [vmem:[%s3344_s12 + $0xc8] sm:$0xff]  ;;  %v923_v61 = vld [vmem:[%s3352_s15 + $0x10] sm:$0xff] }
  0xb0   : > { %1085 = vmatprep.subr.bf16.mxu0 %v2696_v9  ;;  %2593 = vmatprep.subr.bf16.mxu1 %v2696_v9  ;;  %v3476_v62 = vld [vmem:[%s3344_s12 + $0xd0] sm:$0xff]  ;;  %v3479_v63 = vld [vmem:[%s3344_s12 + $0xd8] sm:$0xff]  ;;  %v444_v4 = vadd.f32 %v3472_v60, %v3469_v59  ;;  %v3491_v6 = vld [vmem:[%s3344_s12 + $0xe0] sm:$0xff] }
  0xb1   : > { %421 = vadd.xlane.f32.xlu0 %v420_v30  ;;  %424 = vadd.xlane.f32.xlu1 %v423_v31  ;;  %v924_v1 = vld [vmem:[%s3352_s15 + $0x18] sm:$0xff]  ;;  %v939_v2 = vld [vmem:[%s3352_s15 + $0x90] sm:$0xff]  ;;  %v447_v5 = vadd.f32 %v3479_v63, %v3476_v62  ;;  %v3494_v7 = vld [vmem:[%s3344_s12 + $0xe8] sm:$0xff] }
  0xb2   : > { %v940_v3 = vld [vmem:[%s3352_s15 + $0x98] sm:$0xff]  ;;  %v954_v8 = vpack.c.bf16 %v924_v1, %v923_v61  ;;  %v3497_v9 = vld [vmem:[%s3344_s12 + $0xf0] sm:$0xff]  ;;  %v450_v17 = vadd.f32 %v3494_v7, %v3491_v6  ;;  %v925_v20 = vld [vmem:[%s3352_s15 + $0x20] sm:$0xff] }
  0xb3   : > { %1086 = vmatpush1.bf16.msra.mxu0 %v2698_v16  ;;  %2601 = vmatpush1.bf16.msra.mxu1 %v2698_v16  ;;  %v3500_v12 = vld [vmem:[%s3344_s12 + $0xf8] sm:$0xff]  ;;  %v962_v16 = vpack.c.bf16 %v940_v3, %v939_v2  ;;  %v926_v23 = vld [vmem:[%s3352_s15 + $0x28] sm:$0xff]  ;;  %v3515_v30 = vld [vmem:[%s3344_s12 + $0x100] sm:$0xff] }
  0xb4   : > { %1087 = vmatprep.subr.bf16.mxu0 %v2699_v19  ;;  %2594 = vmatprep.subr.bf16.mxu1 %v2699_v19  ;;  %v3505_v19 = vld [vmem:[%s3344_s12 + $0x110] sm:$0xff]  ;;  %v3518_v31 = vld [vmem:[%s3344_s12 + $0x108] sm:$0xff]  ;;  %v3541_v61 = vld [vmem:[%s3344_s12 + $0x140] sm:$0xff] }
  0xb5   : > { %427 = vadd.xlane.f32.xlu0 %v426_v38  ;;  %430 = vadd.xlane.f32.xlu1 %v429_v40  ;;  %v3524_v38 = vld [vmem:[%s3344_s12 + $0x120] sm:$0xff]  ;;  %v456_v46 = vadd.f32 %v3518_v31, %v3515_v30  ;;  %v3533_v47 = vld [vmem:[%s3344_s12 + $0x130] sm:$0xff]  ;;  %v2711_v48 = vld [vmem:[#allocation8 + $0x8] ss:$16 sps:$4 sm:$0xff]   ;;  %4553 = vst [vmem:[#allocation18_spill] sm:$0xff] %v3541_v61 }
  0xb6   : > { %v2708_v40 = vld [vmem:[#allocation8] ss:$16 sps:$4 sm:$0xff]   ;;  %v2710_v43 = vld [vmem:[#allocation8 + $0x4] ss:$16 sps:$4 sm:$0xff]   ;;  %v3544_v1 = vld [vmem:[%s3344_s12 + $0x148] sm:$0xff] }
  0xb7   : > { %1088 = vmatpush1.bf16.msra.mxu0 %v2701_v28  ;;  %2602 = vmatpush1.bf16.msra.mxu1 %v2701_v28  ;;  %v453_v28 = vadd.f32 %v3500_v12, %v3497_v9  ;;  %4554 = vst [vmem:[#allocation19_spill] sm:$0xff] %v3544_v1  ;;  %v3549_v3 = vld [vmem:[%s3344_s12 + $0x150] sm:$0xff] }
  0xb8   : > { %1089 = vmatprep.subr.bf16.mxu0 %v2702_v29  ;;  %2595 = vmatprep.subr.bf16.mxu1 %v2702_v29  ;;  %v3512_v29 = vld [vmem:[%s3344_s12 + $0x118] sm:$0xff]  ;;  %4555 = vst [vmem:[#allocation20_spill] sm:$0xff] %v3549_v3 }
  0xb9   : > { %433 = vadd.xlane.f32.xlu0 %v432_v49  ;;  %436 = vadd.xlane.f32.xlu1 %v435_v50  ;;  %v459_v49 = vadd.f32 %v3512_v29, %v3505_v19  ;;  %v2713_v50 = vld [vmem:[#allocation8 + $0xc] ss:$16 sps:$4 sm:$0xff]  }
  0xbb   : > { %1090 = vmatpush1.bf16.msra.mxu0 %v2704_v36  ;;  %2603 = vmatpush1.bf16.msra.mxu1 %v2704_v36  ;;  %v941_v36 = vld [vmem:[%s3352_s15 + $0xa0] sm:$0xff] }
  0xbc   : > { %1091 = vmatprep.subr.bf16.mxu0 %v2705_v37  ;;  %2596 = vmatprep.subr.bf16.mxu1 %v2705_v37  ;;  %v942_v37 = vld [vmem:[%s3352_s15 + $0xa8] sm:$0xff] }
  0xbd   : > { %439 = vadd.xlane.f32.xlu0 %v438_v57  ;;  %442 = vadd.xlane.f32.xlu1 %v441_v58  ;;  %v963_v57 = vpack.c.bf16 %v942_v37, %v941_v36  ;;  %v2716_v58 = vld [vmem:[#allocation8 + $0x24] ss:$16 sps:$4 sm:$0xff]  }
  0xbe   : > { %v2722_v36 = vld [vmem:[#allocation8 + $0x44] ss:$16 sps:$4 sm:$0xff]  }
  0xbf   : > { %1092 = vmatpush1.bf16.msra.mxu0 %v2707_v39  ;;  %2604 = vmatpush1.bf16.msra.mxu1 %v2707_v39  ;;  %v3527_v39 = vld [vmem:[%s3344_s12 + $0x128] sm:$0xff]  ;;  %v3561_v37 = vld [vmem:[%s3344_s12 + $0x160] sm:$0xff] }
  0xc0   : > { %1772 = vmatprep.subr.bf16.mxu1 %v2710_v43  ;;  %1965 = vmatprep.subr.bf16.mxu0 %v2713_v50  ;;  %v462_v2 = vadd.f32 %v3527_v39, %v3524_v38  ;;  %4557 = vst [vmem:[#allocation22_spill] sm:$0xff] %v3561_v37  ;;  %v944_v43 = vld [vmem:[%s3352_s15 + $0xb8] sm:$0xff] }
  0xc1   : > { %445 = vadd.xlane.f32.xlu0 %v444_v4  ;;  %448 = vadd.xlane.f32.xlu1 %v447_v5  ;;  %v3552_v4 = vld [vmem:[%s3344_s12 + $0x158] sm:$0xff]  ;;  %v2714_v5 = vld [vmem:[#allocation8 + $0x20] ss:$16 sps:$4 sm:$0xff]  }
  0xc2   : > { %1110 = vmatmul.mubr.bf16.vlgmr.msra.gmra.mrb[0].mxu0 %v953_v53  ;;  %1190 = vmatmul.mubr.bf16.vlgmr.msra.gmra.mrb[0].mxu1 %v961_v56  ;;  %v955_v53 = vpack.c.bf16 %v926_v23, %v925_v20  ;;  %v3538_v56 = vld [vmem:[%s3344_s12 + $0x138] sm:$0xff]  ;;  %4556 = vst [vmem:[#allocation21_spill] sm:$0xff] %v3552_v4  ;;  %v943_v20 = vld [vmem:[%s3352_s15 + $0xb0] sm:$0xff]  ;;  %v471_v50 = vadd.f32 %v3552_v4, %v3549_v3  ;;  %v946_v4 = vld [vmem:[%s3352_s15 + $0xc8] sm:$0xff] }
  0xc3   : > { %1119 = vmatprep.mubr.bf16.mxu0 %v4463_v0  ;;  %1199 = vmatprep.mubr.bf16.mxu1 %v4463_v0  ;;  %4552 = vst [vmem:[#allocation17_spill] sm:$0xff] %v3538_v56  ;;  %v2719_v23 = vld [vmem:[#allocation8 + $0x2c] ss:$16 sps:$4 sm:$0xff]   ;;  %v3611_v3 = vld [vmem:[%s3344_s12 + $0x1b0] sm:$0xff] }
  0xc4   : > { %1773 = vmatpush1.bf16.msra.mxu1 %v2708_v40  ;;  %1966 = vmatpush1.bf16.msra.mxu0 %v2711_v48  ;;  %v3564_v40 = vld [vmem:[%s3344_s12 + $0x168] sm:$0xff]  ;;  %v468_v48 = vadd.f32 %v3544_v1, %v3541_v61  ;;  %4568 = vst [vmem:[#allocation32_spill] sm:$0xff] %v3611_v3  ;;  %v3614_v61 = vld [vmem:[%s3344_s12 + $0x1b8] sm:$0xff] }
  0xc5   : > { %451 = vadd.xlane.f32.xlu0 %v450_v17  ;;  %454 = vadd.xlane.f32.xlu1 %v453_v28  ;;  %v465_v17 = vadd.f32 %v3538_v56, %v3533_v47  ;;  %v2717_v28 = vld [vmem:[#allocation8 + $0x28] ss:$16 sps:$4 sm:$0xff]   ;;  %4558 = vst [vmem:[#allocation23_spill] sm:$0xff] %v3564_v40  ;;  %4569 = vst [vmem:[#allocation33_spill] sm:$0xff] %v3614_v61 }
  0xc6   : > { %1774 = vmatprep.subr.bf16.mxu1 %v2716_v58  ;;  %1967 = vmatprep.subr.bf16.mxu0 %v2719_v23  ;;  %v3573_v58 = vld [vmem:[%s3344_s12 + $0x170] sm:$0xff]  ;;  %v3582_v1 = vld [vmem:[%s3344_s12 + $0x188] sm:$0xff]  ;;  %v3652_v56 = vld [vmem:[%s3344_s12 + $0x1f8] sm:$0xff] }
  0xc7   : > { %4559 = vst [vmem:[#allocation24_spill] sm:$0xff] %v3573_v58  ;;  %4562 = vst [vmem:[#allocation27_spill] sm:$0xff] %v3582_v1  ;;  %v3587_v23 = vld [vmem:[%s3344_s12 + $0x190] sm:$0xff] }
  0xc8   : > { %1775 = vmatpush1.bf16.msra.mxu1 %v2714_v5  ;;  %1968 = vmatpush1.bf16.msra.mxu0 %v2717_v28  ;;  %v3579_v5 = vld [vmem:[%s3344_s12 + $0x180] sm:$0xff]  ;;  %4563 = vst [vmem:[#allocation28_spill] sm:$0xff] %v3587_v23  ;;  %v930_v28 = vld [vmem:[%s3352_s15 + $0x48] sm:$0xff]  ;;  %4572 = vst [vmem:[#allocation36_spill] sm:$0xff] %v3652_v56 }
  0xc9   : > { %457 = vadd.xlane.f32.xlu0 %v456_v46  ;;  %460 = vadd.xlane.f32.xlu1 %v459_v49  ;;  %v2725_v46 = vld [vmem:[#allocation8 + $0x4c] ss:$16 sps:$4 sm:$0xff]   ;;  %v2720_v49 = vld [vmem:[#allocation8 + $0x40] ss:$16 sps:$4 sm:$0xff]   ;;  %4561 = vst [vmem:[#allocation26_spill] sm:$0xff] %v3579_v5 }
  0xca   : > { %1120 = vmatmul.mubr.bf16.gmra.mrb[4].mxu0 %v954_v8  ;;  %1200 = vmatmul.mubr.bf16.gmra.mrb[4].mxu1 %v962_v16  ;;  %v927_v8 = vld [vmem:[%s3352_s15 + $0x30] sm:$0xff]  ;;  %v928_v16 = vld [vmem:[%s3352_s15 + $0x38] sm:$0xff] }
  0xcb   : > { %1129 = vmatprep.mubr.bf16.mxu0 %v4463_v0  ;;  %1209 = vmatprep.mubr.bf16.mxu1 %v4463_v0 }
  0xcc   : > { %1776 = vmatprep.subr.bf16.mxu1 %v2722_v36  ;;  %1969 = vmatprep.subr.bf16.mxu0 %v2725_v46  ;;  %v2731_v46 = vld [vmem:[#allocation8 + $0x6c] ss:$16 sps:$4 sm:$0xff]  }
  0xcd   : > { %463 = vadd.xlane.f32.xlu0 %v462_v2  ;;  %466 = vadd.xlane.f32.xlu1 %v465_v17  ;;  %v964_v2 = vpack.c.bf16 %v944_v43, %v943_v20  ;;  %v474_v17 = vadd.f32 %v3564_v40, %v3561_v37  ;;  %v929_v20 = vld [vmem:[%s3352_s15 + $0x40] sm:$0xff]  ;;  %v4565_v40 = vmov 0   ;;  %v3601_v37 = vld [vmem:[%s3344_s12 + $0x1a8] sm:$0xff] }
  0xce   : > { %1777 = vmatpush1.bf16.msra.mxu1 %v2720_v49  ;;  %v2726_v43 = vld [vmem:[#allocation8 + $0x60] ss:$16 sps:$4 sm:$0xff]   ;;  %4567 = vst [vmem:[#allocation31_spill] sm:$0xff] %v3601_v37 }
  0xcf   : > { %v3598_v49 = vld [vmem:[%s3344_s12 + $0x1a0] sm:$0xff] }
  0xd0   : > { %4566 = vst [vmem:[#allocation30_spill] sm:$0xff] %v3598_v49 }
  0xd1   : > { %469 = vadd.xlane.f32.xlu0 %v468_v48  ;;  %472 = vadd.xlane.f32.xlu1 %v471_v50  ;;  %v2734_v48 = vld [vmem:[#allocation8 + $0x84] ss:$16 sps:$4 sm:$0xff]  }
  0xd2   : > { %1130 = vmatmul.mubr.bf16.gmra.mrb[8].mxu0 %v955_v53  ;;  %1210 = vmatmul.mubr.bf16.gmra.mrb[8].mxu1 %v963_v57  ;;  %v2728_v53 = vld [vmem:[#allocation8 + $0x64] ss:$16 sps:$4 sm:$0xff]   ;;  %v956_v57 = vpack.c.bf16 %v928_v16, %v927_v8  ;;  %v3590_v8 = vld [vmem:[%s3344_s12 + $0x198] sm:$0xff] }
  0xd3   : > { %1139 = vmatprep.mubr.bf16.mxu0 %v4463_v0  ;;  %1219 = vmatprep.mubr.bf16.mxu1 %v4463_v0  ;;  %v3576_v0 = vld [vmem:[%s3344_s12 + $0x178] sm:$0xff]  ;;  %4564 = vst [vmem:[#allocation29_spill] sm:$0xff] %v3590_v8  ;;  %v945_v50 = vld [vmem:[%s3352_s15 + $0xc0] sm:$0xff] }
  0xd4   : > { %4560 = vst [vmem:[#allocation25_spill] sm:$0xff] %v3576_v0  ;;  %v2723_v16 = vld [vmem:[#allocation8 + $0x48] ss:$16 sps:$4 sm:$0xff]   ;;  %v477_v36 = vadd.f32 %v3576_v0, %v3573_v58  ;;  %1778 = vmatprep.subr.bf16.mxu1 %v2728_v53  ;;  %v480_v53 = vadd.f32 %v3582_v1, %v3579_v5  ;;  %v2732_v0 = vld [vmem:[#allocation8 + $0x80] ss:$16 sps:$4 sm:$0xff]   ;;  %v957_v58 = vpack.c.bf16 %v930_v28, %v929_v20 }
  0xd5   : > { %475 = vadd.xlane.f32.xlu0 %v474_v17  ;;  %1970 = vmatpush1.bf16.msra.mxu0 %v2723_v16  ;;  %v965_v17 = vpack.c.bf16 %v946_v4, %v945_v50  ;;  %v3617_v16 = vld [vmem:[%s3344_s12 + $0x1c0] sm:$0xff]  ;;  %v3620_v1 = vld [vmem:[%s3344_s12 + $0x1c8] sm:$0xff]  ;;  %v3628_v20 = vld [vmem:[%s3344_s12 + $0x1d8] sm:$0xff] }
  0xd6   : > { %478 = vadd.xlane.f32.xlu1 %v477_v36  ;;  %1779 = vmatpush1.bf16.msra.mxu1 %v2726_v43  ;;  %v486_v36 = vadd.f32 %v3601_v37, %v3598_v49  ;;  %v3625_v43 = vld [vmem:[%s3344_s12 + $0x1d0] sm:$0xff]  ;;  %4571 = vst [vmem:[#allocation35_spill] sm:$0xff] %v3628_v20  ;;  %v2737_v28 = vld [vmem:[#allocation8 + $0x8c] ss:$16 sps:$4 sm:$0xff]  }
  0xd7   : > { %1971 = vmatprep.subr.bf16.mxu0 %v2731_v46  ;;  %1780 = vmatprep.subr.bf16.mxu1 %v2734_v48  ;;  %4570 = vst [vmem:[#allocation34_spill] sm:$0xff] %v3625_v43  ;;  %v931_v4 = vld [vmem:[%s3352_s15 + $0x50] sm:$0xff]  ;;  %v932_v46 = vld [vmem:[%s3352_s15 + $0x58] sm:$0xff]  ;;  %v489_v48 = vadd.f32 %v3614_v61, %v3611_v3 }
  0xd8   : > { %v947_v50 = vld [vmem:[%s3352_s15 + $0xd0] sm:$0xff]  ;;  %v2743_v49 = vld [vmem:[#allocation8 + $0xac] ss:$16 sps:$4 sm:$0xff]   ;;  %v2741_v61 = vld [vmem:[#allocation8 + $0xa8] ss:$16 sps:$4 sm:$0xff]   ;;  %v958_v3 = vpack.c.bf16 %v932_v46, %v931_v4 }
  0xd9   : > { %481 = vadd.xlane.f32.xlu0 %v480_v53  ;;  %v2735_v53 = vld [vmem:[#allocation8 + $0x88] ss:$16 sps:$4 sm:$0xff]   ;;  %v2740_v37 = vld [vmem:[#allocation8 + $0xa4] ss:$16 sps:$4 sm:$0xff]  }
  0xda   : > { %1140 = vmatmul.mubr.bf16.gmra.mrb[12].mxu0 %v956_v57  ;;  %1220 = vmatmul.mubr.bf16.gmra.mrb[12].mxu1 %v964_v2  ;;  %v2729_v57 = vld [vmem:[#allocation8 + $0x68] ss:$16 sps:$4 sm:$0xff]   ;;  %v483_v2 = vadd.f32 %v3590_v8, %v3587_v23  ;;  %v2738_v23 = vld [vmem:[#allocation8 + $0xa0] ss:$16 sps:$4 sm:$0xff]  }
  0xdb   : > { %1149 = vmatprep.mubr.bf16.mxu0 %v4565_v40  ;;  %1229 = vmatprep.mubr.bf16.mxu1 %v4565_v40  ;;  %v3640_v8 = vld [vmem:[%s3344_s12 + $0x1e8] sm:$0xff]  ;;  %v3649_v5 = vld [vmem:[%s3344_s12 + $0x1f0] sm:$0xff]  ;;  %v949_v46 = vld [vmem:[%s3352_s15 + $0xe0] sm:$0xff] }
  0xdc   : > { %1972 = vmatpush1.bf16.msra.mxu0 %v2729_v57  ;;  %484 = vadd.xlane.f32.xlu1 %v483_v2  ;;  %v3637_v57 = vld [vmem:[%s3344_s12 + $0x1e0] sm:$0xff]  ;;  %v948_v2 = vld [vmem:[%s3352_s15 + $0xd8] sm:$0xff]  ;;  %v501_v4 = vadd.f32 %v3652_v56, %v3649_v5  ;;  %s2990_s12 = scalar_lea.vmem %s2989_s17, 16384 }
  0xdd   : > { %1781 = vmatpush1.bf16.msra.mxu1 %v2732_v0  ;;  %487 = vadd.xlane.f32.xlu0 %v486_v36  ;;  %v492_v0 = vadd.f32 %v3620_v1, %v3617_v16  ;;  %v966_v36 = vpack.c.bf16 %v948_v2, %v947_v50  ;;  %v2755_v50 = vld [vmem:[#allocation8 + $0xec] ss:$16 sps:$4 sm:$0xff]   ;;  %v2750_v2 = vld [vmem:[#allocation8 + $0xe0] ss:$16 sps:$4 sm:$0xff]   ;;  %v2764_v56 = vld [vmem:[#allocation8 + $0x124] ss:$16 sps:$4 sm:$0xff]   ;;  %p2992_p7 = scmp.lt.s32.totalorder %s2990_s12, %s2984_s10 }
  0xde   : > { %1973 = vmatprep.subr.bf16.mxu0 %v2737_v28  ;;  %1782 = vmatprep.subr.bf16.mxu1 %v2740_v37  ;;  %v498_v28 = vadd.f32 %v3640_v8, %v3637_v57  ;;  %v2747_v37 = vld [vmem:[#allocation8 + $0xc8] ss:$16 sps:$4 sm:$0xff]  }
  0xdf   : > { %p2993_p3 = por %p2992_p7, %p2991_p4 }
  0xe0   : > { %490 = vadd.xlane.f32.xlu1 %v489_v48  ;;  %1974 = vmatpush1.bf16.msra.mxu0 %v2735_v53  ;;  %v2744_v48 = vld [vmem:[#allocation8 + $0xc0] ss:$16 sps:$4 sm:$0xff]   ;;  %v934_v53 = vld [vmem:[%s3352_s15 + $0x68] sm:$0xff] }
  0xe1   : > { %1975 = vmatprep.subr.bf16.mxu0 %v2743_v49  ;;  %1783 = vmatpush1.bf16.msra.mxu1 %v2738_v23  ;;  %v2752_v23 = vld [vmem:[#allocation8 + $0xe4] ss:$16 sps:$4 sm:$0xff]   ;;  %v950_v49 = vld [vmem:[%s3352_s15 + $0xe8] sm:$0xff]  ;;  %p2994_p5 = pnand %p2993_p3, %p2987_p10 }
  0xe2   : > { %1150 = vmatmul.mubr.bf16.gmra.mrb[16].mxu0 %v957_v58  ;;  %1230 = vmatmul.mubr.bf16.gmra.mrb[16].mxu1 %v965_v17  ;;  %v2746_v58 = vld [vmem:[#allocation8 + $0xc4] ss:$16 sps:$4 sm:$0xff]   ;;  %v495_v17 = vadd.f32 %v3628_v20, %v3625_v43  ;;  %v2749_v43 = vld [vmem:[#allocation8 + $0xcc] ss:$16 sps:$4 sm:$0xff]  }
  0xe3   : > { %1159 = vmatprep.mubr.bf16.mxu0 %v4565_v40  ;;  %1239 = vmatprep.mubr.bf16.mxu1 %v4565_v40  ;;  %v933_v20 = vld [vmem:[%s3352_s15 + $0x60] sm:$0xff] }
  0xe4   : > { %493 = vadd.xlane.f32.xlu0 %v492_v0  ;;  %1784 = vmatprep.subr.bf16.mxu1 %v2746_v58  ;;  %v2758_v0 = vld [vmem:[#allocation8 + $0x104] ss:$16 sps:$4 sm:$0xff]   ;;  %v967_v58 = vpack.c.bf16 %v950_v49, %v949_v46  ;;  %v2767_v46 = vld [vmem:[#allocation8 + $0x12c] ss:$16 sps:$4 sm:$0xff]  }
  0xe5   : > { %496 = vadd.xlane.f32.xlu1 %v495_v17  ;;  %1976 = vmatpush1.bf16.msra.mxu0 %v2741_v61  ;;  %v959_v61 = vpack.c.bf16 %v934_v53, %v933_v20  ;;  %v2756_v17 = vld [vmem:[#allocation8 + $0x100] ss:$16 sps:$4 sm:$0xff]   ;;  %v2759_v53 = vld [vmem:[#allocation8 + $0x108] ss:$16 sps:$4 sm:$0xff]  }
  0xe6   : > { %1785 = vmatpush1.bf16.msra.mxu1 %v2744_v48  ;;  %1977 = vmatprep.subr.bf16.mxu0 %v2749_v43  ;;  %v936_v43 = vld [vmem:[%s3352_s15 + $0x78] sm:$0xff]  ;;  %v951_v20 = vld [vmem:[%s3352_s15 + $0xf0] sm:$0xff] }
  0xe7   : > { %1786 = vmatprep.subr.bf16.mxu1 %v2752_v23  ;;  %v952_v48 = vld [vmem:[%s3352_s15 + $0xf8] sm:$0xff] }
  0xe8   : > { %499 = vadd.xlane.f32.xlu0 %v498_v28  ;;  %v935_v28 = vld [vmem:[%s3352_s15 + $0x70] sm:$0xff]  ;;  %v968_v49 = vpack.c.bf16 %v952_v48, %v951_v20  ;;  %v2783_v20 = vld [vmem:[#allocation8 + $0x188] ss:$16 sps:$4 sm:$0xff]  }
  0xe9   : > { %502 = vadd.xlane.f32.xlu1 %v501_v4  ;;  %1978 = vmatpush1.bf16.msra.mxu0 %v2747_v37  ;;  %v2762_v4 = vld [vmem:[#allocation8 + $0x120] ss:$16 sps:$4 sm:$0xff]   ;;  %v2770_v37 = vld [vmem:[#allocation8 + $0x144] ss:$16 sps:$4 sm:$0xff]   ;;  %v960_v23 = vpack.c.bf16 %v936_v43, %v935_v28  ;;  %v2785_v28 = vld [vmem:[#allocation8 + $0x18c] ss:$16 sps:$4 sm:$0xff]  }
  0xea   : > { %1160 = vmatmul.mubr.bf16.gmra.mrb[20].mxu0 %v958_v3  ;;  %1240 = vmatmul.mubr.bf16.gmra.mrb[20].mxu1 %v966_v36  ;;  %v2753_v3 = vld [vmem:[#allocation8 + $0xe8] ss:$16 sps:$4 sm:$0xff]   ;;  %v2761_v36 = vld [vmem:[#allocation8 + $0x10c] ss:$16 sps:$4 sm:$0xff]   ;;  %v2788_v43 = vld [vmem:[#allocation8 + $0x1a4] ss:$16 sps:$4 sm:$0xff]  }
  0xeb   : > { %1169 = vmatprep.mubr.bf16.mxu0 %v4565_v40  ;;  %1249 = vmatprep.mubr.bf16.mxu1 %v4565_v40  ;;  %v2786_v48 = vld [vmem:[#allocation8 + $0x1a0] ss:$16 sps:$4 sm:$0xff]  }
  0xec   : > { %1979 = vmatprep.subr.bf16.mxu0 %v2755_v50  ;;  %1787 = vmatpush1.bf16.msra.mxu1 %v2750_v2  ;;  %v2765_v50 = vld [vmem:[#allocation8 + $0x128] ss:$16 sps:$4 sm:$0xff]   ;;  %v2768_v2 = vld [vmem:[#allocation8 + $0x140] ss:$16 sps:$4 sm:$0xff]  }
  0xed   : > { %1788 = vmatprep.subr.bf16.mxu1 %v2758_v0  ;;  %1980 = vmatpush1.bf16.msra.mxu0 %v2753_v3  ;;  %v2773_v0 = vld [vmem:[#allocation8 + $0x14c] ss:$16 sps:$4 sm:$0xff]   ;;  %v2782_v3 = vld [vmem:[#allocation8 + $0x184] ss:$16 sps:$4 sm:$0xff]  }
  0xee   : > { %1981 = vmatprep.subr.bf16.mxu0 %v2761_v36  ;;  %v2780_v36 = vld [vmem:[#allocation8 + $0x180] ss:$16 sps:$4 sm:$0xff]  }
  0xf0   : > { %1789 = vmatpush1.bf16.msra.mxu1 %v2756_v17  ;;  %v2777_v17 = vld [vmem:[#allocation8 + $0x168] ss:$16 sps:$4 sm:$0xff]  }
  0xf1   : > { %1790 = vmatprep.subr.bf16.mxu1 %v2764_v56  ;;  %1982 = vmatpush1.bf16.msra.mxu0 %v2759_v53  ;;  %v2779_v56 = vld [vmem:[#allocation8 + $0x16c] ss:$16 sps:$4 sm:$0xff]  }
  0xf2   : > { %1170 = vmatmul.mubr.bf16.gmra.mrb[24].mxu0 %v959_v61  ;;  %1250 = vmatmul.mubr.bf16.gmra.mrb[24].mxu1 %v967_v58  ;;  %v2771_v61 = vld [vmem:[#allocation8 + $0x148] ss:$16 sps:$4 sm:$0xff]   ;;  %v2774_v58 = vld [vmem:[#allocation8 + $0x160] ss:$16 sps:$4 sm:$0xff]   ;;  %v2791_v53 = vld [vmem:[#allocation8 + $0x1ac] ss:$16 sps:$4 sm:$0xff]  }
  0xf3   : > { %1179 = vmatprep.mubr.bf16.mxu0 %v4565_v40  ;;  %1259 = vmatprep.mubr.bf16.mxu1 %v4565_v40  ;;  %v2776_v40 = vld [vmem:[#allocation8 + $0x164] ss:$16 sps:$4 sm:$0xff]  }
  0xf4   : > { %1791 = vmatpush1.bf16.msra.mxu1 %v2762_v4  ;;  %1983 = vmatprep.subr.bf16.mxu0 %v2767_v46  ;;  %v2789_v4 = vld [vmem:[#allocation8 + $0x1a8] ss:$16 sps:$4 sm:$0xff]   ;;  %v2794_v46 = vld [vmem:[#allocation8 + $0x1c4] ss:$16 sps:$4 sm:$0xff]  }
  0xf5   : > { %1792 = vmatprep.subr.bf16.mxu1 %v2770_v37  ;;  %1984 = vmatpush1.bf16.msra.mxu0 %v2765_v50  ;;  %v2797_v37 = vld [vmem:[#allocation8 + $0x1cc] ss:$16 sps:$4 sm:$0xff]   ;;  %v2800_v50 = vld [vmem:[#allocation8 + $0x1e4] ss:$16 sps:$4 sm:$0xff]  }
  0xf6   : > { %1985 = vmatprep.subr.bf16.mxu0 %v2773_v0  ;;  %v2798_v0 = vld [vmem:[#allocation8 + $0x1e0] ss:$16 sps:$4 sm:$0xff]  }
  0xf8   : > { %1793 = vmatpush1.bf16.msra.mxu1 %v2768_v2  ;;  %v2803_v2 = vld [vmem:[#allocation8 + $0x1ec] ss:$16 sps:$4 sm:$0xff]  }
  0xf9   : > { %1794 = vmatprep.subr.bf16.mxu1 %v2776_v40  ;;  %1986 = vmatpush1.bf16.msra.mxu0 %v2771_v61  ;;  %v2801_v40 = vld [vmem:[#allocation8 + $0x1e8] ss:$16 sps:$4 sm:$0xff]  }
  0xfa   : > { %1180 = vmatmul.mubr.bf16.gmra.mrb[28].mxu0 %v960_v23  ;;  %1260 = vmatmul.mubr.bf16.gmra.mrb[28].mxu1 %v968_v49  ;;  %v2792_v23 = vld [vmem:[#allocation8 + $0x1c0] ss:$16 sps:$4 sm:$0xff]   ;;  %v2795_v49 = vld [vmem:[#allocation8 + $0x1c8] ss:$16 sps:$4 sm:$0xff]  }
  0xfb   : > { %1987 = vmatprep.subr.bf16.mxu0 %v2779_v56 }
  0xfc   : > { %1795 = vmatpush1.bf16.msra.mxu1 %v2774_v58 }
  0xfd   : > { %1796 = vmatprep.subr.bf16.mxu1 %v2782_v3  ;;  %1988 = vmatpush1.bf16.msra.mxu0 %v2777_v17 }
  0xfe   : > { %1989 = vmatprep.subr.bf16.mxu0 %v2785_v28 }
 0x100   : > { %1797 = vmatpush1.bf16.msra.mxu1 %v2780_v36 }
 0x101   : > { %1798 = vmatprep.subr.bf16.mxu1 %v2788_v43  ;;  %1990 = vmatpush1.bf16.msra.mxu0 %v2783_v20 }
 0x102   : > { %1991 = vmatprep.subr.bf16.mxu0 %v2791_v53 }
 0x104   : > { %1799 = vmatpush1.bf16.msra.mxu1 %v2786_v48 }
 0x105   : > { %1992 = vmatpush1.bf16.msra.mxu0 %v2789_v4  ;;  %1800 = vmatprep.subr.bf16.mxu1 %v2794_v46 }
 0x106   : > { %1993 = vmatprep.subr.bf16.mxu0 %v2797_v37 }
 0x108   : > { %1801 = vmatpush1.bf16.msra.mxu1 %v2792_v23 }
 0x109   : > { %1994 = vmatpush1.bf16.msra.mxu0 %v2795_v49  ;;  %1802 = vmatprep.subr.bf16.mxu1 %v2800_v50 }
 0x10a   : > { %1995 = vmatprep.subr.bf16.mxu0 %v2803_v2 }
 0x10c   : > { %1803 = vmatpush1.bf16.msra.mxu1 %v2798_v0 }
 0x10d   : > { %1996 = vmatpush1.bf16.msra.mxu0 %v2801_v40 }
 0x136   : > { %v410_v61 = vpop.xlane.xlu0 %409  ;;  %v416_v56 = vpop.xlane.xlu1 %415 }
 0x137   : > { %v505_v58 = vmul.f32 0.00390625, %v410_v61  ;;  %v507_v3 = vmul.f32 0.00390625, %v416_v56 }
 0x139   : > { %v3671_v17 = vsub.f32 %v3369_v10, %v505_v58  ;;  %v3674_v36 = vsub.f32 %v3372_v11, %v505_v58  ;;  %v3677_v28 = vsub.f32 %v3377_v13, %v507_v3  ;;  %v3680_v43 = vsub.f32 %v3380_v14, %v507_v3 }
 0x13a   : > { %v413_v20 = vpop.xlane.xlu0 %412  ;;  %v419_v53 = vpop.xlane.xlu1 %418 }
 0x13b   : > { %v506_v48 = vmul.f32 0.00390625, %v413_v20  ;;  %v601_v4 = vmul.f32 %v3671_v17, %v3671_v17  ;;  %v602_v46 = vmul.f32 %v3674_v36, %v3674_v36  ;;  %v508_v10 = vmul.f32 0.00390625, %v419_v53 }
 0x13c   : > { %v605_v11 = vmul.f32 %v3677_v28, %v3677_v28  ;;  %v606_v13 = vmul.f32 %v3680_v43, %v3680_v43 }
 0x13d   : > { %v3691_v37 = vsub.f32 %v3383_v15, %v506_v48  ;;  %v3694_v14 = vsub.f32 %v3388_v18, %v506_v48  ;;  %v665_v23 = vadd.f32 %v602_v46, %v601_v4  ;;  %v3697_v49 = vsub.f32 %v3393_v21, %v508_v10 }
 0x13e   : > { %v3700_v50 = vsub.f32 %v3396_v22, %v508_v10  ;;  %v422_v2 = vpop.xlane.xlu0 %421  ;;  %v425_v0 = vpop.xlane.xlu1 %424  ;;  %v671_v61 = vadd.f32 %v606_v13, %v605_v11 }
 0x13f   : > { %666 = vadd.xlane.f32.xlu0 %v665_v23  ;;  %v509_v40 = vmul.f32 0.00390625, %v422_v2  ;;  %v603_v58 = vmul.f32 %v3691_v37, %v3691_v37  ;;  %v604_v15 = vmul.f32 %v3694_v14, %v3694_v14  ;;  %v510_v18 = vmul.f32 0.00390625, %v425_v0 }
 0x140   : > { %v607_v56 = vmul.f32 %v3697_v49, %v3697_v49  ;;  %v608_v21 = vmul.f32 %v3700_v50, %v3700_v50 }
 0x141   : > { %v3711_v22 = vsub.f32 %v3401_v24, %v509_v40  ;;  %v3714_v3 = vsub.f32 %v3404_v25, %v509_v40  ;;  %v668_v20 = vadd.f32 %v604_v15, %v603_v58  ;;  %v3717_v48 = vsub.f32 %v3407_v26, %v510_v18 }
 0x142   : > { %v3720_v53 = vsub.f32 %v3410_v27, %v510_v18  ;;  %v428_v4 = vpop.xlane.xlu0 %427  ;;  %v431_v46 = vpop.xlane.xlu1 %430  ;;  %v674_v11 = vadd.f32 %v608_v21, %v607_v56 }
 0x143   : > { %672 = vadd.xlane.f32.xlu0 %v671_v61  ;;  %669 = vadd.xlane.f32.xlu1 %v668_v20  ;;  %v511_v10 = vmul.f32 0.00390625, %v428_v4  ;;  %v609_v24 = vmul.f32 %v3711_v22, %v3711_v22  ;;  %v610_v25 = vmul.f32 %v3714_v3, %v3714_v3  ;;  %v512_v13 = vmul.f32 0.00390625, %v431_v46 }
 0x144   : > { %v611_v26 = vmul.f32 %v3717_v48, %v3717_v48  ;;  %v612_v27 = vmul.f32 %v3720_v53, %v3720_v53 }
 0x145   : > { %v3731_v23 = vsub.f32 %v3417_v32, %v511_v10  ;;  %v3734_v2 = vsub.f32 %v3420_v33, %v511_v10  ;;  %v677_v0 = vadd.f32 %v610_v25, %v609_v24  ;;  %v3737_v40 = vsub.f32 %v3423_v34, %v512_v13 }
 0x146   : > { %v3740_v61 = vsub.f32 %v3426_v35, %v512_v13  ;;  %v434_v58 = vpop.xlane.xlu0 %433  ;;  %v437_v15 = vpop.xlane.xlu1 %436  ;;  %v680_v56 = vadd.f32 %v612_v27, %v611_v26 }
 0x147   : > { %675 = vadd.xlane.f32.xlu1 %v674_v11  ;;  %v513_v18 = vmul.f32 0.00390625, %v434_v58  ;;  %678 = vadd.xlane.f32.xlu0 %v677_v0  ;;  %v613_v32 = vmul.f32 %v3731_v23, %v3731_v23  ;;  %v614_v33 = vmul.f32 %v3734_v2, %v3734_v2  ;;  %v514_v21 = vmul.f32 0.00390625, %v437_v15 }
 0x148   : > { %v615_v34 = vmul.f32 %v3737_v40, %v3737_v40  ;;  %v616_v35 = vmul.f32 %v3740_v61, %v3740_v61 }
 0x149   : > { %v3751_v20 = vsub.f32 %v3433_v41, %v513_v18  ;;  %v3754_v4 = vsub.f32 %v3436_v42, %v513_v18  ;;  %v683_v46 = vadd.f32 %v614_v33, %v613_v32  ;;  %v3757_v10 = vsub.f32 %v3440_v44, %v514_v21 }
 0x14a   : > { %v3760_v11 = vsub.f32 %v3443_v45, %v514_v21  ;;  %v440_v24 = vpop.xlane.xlu0 %439  ;;  %v443_v25 = vpop.xlane.xlu1 %442  ;;  %v686_v26 = vadd.f32 %v616_v35, %v615_v34 }
 0x14b   : > { %681 = vadd.xlane.f32.xlu1 %v680_v56  ;;  %v515_v13 = vmul.f32 0.00390625, %v440_v24  ;;  %684 = vadd.xlane.f32.xlu0 %v683_v46  ;;  %v617_v41 = vmul.f32 %v3751_v20, %v3751_v20  ;;  %v618_v42 = vmul.f32 %v3754_v4, %v3754_v4  ;;  %v516_v27 = vmul.f32 0.00390625, %v443_v25 }
 0x14c   : > { %v619_v44 = vmul.f32 %v3757_v10, %v3757_v10  ;;  %v620_v45 = vmul.f32 %v3760_v11, %v3760_v11 }
 0x14d   : > { %v3771_v0 = vsub.f32 %v3453_v51, %v515_v13  ;;  %v3774_v58 = vsub.f32 %v3456_v52, %v515_v13  ;;  %v689_v15 = vadd.f32 %v618_v42, %v617_v41  ;;  %v3777_v18 = vsub.f32 %v3459_v54, %v516_v27 }
 0x14e   : > { %v3780_v56 = vsub.f32 %v3462_v55, %v516_v27  ;;  %v446_v32 = vpop.xlane.xlu0 %445  ;;  %v449_v33 = vpop.xlane.xlu1 %448  ;;  %v692_v34 = vadd.f32 %v620_v45, %v619_v44 }
 0x14f   : > { %687 = vadd.xlane.f32.xlu1 %v686_v26  ;;  %v517_v21 = vmul.f32 0.00390625, %v446_v32  ;;  %690 = vadd.xlane.f32.xlu0 %v689_v15  ;;  %v621_v51 = vmul.f32 %v3771_v0, %v3771_v0  ;;  %v622_v52 = vmul.f32 %v3774_v58, %v3774_v58  ;;  %v518_v35 = vmul.f32 0.00390625, %v449_v33 }
 0x150   : > { %4573 = vst [vmem:[#allocation37_spill] sm:$0xff] %v3780_v56  ;;  %v623_v54 = vmul.f32 %v3777_v18, %v3777_v18  ;;  %v624_v55 = vmul.f32 %v3780_v56, %v3780_v56 }
 0x151   : > { %v3791_v46 = vsub.f32 %v3469_v59, %v517_v21  ;;  %v3794_v24 = vsub.f32 %v3472_v60, %v517_v21  ;;  %v695_v25 = vadd.f32 %v622_v52, %v621_v51  ;;  %v3797_v13 = vsub.f32 %v3476_v62, %v518_v35 }
 0x152   : > { %v3800_v26 = vsub.f32 %v3479_v63, %v518_v35  ;;  %v452_v41 = vpop.xlane.xlu0 %451  ;;  %v455_v42 = vpop.xlane.xlu1 %454  ;;  %v698_v44 = vadd.f32 %v624_v55, %v623_v54 }
 0x153   : > { %4574 = vst [vmem:[#allocation38_spill] sm:$0xff] %v3791_v46  ;;  %4575 = vst [vmem:[#allocation39_spill] sm:$0xff] %v3794_v24  ;;  %693 = vadd.xlane.f32.xlu1 %v692_v34  ;;  %v519_v27 = vmul.f32 0.00390625, %v452_v41  ;;  %696 = vadd.xlane.f32.xlu0 %v695_v25  ;;  %v625_v59 = vmul.f32 %v3791_v46, %v3791_v46  ;;  %v626_v60 = vmul.f32 %v3794_v24, %v3794_v24 }
 0x154   : > { %4576 = vst [vmem:[#allocation40_spill] sm:$0xff] %v3797_v13  ;;  %4577 = vst [vmem:[#allocation41_spill] sm:$0xff] %v3800_v26  ;;  %v520_v45 = vmul.f32 0.00390625, %v455_v42  ;;  %v627_v62 = vmul.f32 %v3797_v13, %v3797_v13  ;;  %v628_v63 = vmul.f32 %v3800_v26, %v3800_v26 }
 0x155   : > { %v3811_v15 = vsub.f32 %v3491_v6, %v519_v27  ;;  %v3814_v32 = vsub.f32 %v3494_v7, %v519_v27  ;;  %v701_v33 = vadd.f32 %v626_v60, %v625_v59 }
 0x156   : > { %v3817_v21 = vsub.f32 %v3497_v9, %v520_v45  ;;  %v3820_v34 = vsub.f32 %v3500_v12, %v520_v45  ;;  %v458_v51 = vpop.xlane.xlu0 %457  ;;  %v461_v52 = vpop.xlane.xlu1 %460  ;;  %v704_v54 = vadd.f32 %v628_v63, %v627_v62 }
 0x157   : > { %4578 = vst [vmem:[#allocation42_spill] sm:$0xff] %v3811_v15  ;;  %4579 = vst [vmem:[#allocation43_spill] sm:$0xff] %v3814_v32  ;;  %699 = vadd.xlane.f32.xlu1 %v698_v44  ;;  %v521_v35 = vmul.f32 0.00390625, %v458_v51  ;;  %702 = vadd.xlane.f32.xlu0 %v701_v33  ;;  %v629_v6 = vmul.f32 %v3811_v15, %v3811_v15  ;;  %v630_v7 = vmul.f32 %v3814_v32, %v3814_v32 }
 0x158   : > { %4580 = vst [vmem:[#allocation44_spill] sm:$0xff] %v3817_v21  ;;  %4581 = vst [vmem:[#allocation45_spill] sm:$0xff] %v3820_v34  ;;  %v522_v55 = vmul.f32 0.00390625, %v461_v52  ;;  %v631_v9 = vmul.f32 %v3817_v21, %v3817_v21  ;;  %v632_v12 = vmul.f32 %v3820_v34, %v3820_v34 }
 0x159   : > { %v3831_v25 = vsub.f32 %v3515_v30, %v521_v35  ;;  %v3834_v41 = vsub.f32 %v3518_v31, %v521_v35  ;;  %v707_v42 = vadd.f32 %v630_v7, %v629_v6 }
 0x15a   : > { %v3837_v27 = vsub.f32 %v3505_v19, %v522_v55  ;;  %v3840_v44 = vsub.f32 %v3512_v29, %v522_v55  ;;  %v464_v59 = vpop.xlane.xlu0 %463  ;;  %v467_v60 = vpop.xlane.xlu1 %466  ;;  %v710_v62 = vadd.f32 %v632_v12, %v631_v9 }
 0x15b   : > { %4582 = vst [vmem:[#allocation46_spill] sm:$0xff] %v3831_v25  ;;  %4583 = vst [vmem:[#allocation47_spill] sm:$0xff] %v3834_v41  ;;  %705 = vadd.xlane.f32.xlu1 %v704_v54  ;;  %v523_v45 = vmul.f32 0.00390625, %v464_v59  ;;  %708 = vadd.xlane.f32.xlu0 %v707_v42  ;;  %v633_v30 = vmul.f32 %v3831_v25, %v3831_v25  ;;  %v634_v31 = vmul.f32 %v3834_v41, %v3834_v41  ;;  %v4589_v54 = vld [vmem:[#allocation17_spill] sm:$0xff] }
 0x15c   : > { %4584 = vst [vmem:[#allocation48_spill] sm:$0xff] %v3837_v27  ;;  %4585 = vst [vmem:[#allocation49_spill] sm:$0xff] %v3840_v44  ;;  %v524_v63 = vmul.f32 0.00390625, %v467_v60  ;;  %v635_v19 = vmul.f32 %v3837_v27, %v3837_v27  ;;  %v636_v29 = vmul.f32 %v3840_v44, %v3840_v44  ;;  %v4591_v60 = vld [vmem:[#allocation18_spill] sm:$0xff] }
 0x15d   : > { %v3851_v33 = vsub.f32 %v3524_v38, %v523_v45  ;;  %v3854_v51 = vsub.f32 %v3527_v39, %v523_v45  ;;  %v713_v52 = vadd.f32 %v634_v31, %v633_v30 }
 0x15e   : > { %v3857_v35 = vsub.f32 %v3533_v47, %v524_v63  ;;  %v3860_v6 = vsub.f32 %v4589_v54, %v524_v63  ;;  %v470_v7 = vpop.xlane.xlu0 %469  ;;  %v473_v55 = vpop.xlane.xlu1 %472  ;;  %v716_v12 = vadd.f32 %v636_v29, %v635_v19  ;;  %v4595_v63 = vld [vmem:[#allocation20_spill] sm:$0xff]  ;;  %v4597_v29 = vld [vmem:[#allocation21_spill] sm:$0xff] }
 0x15f   : > { %4586 = vst [vmem:[#allocation50_spill] sm:$0xff] %v3851_v33  ;;  %4587 = vst [vmem:[#allocation51_spill] sm:$0xff] %v3854_v51  ;;  %711 = vadd.xlane.f32.xlu1 %v710_v62  ;;  %v525_v9 = vmul.f32 0.00390625, %v470_v7  ;;  %714 = vadd.xlane.f32.xlu0 %v713_v52  ;;  %v637_v38 = vmul.f32 %v3851_v33, %v3851_v33  ;;  %v638_v39 = vmul.f32 %v3854_v51, %v3854_v51  ;;  %v4593_v62 = vld [vmem:[#allocation19_spill] sm:$0xff] }
 0x160   : > { %4588 = vst [vmem:[#allocation52_spill] sm:$0xff] %v3857_v35  ;;  %4590 = vst [vmem:[#allocation17_spill] sm:$0xff] %v3860_v6  ;;  %v526_v42 = vmul.f32 0.00390625, %v473_v55  ;;  %v639_v47 = vmul.f32 %v3857_v35, %v3857_v35  ;;  %v640_v59 = vmul.f32 %v3860_v6, %v3860_v6 }
 0x161   : > { %v3871_v45 = vsub.f32 %v4591_v60, %v525_v9  ;;  %v3874_v30 = vsub.f32 %v4593_v62, %v525_v9  ;;  %v719_v31 = vadd.f32 %v638_v39, %v637_v38 }
 0x162   : > { %v3877_v19 = vsub.f32 %v4595_v63, %v526_v42  ;;  %v3880_v52 = vsub.f32 %v4597_v29, %v526_v42  ;;  %v476_v54 = vpop.xlane.xlu0 %475  ;;  %v722_v35 = vadd.f32 %v640_v59, %v639_v47  ;;  %v4599_v42 = vld [vmem:[#allocation22_spill] sm:$0xff]  ;;  %v4603_v59 = vld [vmem:[#allocation24_spill] sm:$0xff] }
 0x163   : > { %4592 = vst [vmem:[#allocation18_spill] sm:$0xff] %v3871_v45  ;;  %4594 = vst [vmem:[#allocation19_spill] sm:$0xff] %v3874_v30  ;;  %717 = vadd.xlane.f32.xlu1 %v716_v12  ;;  %v479_v7 = vpop.xlane.xlu1 %478  ;;  %v527_v55 = vmul.f32 0.00390625, %v476_v54  ;;  %720 = vadd.xlane.f32.xlu0 %v719_v31  ;;  %v641_v60 = vmul.f32 %v3871_v45, %v3871_v45  ;;  %v642_v9 = vmul.f32 %v3874_v30, %v3874_v30  ;;  %v4601_v12 = vld [vmem:[#allocation23_spill] sm:$0xff]  ;;  %v4605_v54 = vld [vmem:[#allocation25_spill] sm:$0xff] }
 0x164   : > { %4596 = vst [vmem:[#allocation20_spill] sm:$0xff] %v3877_v19  ;;  %4598 = vst [vmem:[#allocation21_spill] sm:$0xff] %v3880_v52  ;;  %v528_v62 = vmul.f32 0.00390625, %v479_v7  ;;  %v643_v38 = vmul.f32 %v3877_v19, %v3877_v19  ;;  %v644_v39 = vmul.f32 %v3880_v52, %v3880_v52 }
 0x165   : > { %v3891_v63 = vsub.f32 %v4599_v42, %v527_v55  ;;  %v3894_v29 = vsub.f32 %v4601_v12, %v527_v55  ;;  %v725_v47 = vadd.f32 %v642_v9, %v641_v60 }
 0x166   : > { %v3897_v31 = vsub.f32 %v4603_v59, %v528_v62  ;;  %v3900_v45 = vsub.f32 %v4605_v54, %v528_v62  ;;  %v482_v7 = vpop.xlane.xlu0 %481  ;;  %v728_v6 = vadd.f32 %v644_v39, %v643_v38  ;;  %v4607_v62 = vld [vmem:[#allocation26_spill] sm:$0xff]  ;;  %v4611_v39 = vld [vmem:[#allocation28_spill] sm:$0xff] }
 0x167   : > { %4600 = vst [vmem:[#allocation22_spill] sm:$0xff] %v3891_v63  ;;  %4602 = vst [vmem:[#allocation23_spill] sm:$0xff] %v3894_v29  ;;  %723 = vadd.xlane.f32.xlu1 %v722_v35  ;;  %v529_v19 = vmul.f32 0.00390625, %v482_v7  ;;  %726 = vadd.xlane.f32.xlu0 %v725_v47  ;;  %v645_v42 = vmul.f32 %v3891_v63, %v3891_v63  ;;  %v646_v55 = vmul.f32 %v3894_v29, %v3894_v29  ;;  %v4609_v35 = vld [vmem:[#allocation27_spill] sm:$0xff]  ;;  %v4613_v7 = vld [vmem:[#allocation29_spill] sm:$0xff] }
 0x168   : > { %4604 = vst [vmem:[#allocation24_spill] sm:$0xff] %v3897_v31  ;;  %4606 = vst [vmem:[#allocation25_spill] sm:$0xff] %v3900_v45  ;;  %v647_v60 = vmul.f32 %v3897_v31, %v3897_v31  ;;  %v648_v9 = vmul.f32 %v3900_v45, %v3900_v45 }
 0x169   : > { %v485_v30 = vpop.xlane.xlu1 %484  ;;  %v3911_v59 = vsub.f32 %v4607_v62, %v529_v19  ;;  %v3914_v54 = vsub.f32 %v4609_v35, %v529_v19  ;;  %v731_v38 = vadd.f32 %v646_v55, %v645_v42 }
 0x16a   : > { %v530_v12 = vmul.f32 0.00390625, %v485_v30  ;;  %v488_v30 = vpop.xlane.xlu0 %487  ;;  %v734_v52 = vadd.f32 %v648_v9, %v647_v60  ;;  %v4619_v9 = vld [vmem:[#allocation32_spill] sm:$0xff] }
 0x16b   : > { %4608 = vst [vmem:[#allocation26_spill] sm:$0xff] %v3911_v59  ;;  %4610 = vst [vmem:[#allocation27_spill] sm:$0xff] %v3914_v54  ;;  %729 = vadd.xlane.f32.xlu1 %v728_v6  ;;  %v531_v31 = vmul.f32 0.00390625, %v488_v30  ;;  %732 = vadd.xlane.f32.xlu0 %v731_v38  ;;  %v649_v62 = vmul.f32 %v3911_v59, %v3911_v59  ;;  %v650_v19 = vmul.f32 %v3914_v54, %v3914_v54  ;;  %v4617_v6 = vld [vmem:[#allocation31_spill] sm:$0xff]  ;;  %v4621_v30 = vld [vmem:[#allocation33_spill] sm:$0xff] }
 0x16c   : > { %v3917_v47 = vsub.f32 %v4611_v39, %v530_v12  ;;  %v3920_v63 = vsub.f32 %v4613_v7, %v530_v12  ;;  %v4615_v12 = vld [vmem:[#allocation30_spill] sm:$0xff] }
 0x16d   : > { %v491_v29 = vpop.xlane.xlu1 %490  ;;  %v3931_v39 = vsub.f32 %v4615_v12, %v531_v31  ;;  %v3934_v7 = vsub.f32 %v4617_v6, %v531_v31  ;;  %v737_v60 = vadd.f32 %v650_v19, %v649_v62 }
 0x16e   : > { %4612 = vst [vmem:[#allocation28_spill] sm:$0xff] %v3917_v47  ;;  %4614 = vst [vmem:[#allocation29_spill] sm:$0xff] %v3920_v63  ;;  %v532_v35 = vmul.f32 0.00390625, %v491_v29  ;;  %v651_v42 = vmul.f32 %v3917_v47, %v3917_v47  ;;  %v652_v55 = vmul.f32 %v3920_v63, %v3920_v63 }
 0x16f   : > { %4616 = vst [vmem:[#allocation30_spill] sm:$0xff] %v3931_v39  ;;  %4618 = vst [vmem:[#allocation31_spill] sm:$0xff] %v3934_v7  ;;  %735 = vadd.xlane.f32.xlu1 %v734_v52  ;;  %738 = vadd.xlane.f32.xlu0 %v737_v60  ;;  %v653_v12 = vmul.f32 %v3931_v39, %v3931_v39  ;;  %v654_v31 = vmul.f32 %v3934_v7, %v3934_v7 }
 0x170   : > { %v3937_v38 = vsub.f32 %v4619_v9, %v532_v35  ;;  %v3940_v59 = vsub.f32 %v4621_v30, %v532_v35  ;;  %v740_v45 = vadd.f32 %v652_v55, %v651_v42  ;;  %v4625_v55 = vld [vmem:[#allocation34_spill] sm:$0xff]  ;;  %v4627_v9 = vld [vmem:[#allocation35_spill] sm:$0xff] }
 0x171   : > { %v494_v29 = vpop.xlane.xlu0 %493  ;;  %v743_v42 = vadd.f32 %v654_v31, %v653_v12 }
 0x172   : > { %4620 = vst [vmem:[#allocation32_spill] sm:$0xff] %v3937_v38  ;;  %4622 = vst [vmem:[#allocation33_spill] sm:$0xff] %v3940_v59  ;;  %v497_v54 = vpop.xlane.xlu1 %496  ;;  %v533_v47 = vmul.f32 0.00390625, %v494_v29  ;;  %v655_v62 = vmul.f32 %v3937_v38, %v3937_v38  ;;  %v656_v19 = vmul.f32 %v3940_v59, %v3940_v59 }
 0x173   : > { %v534_v6 = vmul.f32 0.00390625, %v497_v54  ;;  %741 = vadd.xlane.f32.xlu1 %v740_v45  ;;  %744 = vadd.xlane.f32.xlu0 %v743_v42  ;;  %v4632_v42 = vld [vmem:[#allocation36_spill] sm:$0xff] }
 0x174   : > { %v3951_v35 = vsub.f32 %v3617_v16, %v533_v47  ;;  %v3954_v52 = vsub.f32 %v3620_v1, %v533_v47  ;;  %v746_v7 = vadd.f32 %v656_v19, %v655_v62 }
 0x175   : > { %v3957_v60 = vsub.f32 %v4625_v55, %v534_v6  ;;  %v3960_v30 = vsub.f32 %v4627_v9, %v534_v6  ;;  %v500_v54 = vpop.xlane.xlu0 %499 }
 0x176   : > { %4623 = vst [vmem:[#allocation53_spill] sm:$0xff] %v3951_v35  ;;  %4624 = vst [vmem:[#allocation54_spill] sm:$0xff] %v3954_v52  ;;  %v503_v29 = vpop.xlane.xlu1 %502  ;;  %v535_v38 = vmul.f32 0.00390625, %v500_v54  ;;  %v657_v16 = vmul.f32 %v3951_v35, %v3951_v35  ;;  %v658_v1 = vmul.f32 %v3954_v52, %v3954_v52 }
 0x177   : > { %4626 = vst [vmem:[#allocation34_spill] sm:$0xff] %v3957_v60  ;;  %4628 = vst [vmem:[#allocation35_spill] sm:$0xff] %v3960_v30  ;;  %v536_v47 = vmul.f32 0.00390625, %v503_v29  ;;  %v659_v12 = vmul.f32 %v3957_v60, %v3957_v60  ;;  %v660_v31 = vmul.f32 %v3960_v30, %v3960_v30  ;;  %747 = vadd.xlane.f32.xlu1 %v746_v7 }
 0x178   : > { %v3971_v6 = vsub.f32 %v3637_v57, %v535_v38  ;;  %v3974_v45 = vsub.f32 %v3640_v8, %v535_v38  ;;  %v749_v62 = vadd.f32 %v658_v1, %v657_v16  ;;  %v987_v16 = vlaneseq }
 0x179   : > { %v3977_v19 = vsub.f32 %v3649_v5, %v536_v47  ;;  %v3980_v55 = vsub.f32 %v4632_v42, %v536_v47  ;;  %v752_v9 = vadd.f32 %v660_v31, %v659_v12  ;;  %v985_v47 = vld [vmem:[%s4452_s3] sm:$0x3] }
 0x17a   : > { %4629 = vst [vmem:[#allocation55_spill] sm:$0xff] %v3971_v6  ;;  %4630 = vst [vmem:[#allocation56_spill] sm:$0xff] %v3974_v45  ;;  %750 = vadd.xlane.f32.xlu0 %v749_v62  ;;  %v661_v54 = vmul.f32 %v3971_v6, %v3971_v6  ;;  %v662_v57 = vmul.f32 %v3974_v45, %v3974_v45  ;;  %v3990_v7 = vshrl.u32 %v987_v16, 7 }
 0x17b   : > { %4631 = vst [vmem:[#allocation57_spill] sm:$0xff] %v3977_v19  ;;  %4633 = vst [vmem:[#allocation36_spill] sm:$0xff] %v3980_v55  ;;  %v663_v8 = vmul.f32 %v3977_v19, %v3977_v19  ;;  %v664_v38 = vmul.f32 %v3980_v55, %v3980_v55  ;;  %753 = vadd.xlane.f32.xlu1 %v752_v9 }
 0x17c   : > { %v755_v5 = vadd.f32 %v662_v57, %v661_v54  ;;  %v4501_v1 = vsub.s32 0, %v3990_v7  ;;  %v4504_v12 = vsub.s32 1, %v3990_v7 }
 0x17d   : > { %v758_v29 = vadd.f32 %v664_v38, %v663_v8 }
 0x17e   : > { %756 = vadd.xlane.f32.xlu0 %v755_v5  ;;  %v3999_v31 = vrot.slane %v985_v47, %v4501_v1  ;;  %v4003_v62 = vrot.slane %v985_v47, %v4504_v12 }
 0x17f   : > { %759 = vadd.xlane.f32.xlu1 %v758_v29 }
 0x195   : > { %v1111_v42 = vpop.f32.mrb[0].mxu0  ;;  %v1191_v9 = vpop.f32.mrb[0].mxu1 }
 0x196   : > { %v1112_v54 = vadd.f32 %v1111_v42, %v3999_v31  ;;  %v1113_v57 = vpop.f32.mrb[1].mxu0  ;;  %v1192_v8 = vadd.f32 %v1191_v9, %v3999_v31  ;;  %v1193_v38 = vpop.f32.mrb[1].mxu1 }
 0x197   : > { %v1114_v5 = vadd.f32 %v1113_v57, %v4003_v62  ;;  %v1115_v29 = vpop.f32.mrb[2].mxu0  ;;  %v1194_v16 = vadd.f32 %v1193_v38, %v4003_v62  ;;  %v1195_v55 = vpop.f32.mrb[2].mxu1 }
 0x198   : > { %v1116_v1 = vadd.f32 %v1115_v29, %v3999_v31  ;;  %v1117_v19 = vpop.f32.mrb[3].mxu0  ;;  %v1302_v45 = vmax.f32 %v1192_v8, 0.0  ;;  %v1196_v47 = vadd.f32 %v1195_v55, %v3999_v31  ;;  %v1197_v12 = vpop.f32.mrb[3].mxu1  ;;  %v1270_v9 = vmax.f32 %v1112_v54, 0.0 }
 0x199   : > { %v1118_v6 = vadd.f32 %v1117_v19, %v4003_v62  ;;  %v1303_v42 = vmax.f32 %v1194_v16, 0.0  ;;  %v1198_v30 = vadd.f32 %v1197_v12, %v4003_v62  ;;  %v1271_v57 = vmax.f32 %v1114_v5, 0.0 }
 0x19a   : > { %v1272_v60 = vmax.f32 %v1116_v1, 0.0  ;;  %v1304_v52 = vmax.f32 %v1196_v47, 0.0 }
 0x19b   : > { %v1273_v35 = vmax.f32 %v1118_v6, 0.0  ;;  %v1305_v59 = vmax.f32 %v1198_v30, 0.0 }
 0x19c   : > { %v1334_v38 = vpack.c.bf16 %v1272_v60, %v1270_v9  ;;  %v4013_v39 = vpack.c.bf16 %v1304_v52, %v1302_v45 }
 0x19d   : > { %v1335_v29 = vpack.c.bf16 %v1273_v35, %v1271_v57  ;;  %v1121_v63 = vpop.f32.mrb[4].mxu0  ;;  %v4015_v8 = vpack.c.bf16 %v1305_v59, %v1303_v42  ;;  %v1201_v55 = vpop.f32.mrb[4].mxu1 }
 0x19e   : > { %v1122_v51 = vadd.f32 %v1121_v63, %v3999_v31  ;;  %v1123_v19 = vpop.f32.mrb[5].mxu0  ;;  %v1202_v16 = vadd.f32 %v1201_v55, %v3999_v31  ;;  %v1203_v12 = vpop.f32.mrb[5].mxu1 }
 0x19f   : > { %v1124_v1 = vadd.f32 %v1123_v19, %v4003_v62  ;;  %v1125_v54 = vpop.f32.mrb[6].mxu0  ;;  %1804 = vmatprep.mubr.bf16.mxu1 %v1335_v29  ;;  %1997 = vmatprep.mubr.bf16.mxu0 %v1335_v29  ;;  %v1204_v60 = vadd.f32 %v1203_v12, %v4003_v62  ;;  %v1205_v52 = vpop.f32.mrb[6].mxu1 }
 0x1a0   : > { %v1126_v35 = vadd.f32 %v1125_v54, %v3999_v31  ;;  %v1127_v30 = vpop.f32.mrb[7].mxu0  ;;  %1805 = vmatmul.mubr.bf16.vlgmr.msra.gmra.mrb[32].mxu1 %v1334_v38  ;;  %1998 = vmatmul.mubr.bf16.vlgmr.msra.gmra.mrb[32].mxu0 %v1334_v38  ;;  %v1306_v59 = vmax.f32 %v1202_v16, 0.0  ;;  %v1206_v63 = vadd.f32 %v1205_v52, %v3999_v31  ;;  %v1207_v6 = vpop.f32.mrb[7].mxu1  ;;  %v1274_v42 = vmax.f32 %v1122_v51, 0.0 }
 0x1a1   : > { %v1128_v45 = vadd.f32 %v1127_v30, %v4003_v62  ;;  %v1307_v5 = vmax.f32 %v1204_v60, 0.0  ;;  %v1208_v47 = vadd.f32 %v1207_v6, %v4003_v62  ;;  %v1275_v29 = vmax.f32 %v1124_v1, 0.0 }
 0x1a2   : > { %v1276_v9 = vmax.f32 %v1126_v35, 0.0  ;;  %v1308_v57 = vmax.f32 %v1206_v63, 0.0 }
 0x1a3   : > { %v1277_v55 = vmax.f32 %v1128_v45, 0.0  ;;  %v1309_v19 = vmax.f32 %v1208_v47, 0.0 }
 0x1a4   : > { %v1336_v12 = vpack.c.bf16 %v1276_v9, %v1274_v42  ;;  %v4025_v54 = vpack.c.bf16 %v1308_v57, %v1306_v59 }
 0x1a5   : > { %v1337_v33 = vpack.c.bf16 %v1277_v55, %v1275_v29  ;;  %v1131_v38 = vpop.f32.mrb[8].mxu0  ;;  %v4027_v16 = vpack.c.bf16 %v1309_v19, %v1307_v5  ;;  %v1211_v52 = vpop.f32.mrb[8].mxu1 }
 0x1a6   : > { %v1132_v44 = vadd.f32 %v1131_v38, %v3999_v31  ;;  %v1133_v30 = vpop.f32.mrb[9].mxu0  ;;  %v1212_v60 = vadd.f32 %v1211_v52, %v3999_v31  ;;  %v1213_v6 = vpop.f32.mrb[9].mxu1 }
 0x1a7   : > { %v1134_v51 = vadd.f32 %v1133_v30, %v4003_v62  ;;  %v1135_v35 = vpop.f32.mrb[10].mxu0  ;;  %1814 = vmatprep.mubr.bf16.mxu1 %v1337_v33  ;;  %2007 = vmatprep.mubr.bf16.mxu0 %v1337_v33  ;;  %v1214_v1 = vadd.f32 %v1213_v6, %v4003_v62  ;;  %v1215_v59 = vpop.f32.mrb[10].mxu1 }
 0x1a8   : > { %v1136_v63 = vadd.f32 %v1135_v35, %v3999_v31  ;;  %v1137_v45 = vpop.f32.mrb[11].mxu0  ;;  %1815 = vmatmul.mubr.bf16.gmra.mrb[36].mxu1 %v1336_v12  ;;  %2008 = vmatmul.mubr.bf16.gmra.mrb[36].mxu0 %v1336_v12  ;;  %v1310_v5 = vmax.f32 %v1212_v60, 0.0  ;;  %v1216_v47 = vadd.f32 %v1215_v59, %v3999_v31  ;;  %v1217_v42 = vpop.f32.mrb[11].mxu1  ;;  %v1278_v55 = vmax.f32 %v1132_v44, 0.0 }
 0x1a9   : > { %v1138_v9 = vadd.f32 %v1137_v45, %v4003_v62  ;;  %v1311_v57 = vmax.f32 %v1214_v1, 0.0  ;;  %v1218_v29 = vadd.f32 %v1217_v42, %v4003_v62  ;;  %v1279_v38 = vmax.f32 %v1134_v51, 0.0 }
 0x1aa   : > { %v1280_v19 = vmax.f32 %v1136_v63, 0.0  ;;  %v1312_v33 = vmax.f32 %v1216_v47, 0.0 }
 0x1ab   : > { %v1281_v52 = vmax.f32 %v1138_v9, 0.0  ;;  %v1313_v30 = vmax.f32 %v1218_v29, 0.0 }
 0x1ac   : > { %v1338_v6 = vpack.c.bf16 %v1280_v19, %v1278_v55  ;;  %v4037_v35 = vpack.c.bf16 %v1312_v33, %v1310_v5 }
 0x1ad   : > { %v1339_v27 = vpack.c.bf16 %v1281_v52, %v1279_v38  ;;  %v1141_v12 = vpop.f32.mrb[12].mxu0  ;;  %v4039_v60 = vpack.c.bf16 %v1313_v30, %v1311_v57  ;;  %v1221_v59 = vpop.f32.mrb[12].mxu1 }
 0x1ae   : > { %v1142_v41 = vadd.f32 %v1141_v12, %v3999_v31  ;;  %v1143_v45 = vpop.f32.mrb[13].mxu0  ;;  %v1222_v1 = vadd.f32 %v1221_v59, %v3999_v31  ;;  %v1223_v42 = vpop.f32.mrb[13].mxu1 }
 0x1af   : > { %v1144_v44 = vadd.f32 %v1143_v45, %v4003_v62  ;;  %v1145_v63 = vpop.f32.mrb[14].mxu0  ;;  %1824 = vmatprep.mubr.bf16.mxu1 %v1339_v27  ;;  %2017 = vmatprep.mubr.bf16.mxu0 %v1339_v27  ;;  %v1224_v51 = vadd.f32 %v1223_v42, %v4003_v62  ;;  %v1225_v5 = vpop.f32.mrb[14].mxu1 }
 0x1b0   : > { %v1146_v47 = vadd.f32 %v1145_v63, %v3999_v31  ;;  %v1147_v9 = vpop.f32.mrb[15].mxu0  ;;  %1825 = vmatmul.mubr.bf16.gmra.mrb[40].mxu1 %v1338_v6  ;;  %2018 = vmatmul.mubr.bf16.gmra.mrb[40].mxu0 %v1338_v6  ;;  %v1314_v57 = vmax.f32 %v1222_v1, 0.0  ;;  %v1226_v29 = vadd.f32 %v1225_v5, %v3999_v31  ;;  %v1227_v55 = vpop.f32.mrb[15].mxu1  ;;  %v1282_v52 = vmax.f32 %v1142_v41, 0.0 }
 0x1b1   : > { %v1148_v19 = vadd.f32 %v1147_v9, %v4003_v62  ;;  %v1315_v33 = vmax.f32 %v1224_v51, 0.0  ;;  %v1228_v38 = vadd.f32 %v1227_v55, %v4003_v62  ;;  %v1283_v12 = vmax.f32 %v1144_v44, 0.0 }
 0x1b2   : > { %v1284_v30 = vmax.f32 %v1146_v47, 0.0  ;;  %v1316_v27 = vmax.f32 %v1226_v29, 0.0 }
 0x1b3   : > { %v1285_v59 = vmax.f32 %v1148_v19, 0.0  ;;  %v1317_v45 = vmax.f32 %v1228_v38, 0.0 }
 0x1b4   : > { %v1340_v42 = vpack.c.bf16 %v1284_v30, %v1282_v52  ;;  %v4049_v63 = vpack.c.bf16 %v1316_v27, %v1314_v57 }
 0x1b5   : > { %v1341_v25 = vpack.c.bf16 %v1285_v59, %v1283_v12  ;;  %v1151_v6 = vpop.f32.mrb[16].mxu0  ;;  %v4051_v1 = vpack.c.bf16 %v1317_v45, %v1315_v33  ;;  %v1231_v5 = vpop.f32.mrb[16].mxu1 }
 0x1b6   : > { %v1152_v34 = vadd.f32 %v1151_v6, %v3999_v31  ;;  %v1153_v9 = vpop.f32.mrb[17].mxu0  ;;  %v1232_v51 = vadd.f32 %v1231_v5, %v3999_v31  ;;  %v1233_v55 = vpop.f32.mrb[17].mxu1 }
 0x1b7   : > { %v1154_v41 = vadd.f32 %v1153_v9, %v4003_v62  ;;  %v1155_v47 = vpop.f32.mrb[18].mxu0  ;;  %1834 = vmatprep.mubr.bf16.mxu1 %v1341_v25  ;;  %2027 = vmatprep.mubr.bf16.mxu0 %v1341_v25  ;;  %v1234_v44 = vadd.f32 %v1233_v55, %v4003_v62  ;;  %v1235_v57 = vpop.f32.mrb[18].mxu1 }
 0x1b8   : > { %v1156_v29 = vadd.f32 %v1155_v47, %v3999_v31  ;;  %v1157_v19 = vpop.f32.mrb[19].mxu0  ;;  %1835 = vmatmul.mubr.bf16.gmra.mrb[44].mxu1 %v1340_v42  ;;  %2028 = vmatmul.mubr.bf16.gmra.mrb[44].mxu0 %v1340_v42  ;;  %v1318_v33 = vmax.f32 %v1232_v51, 0.0  ;;  %v1236_v38 = vadd.f32 %v1235_v57, %v3999_v31  ;;  %v1237_v52 = vpop.f32.mrb[19].mxu1  ;;  %v1286_v59 = vmax.f32 %v1152_v34, 0.0 }
 0x1b9   : > { %v1158_v30 = vadd.f32 %v1157_v19, %v4003_v62  ;;  %v1319_v27 = vmax.f32 %v1234_v44, 0.0  ;;  %v1238_v12 = vadd.f32 %v1237_v52, %v4003_v62  ;;  %v1287_v6 = vmax.f32 %v1154_v41, 0.0 }
 0x1ba   : > { %v1288_v45 = vmax.f32 %v1156_v29, 0.0  ;;  %v1320_v25 = vmax.f32 %v1236_v38, 0.0 }
 0x1bb   : > { %v1289_v5 = vmax.f32 %v1158_v30, 0.0  ;;  %v1321_v9 = vmax.f32 %v1238_v12, 0.0 }
 0x1bc   : > { %v1342_v55 = vpack.c.bf16 %v1288_v45, %v1286_v59  ;;  %v4061_v47 = vpack.c.bf16 %v1320_v25, %v1318_v33 }
 0x1bd   : > { %v1343_v21 = vpack.c.bf16 %v1289_v5, %v1287_v6  ;;  %v1161_v42 = vpop.f32.mrb[20].mxu0  ;;  %v4063_v51 = vpack.c.bf16 %v1321_v9, %v1319_v27  ;;  %v1241_v57 = vpop.f32.mrb[20].mxu1 }
 0x1be   : > { %v1162_v32 = vadd.f32 %v1161_v42, %v3999_v31  ;;  %v1163_v19 = vpop.f32.mrb[21].mxu0  ;;  %v1242_v44 = vadd.f32 %v1241_v57, %v3999_v31  ;;  %v1243_v52 = vpop.f32.mrb[21].mxu1 }
 0x1bf   : > { %v1164_v34 = vadd.f32 %v1163_v19, %v4003_v62  ;;  %v1165_v29 = vpop.f32.mrb[22].mxu0  ;;  %1844 = vmatprep.mubr.bf16.mxu1 %v1343_v21  ;;  %2037 = vmatprep.mubr.bf16.mxu0 %v1343_v21  ;;  %v1244_v41 = vadd.f32 %v1243_v52, %v4003_v62  ;;  %v1245_v33 = vpop.f32.mrb[22].mxu1 }
 0x1c0   : > { %v1166_v38 = vadd.f32 %v1165_v29, %v3999_v31  ;;  %v1167_v30 = vpop.f32.mrb[23].mxu0  ;;  %1845 = vmatmul.mubr.bf16.gmra.mrb[48].mxu1 %v1342_v55  ;;  %2038 = vmatmul.mubr.bf16.gmra.mrb[48].mxu0 %v1342_v55  ;;  %v1322_v27 = vmax.f32 %v1242_v44, 0.0  ;;  %v1246_v12 = vadd.f32 %v1245_v33, %v3999_v31  ;;  %v1247_v59 = vpop.f32.mrb[23].mxu1  ;;  %v1290_v5 = vmax.f32 %v1162_v32, 0.0 }
 0x1c1   : > { %v1168_v45 = vadd.f32 %v1167_v30, %v4003_v62  ;;  %v1323_v25 = vmax.f32 %v1244_v41, 0.0  ;;  %v1248_v6 = vadd.f32 %v1247_v59, %v4003_v62  ;;  %v1291_v42 = vmax.f32 %v1164_v34, 0.0 }
 0x1c2   : > { %v1292_v9 = vmax.f32 %v1166_v38, 0.0  ;;  %v1324_v21 = vmax.f32 %v1246_v12, 0.0 }
 0x1c3   : > { %v1293_v57 = vmax.f32 %v1168_v45, 0.0  ;;  %v1325_v19 = vmax.f32 %v1248_v6, 0.0 }
 0x1c4   : > { %v1344_v52 = vpack.c.bf16 %v1292_v9, %v1290_v5  ;;  %v4073_v29 = vpack.c.bf16 %v1324_v21, %v1322_v27 }
 0x1c5   : > { %v1345_v15 = vpack.c.bf16 %v1293_v57, %v1291_v42  ;;  %v1171_v55 = vpop.f32.mrb[24].mxu0  ;;  %v4075_v44 = vpack.c.bf16 %v1325_v19, %v1323_v25  ;;  %v1251_v33 = vpop.f32.mrb[24].mxu1 }
 0x1c6   : > { %v1172_v26 = vadd.f32 %v1171_v55, %v3999_v31  ;;  %v1173_v30 = vpop.f32.mrb[25].mxu0  ;;  %v1252_v41 = vadd.f32 %v1251_v33, %v3999_v31  ;;  %v1253_v59 = vpop.f32.mrb[25].mxu1 }
 0x1c7   : > { %v1174_v32 = vadd.f32 %v1173_v30, %v4003_v62  ;;  %v1175_v38 = vpop.f32.mrb[26].mxu0  ;;  %1854 = vmatprep.mubr.bf16.mxu1 %v1345_v15  ;;  %2047 = vmatprep.mubr.bf16.mxu0 %v1345_v15  ;;  %v1254_v34 = vadd.f32 %v1253_v59, %v4003_v62  ;;  %v1255_v27 = vpop.f32.mrb[26].mxu1 }
 0x1c8   : > { %v1176_v12 = vadd.f32 %v1175_v38, %v3999_v31  ;;  %v1177_v45 = vpop.f32.mrb[27].mxu0  ;;  %1855 = vmatmul.mubr.bf16.gmra.mrb[52].mxu1 %v1344_v52  ;;  %2048 = vmatmul.mubr.bf16.gmra.mrb[52].mxu0 %v1344_v52  ;;  %v1326_v25 = vmax.f32 %v1252_v41, 0.0  ;;  %v1256_v6 = vadd.f32 %v1255_v27, %v3999_v31  ;;  %v1257_v5 = vpop.f32.mrb[27].mxu1  ;;  %v1294_v57 = vmax.f32 %v1172_v26, 0.0 }
 0x1c9   : > { %v1178_v9 = vadd.f32 %v1177_v45, %v4003_v62  ;;  %v1327_v21 = vmax.f32 %v1254_v34, 0.0  ;;  %v1258_v42 = vadd.f32 %v1257_v5, %v4003_v62  ;;  %v1295_v55 = vmax.f32 %v1174_v32, 0.0 }
 0x1ca   : > { %v1296_v19 = vmax.f32 %v1176_v12, 0.0  ;;  %v1328_v15 = vmax.f32 %v1256_v6, 0.0 }
 0x1cb   : > { %v1297_v33 = vmax.f32 %v1178_v9, 0.0  ;;  %v1329_v30 = vmax.f32 %v1258_v42, 0.0 }
 0x1cc   : > { %v1346_v59 = vpack.c.bf16 %v1296_v19, %v1294_v57  ;;  %v4085_v38 = vpack.c.bf16 %v1328_v15, %v1326_v25 }
 0x1cd   : > { %v1347_v13 = vpack.c.bf16 %v1297_v33, %v1295_v55  ;;  %v1181_v52 = vpop.f32.mrb[28].mxu0  ;;  %v1363_v41 = vpack.c.bf16 %v1329_v30, %v1327_v21  ;;  %v1261_v24 = vpop.f32.mrb[28].mxu1 }
 0x1ce   : > { %v1182_v27 = vadd.f32 %v1181_v52, %v3999_v31  ;;  %v1183_v46 = vpop.f32.mrb[29].mxu0  ;;  %v1262_v34 = vadd.f32 %v1261_v24, %v3999_v31  ;;  %v1263_v45 = vpop.f32.mrb[29].mxu1 }
 0x1cf   : > { %v1184_v26 = vadd.f32 %v1183_v46, %v4003_v62  ;;  %v1185_v12 = vpop.f32.mrb[30].mxu0  ;;  %1864 = vmatprep.mubr.bf16.mxu1 %v1347_v13  ;;  %2057 = vmatprep.mubr.bf16.mxu0 %v1347_v13  ;;  %v1264_v32 = vadd.f32 %v1263_v45, %v4003_v62  ;;  %v1265_v6 = vpop.f32.mrb[30].mxu1 }
 0x1d0   : > { %v1186_v25 = vadd.f32 %v1185_v12, %v3999_v31  ;;  %v1187_v5 = vpop.f32.mrb[31].mxu0  ;;  %1865 = vmatmul.mubr.bf16.gmra.mrb[56].mxu1 %v1346_v59  ;;  %2058 = vmatmul.mubr.bf16.gmra.mrb[56].mxu0 %v1346_v59  ;;  %v1330_v9 = vmax.f32 %v1262_v34, 0.0  ;;  %v1266_v21 = vadd.f32 %v1265_v6, %v3999_v31  ;;  %v1267_v42 = vpop.f32.mrb[31].mxu1  ;;  %v1298_v19 = vmax.f32 %v1182_v27, 0.0 }
 0x1d1   : > { %v1188_v24 = vadd.f32 %v1187_v5, %v4003_v62  ;;  %v1331_v57 = vmax.f32 %v1264_v32, 0.0  ;;  %v1268_v46 = vadd.f32 %v1267_v42, %v4003_v62  ;;  %v1299_v55 = vmax.f32 %v1184_v26, 0.0  ;;  %v670_v31 = vpop.xlane.xlu1 %669 }
 0x1d2   : > { %v1300_v15 = vmax.f32 %v1186_v25, 0.0  ;;  %v1332_v13 = vmax.f32 %v1266_v21, 0.0  ;;  %v1442_v27 = vsub.s32 2, %v3990_v7  ;;  %v1446_v34 = vsub.s32 3, %v3990_v7 }
 0x1d3   : > { %v1301_v33 = vmax.f32 %v1188_v24, 0.0  ;;  %v1333_v30 = vmax.f32 %v1268_v46, 0.0  ;;  %v4634_v6 = vsub.s32 0, %v3990_v7  ;;  %v4635_v21 = vsub.s32 1, %v3990_v7 }
 0x1d4   : > { %v1348_v52 = vpack.c.bf16 %v1300_v15, %v1298_v19  ;;  %v1364_v45 = vpack.c.bf16 %v1332_v13, %v1330_v9 }
 0x1d5   : > { %v1349_v12 = vpack.c.bf16 %v1301_v33, %v1299_v55  ;;  %v1365_v56 = vpack.c.bf16 %v1333_v30, %v1331_v57 }
 0x1d7   : > { %1874 = vmatprep.mubr.bf16.mxu1 %v1349_v12  ;;  %2067 = vmatprep.mubr.bf16.mxu0 %v1349_v12 }
 0x1d8   : > { %1875 = vmatmul.mubr.bf16.gmra.mrb[60].mxu1 %v1348_v52  ;;  %2068 = vmatmul.mubr.bf16.gmra.mrb[60].mxu0 %v1348_v52 }
 0x1d9   : > { %1884 = vmatprep.mubr.bf16.mxu1 %v4015_v8  ;;  %2077 = vmatprep.mubr.bf16.mxu0 %v4015_v8  ;;  %v762_v8 = vmul.f32 0.00390625, %v670_v31 }
 0x1e0   : > { %1885 = vmatmul.mubr.bf16.gmra.mrb[64].mxu1 %v4013_v39  ;;  %2078 = vmatmul.mubr.bf16.gmra.mrb[64].mxu0 %v4013_v39  ;;  %v667_v39 = vpop.xlane.xlu0 %666 }
 0x1e1   : > { %1894 = vmatprep.mubr.bf16.mxu1 %v4027_v16  ;;  %2087 = vmatprep.mubr.bf16.mxu0 %v4027_v16  ;;  %v761_v62 = vmul.f32 0.00390625, %v667_v39 }
 0x1e3   : > { %v793_v16 = vadd.f32 1e-05, %v761_v62 }
 0x1e5   : > { %2804 = vrsqrt.f32 %v793_v16 }
 0x1e8   : > { %1895 = vmatmul.mubr.bf16.gmra.mrb[68].mxu1 %v4025_v54  ;;  %2088 = vmatmul.mubr.bf16.gmra.mrb[68].mxu0 %v4025_v54  ;;  %v673_v54 = vpop.xlane.xlu0 %672 }
 0x1e9   : > { %1904 = vmatprep.mubr.bf16.mxu1 %v4039_v60  ;;  %2097 = vmatprep.mubr.bf16.mxu0 %v4039_v60  ;;  %v794_v60 = vadd.f32 1e-05, %v762_v8 }
 0x1eb   : > { %2806 = vrsqrt.f32 %v794_v60 }
 0x1ef   : > { %v2805_v5 = vpop.eup %2804 }
 0x1f0   : > { %1905 = vmatmul.mubr.bf16.gmra.mrb[72].mxu1 %v4037_v35  ;;  %2098 = vmatmul.mubr.bf16.gmra.mrb[72].mxu0 %v4037_v35  ;;  %v676_v35 = vpop.xlane.xlu1 %675  ;;  %v857_v30 = vmul.f32 %v2805_v5, %v3671_v17  ;;  %v858_v39 = vmul.f32 %v2805_v5, %v3674_v36 }
 0x1f1   : > { %1914 = vmatprep.mubr.bf16.mxu1 %v4051_v1  ;;  %2107 = vmatprep.mubr.bf16.mxu0 %v4051_v1  ;;  %v763_v1 = vmul.f32 0.00390625, %v673_v54 }
 0x1f5   : > { %v2807_v19 = vpop.eup %2806 }
 0x1f8   : > { %1915 = vmatmul.mubr.bf16.gmra.mrb[76].mxu1 %v4049_v63  ;;  %2108 = vmatmul.mubr.bf16.gmra.mrb[76].mxu0 %v4049_v63  ;;  %v679_v63 = vpop.xlane.xlu0 %678 }
 0x1f9   : > { %1924 = vmatprep.mubr.bf16.mxu1 %v4063_v51  ;;  %2117 = vmatprep.mubr.bf16.mxu0 %v4063_v51  ;;  %v682_v51 = vpop.xlane.xlu1 %681 }
 0x1fc   : > { %v685_v59 = vpop.xlane.xlu0 %684 }
 0x1fd   : > { %v767_v32 = vmul.f32 0.00390625, %v685_v59  ;;  %v688_v24 = vpop.xlane.xlu1 %687 }
 0x1fe   : > { %v768_v7 = vmul.f32 0.00390625, %v688_v24 }
 0x1ff   : > { %v799_v33 = vadd.f32 1e-05, %v767_v32 }
 0x200   : > { %1925 = vmatmul.mubr.bf16.gmra.mrb[80].mxu1 %v4061_v47  ;;  %2118 = vmatmul.mubr.bf16.gmra.mrb[80].mxu0 %v4061_v47  ;;  %v764_v47 = vmul.f32 0.00390625, %v676_v35  ;;  %v691_v57 = vpop.xlane.xlu0 %690  ;;  %v859_v35 = vmul.f32 %v2807_v19, %v3691_v37 }
 0x201   : > { %1934 = vmatprep.mubr.bf16.mxu1 %v4075_v44  ;;  %2127 = vmatprep.mubr.bf16.mxu0 %v4075_v44  ;;  %v765_v44 = vmul.f32 0.00390625, %v679_v63 }
 0x203   : > { %v797_v26 = vadd.f32 1e-05, %v765_v44 }
 0x204   : > { %v697_v32 = vpop.xlane.xlu0 %696 }
 0x208   : > { %1935 = vmatmul.mubr.bf16.gmra.mrb[84].mxu1 %v4073_v29  ;;  %2128 = vmatmul.mubr.bf16.gmra.mrb[84].mxu0 %v4073_v29  ;;  %v795_v29 = vadd.f32 1e-05, %v763_v1 }
 0x209   : > { %1944 = vmatprep.mubr.bf16.mxu1 %v1363_v41  ;;  %2137 = vmatprep.mubr.bf16.mxu0 %v1363_v41  ;;  %v1430_v41 = vld [vmem:[%s4454_s5] sm:$0xf] }
 0x20a   : > { %2808 = vrsqrt.f32 %v795_v29  ;;  %v4128_v25 = vrot.slane %v1430_v41, %v4634_v6  ;;  %v4132_v42 = vrot.slane %v1430_v41, %v4635_v21  ;;  %v4134_v46 = vrot.slane %v1430_v41, %v1442_v27 }
 0x20b   : > { %v4136_v55 = vrot.slane %v1430_v41, %v1446_v34  ;;  %v769_v29 = vmul.f32 0.00390625, %v691_v57  ;;  %v800_v41 = vadd.f32 1e-05, %v768_v7 }
 0x20d   : > { %v801_v24 = vadd.f32 1e-05, %v769_v29 }
 0x210   : > { %1945 = vmatmul.mubr.bf16.gmra.mrb[88].mxu1 %v4085_v38  ;;  %2138 = vmatmul.mubr.bf16.gmra.mrb[88].mxu0 %v4085_v38  ;;  %v766_v38 = vmul.f32 0.00390625, %v682_v51  ;;  %v860_v51 = vmul.f32 %v2807_v19, %v3694_v14 }
 0x211   : > { %1954 = vmatprep.mubr.bf16.mxu1 %v1365_v56  ;;  %2147 = vmatprep.mubr.bf16.mxu0 %v1365_v56  ;;  %v796_v56 = vadd.f32 1e-05, %v764_v47 }
 0x212   : > { %v798_v9 = vadd.f32 1e-05, %v766_v38 }
 0x213   : > { %2810 = vrsqrt.f32 %v796_v56 }
 0x214   : > { %2812 = vrsqrt.f32 %v797_v26  ;;  %v2809_v38 = vpop.eup %2808  ;;  %v694_v26 = vpop.xlane.xlu1 %693 }
 0x215   : > { %2814 = vrsqrt.f32 %v798_v9  ;;  %v861_v57 = vmul.f32 %v2809_v38, %v3677_v28 }
 0x216   : > { %2816 = vrsqrt.f32 %v799_v33 }
 0x217   : > { %2818 = vrsqrt.f32 %v800_v41 }
 0x218   : > { %1955 = vmatmul.mubr.bf16.gmra.mrb[92].mxu1 %v1364_v45  ;;  %2148 = vmatmul.mubr.bf16.gmra.mrb[92].mxu0 %v1364_v45  ;;  %2820 = vrsqrt.f32 %v801_v24 }
 0x21d   : > { %v2811_v6 = vpop.eup %2810 }
 0x273   : > { %v1806_v15 = vpop.f32.mrb[32].mxu1  ;;  %v1999_v13 = vpop.f32.mrb[32].mxu0 }
 0x274   : > { %v1807_v52 = vadd.f32 %v1806_v15, %v4128_v25  ;;  %v1808_v45 = vpop.f32.mrb[33].mxu1  ;;  %v2001_v12 = vpop.f32.mrb[33].mxu0  ;;  %v2000_v16 = vadd.f32 %v1999_v13, %v4134_v46 }
 0x275   : > { %v1809_v31 = vadd.f32 %v1808_v45, %v4132_v42  ;;  %v1810_v62 = vpop.f32.mrb[34].mxu1  ;;  %v2003_v8 = vpop.f32.mrb[34].mxu0  ;;  %v2002_v47 = vadd.f32 %v2001_v12, %v4136_v55 }
 0x276   : > { %v2158_v54 = vmul.f32 %v1807_v52, %v857_v30  ;;  %v1811_v60 = vadd.f32 %v1810_v62, %v4128_v25  ;;  %v1812_v17 = vpop.f32.mrb[35].mxu1  ;;  %v2005_v63 = vpop.f32.mrb[35].mxu0  ;;  %v2004_v56 = vadd.f32 %v2003_v8, %v4134_v46  ;;  %v770_v30 = vmul.f32 0.00390625, %v694_v26 }
 0x277   : > { %v2159_v1 = vmul.f32 %v1809_v31, %v858_v39  ;;  %v1813_v36 = vadd.f32 %v1812_v17, %v4132_v42  ;;  %v2006_v34 = vadd.f32 %v2005_v63, %v4136_v55  ;;  %v862_v52 = vmul.f32 %v2809_v38, %v3680_v43  ;;  %v2813_v39 = vpop.eup %2812 }
 0x278   : > { %v2222_v44 = vadd.f32 %v2158_v54, %v2000_v16  ;;  %v2160_v59 = vmul.f32 %v1811_v60, %v859_v35  ;;  %v863_v62 = vmul.f32 %v2811_v6, %v3697_v49  ;;  %v2815_v16 = vpop.eup %2814  ;;  %v864_v60 = vmul.f32 %v2811_v6, %v3700_v50 }
 0x279   : > { %v2223_v37 = vadd.f32 %v2159_v1, %v2002_v47  ;;  %v2161_v27 = vmul.f32 %v1813_v36, %v860_v51  ;;  %v771_v63 = vmul.f32 0.00390625, %v697_v32  ;;  %v802_v51 = vadd.f32 1e-05, %v770_v30 }
 0x27a   : > { %2286 = vst [vmem:[%s4152_s16] sm:$0xff] %v2222_v44  ;;  %v2224_v14 = vadd.f32 %v2160_v59, %v2004_v56  ;;  %v700_v59 = vpop.xlane.xlu1 %699  ;;  %v703_v56 = vpop.xlane.xlu0 %702 }
 0x27b   : > { %2287 = vst [vmem:[%s4152_s16 + $0x8] sm:$0xff] %v2223_v37  ;;  %v2225_v5 = vadd.f32 %v2161_v27, %v2006_v34  ;;  %v1816_v9 = vpop.f32.mrb[36].mxu1  ;;  %v2009_v21 = vpop.f32.mrb[36].mxu0  ;;  %v803_v27 = vadd.f32 1e-05, %v771_v63  ;;  %v865_v34 = vmul.f32 %v2813_v39, %v3711_v22  ;;  %2822 = vrsqrt.f32 %v802_v51 }
 0x27c   : > { %2288 = vst [vmem:[%s4152_s16 + $0x10] sm:$0xff] %v2224_v14  ;;  %v1817_v19 = vadd.f32 %v1816_v9, %v4128_v25  ;;  %v1818_v15 = vpop.f32.mrb[37].mxu1  ;;  %v2011_v13 = vpop.f32.mrb[37].mxu0  ;;  %v2010_v33 = vadd.f32 %v2009_v21, %v4134_v46  ;;  %v772_v6 = vmul.f32 0.00390625, %v700_v59 }
 0x27d   : > { %2289 = vst [vmem:[%s4152_s16 + $0x18] sm:$0xff] %v2225_v5  ;;  %v1819_v45 = vadd.f32 %v1818_v15, %v4132_v42  ;;  %v1820_v12 = vpop.f32.mrb[38].mxu1  ;;  %v2013_v7 = vpop.f32.mrb[38].mxu0  ;;  %v2012_v43 = vadd.f32 %v2011_v13, %v4136_v55  ;;  %v866_v5 = vmul.f32 %v2813_v39, %v3714_v3  ;;  %v867_v13 = vmul.f32 %v2815_v16, %v3717_v48 }
 0x27e   : > { %v2162_v31 = vmul.f32 %v1817_v19, %v861_v57  ;;  %v1821_v28 = vadd.f32 %v1820_v12, %v4128_v25  ;;  %v1822_v8 = vpop.f32.mrb[39].mxu1  ;;  %v2015_v54 = vpop.f32.mrb[39].mxu0  ;;  %v2014_v49 = vadd.f32 %v2013_v7, %v4134_v46  ;;  %v868_v7 = vmul.f32 %v2815_v16, %v3720_v53 }
 0x27f   : > { %v2163_v35 = vmul.f32 %v1819_v45, %v862_v52  ;;  %v1823_v17 = vadd.f32 %v1822_v8, %v4132_v42  ;;  %v2016_v44 = vadd.f32 %v2015_v54, %v4136_v55  ;;  %v2817_v19 = vpop.eup %2816  ;;  %2824 = vrsqrt.f32 %v803_v27 }
 0x280   : > { %v2226_v1 = vadd.f32 %v2162_v31, %v2010_v33  ;;  %v2164_v47 = vmul.f32 %v1821_v28, %v863_v62  ;;  %v2819_v45 = vpop.eup %2818  ;;  %v773_v31 = vmul.f32 0.00390625, %v703_v56  ;;  %v804_v28 = vadd.f32 1e-05, %v772_v6 }
 0x281   : > { %v2227_v36 = vadd.f32 %v2163_v35, %v2012_v43  ;;  %v2165_v29 = vmul.f32 %v1823_v17, %v864_v60  ;;  %v706_v43 = vpop.xlane.xlu1 %705  ;;  %v709_v60 = vpop.xlane.xlu0 %708  ;;  %v871_v27 = vmul.f32 %v2819_v45, %v3737_v40  ;;  %v872_v6 = vmul.f32 %v2819_v45, %v3740_v61 }
 0x282   : > { %2290 = vst [vmem:[%s4152_s16 + $0x20] sm:$0xff] %v2226_v1  ;;  %v2228_v38 = vadd.f32 %v2164_v47, %v2014_v49  ;;  %v805_v1 = vadd.f32 1e-05, %v773_v31  ;;  %v869_v47 = vmul.f32 %v2817_v19, %v3731_v23  ;;  %2826 = vrsqrt.f32 %v804_v28 }
 0x283   : > { %2291 = vst [vmem:[%s4152_s16 + $0x28] sm:$0xff] %v2227_v36  ;;  %v2229_v50 = vadd.f32 %v2165_v29, %v2016_v44  ;;  %v1826_v41 = vpop.f32.mrb[40].mxu1  ;;  %v2019_v37 = vpop.f32.mrb[40].mxu0  ;;  %v774_v29 = vmul.f32 0.00390625, %v706_v43  ;;  %v870_v44 = vmul.f32 %v2817_v19, %v3734_v2 }
 0x284   : > { %2292 = vst [vmem:[%s4152_s16 + $0x30] sm:$0xff] %v2228_v38  ;;  %v1827_v26 = vadd.f32 %v1826_v41, %v4128_v25  ;;  %v1828_v32 = vpop.f32.mrb[41].mxu1  ;;  %v2021_v14 = vpop.f32.mrb[41].mxu0  ;;  %v2020_v24 = vadd.f32 %v2019_v37, %v4134_v46  ;;  %2828 = vrsqrt.f32 %v805_v1 }
 0x285   : > { %2293 = vst [vmem:[%s4152_s16 + $0x38] sm:$0xff] %v2229_v50  ;;  %v1829_v9 = vadd.f32 %v1828_v32, %v4132_v42  ;;  %v1830_v21 = vpop.f32.mrb[42].mxu1  ;;  %v2023_v57 = vpop.f32.mrb[42].mxu0  ;;  %v2022_v3 = vadd.f32 %v2021_v14, %v4136_v55  ;;  %v806_v19 = vadd.f32 1e-05, %v774_v29 }
 0x286   : > { %v2166_v15 = vmul.f32 %v1827_v26, %v865_v34  ;;  %v1831_v22 = vadd.f32 %v1830_v21, %v4128_v25  ;;  %v1832_v30 = vpop.f32.mrb[43].mxu1  ;;  %v2025_v52 = vpop.f32.mrb[43].mxu0  ;;  %v2024_v48 = vadd.f32 %v2023_v57, %v4134_v46 }
 0x287   : > { %v2167_v12 = vmul.f32 %v1829_v9, %v866_v5  ;;  %v1833_v39 = vadd.f32 %v1832_v30, %v4132_v42  ;;  %v2026_v35 = vadd.f32 %v2025_v52, %v4136_v55  ;;  %v2821_v50 = vpop.eup %2820  ;;  %v775_v9 = vmul.f32 0.00390625, %v709_v60  ;;  %v715_v30 = vpop.xlane.xlu0 %714 }
 0x288   : > { %v2230_v33 = vadd.f32 %v2166_v15, %v2020_v24  ;;  %v2168_v62 = vmul.f32 %v1831_v22, %v867_v13  ;;  %v2823_v32 = vpop.eup %2822  ;;  %v712_v22 = vpop.xlane.xlu1 %711  ;;  %2830 = vrsqrt.f32 %v806_v19 }
 0x289   : > { %v2231_v8 = vadd.f32 %v2167_v12, %v2022_v3  ;;  %v2169_v54 = vmul.f32 %v1833_v39, %v868_v7  ;;  %v807_v3 = vadd.f32 1e-05, %v775_v9  ;;  %v873_v7 = vmul.f32 %v2821_v50, %v3751_v20 }
 0x28a   : > { %2294 = vst [vmem:[%s4152_s16 + $0x40] sm:$0xff] %v2230_v33  ;;  %v2232_v17 = vadd.f32 %v2168_v62, %v2024_v48  ;;  %v776_v62 = vmul.f32 0.00390625, %v712_v22  ;;  %v874_v48 = vmul.f32 %v2821_v50, %v3754_v4 }
 0x28b   : > { %2295 = vst [vmem:[%s4152_s16 + $0x48] sm:$0xff] %v2231_v8  ;;  %v2233_v53 = vadd.f32 %v2169_v54, %v2026_v35  ;;  %v1836_v16 = vpop.f32.mrb[44].mxu1  ;;  %v2029_v63 = vpop.f32.mrb[44].mxu0  ;;  %2832 = vrsqrt.f32 %v807_v3 }
 0x28c   : > { %2296 = vst [vmem:[%s4152_s16 + $0x50] sm:$0xff] %v2232_v17  ;;  %v1837_v49 = vadd.f32 %v1836_v16, %v4128_v25  ;;  %v1838_v51 = vpop.f32.mrb[45].mxu1  ;;  %v2031_v36 = vpop.f32.mrb[45].mxu0  ;;  %v2030_v37 = vadd.f32 %v2029_v63, %v4134_v46  ;;  %v875_v17 = vmul.f32 %v2823_v32, %v3757_v10 }
 0x28d   : > { %2297 = vst [vmem:[%s4152_s16 + $0x58] sm:$0xff] %v2233_v53  ;;  %v1839_v59 = vadd.f32 %v1838_v51, %v4132_v42  ;;  %v1840_v56 = vpop.f32.mrb[46].mxu1  ;;  %v2033_v38 = vpop.f32.mrb[46].mxu0  ;;  %v2032_v2 = vadd.f32 %v2031_v36, %v4136_v55  ;;  %v777_v51 = vmul.f32 0.00390625, %v715_v30 }
 0x28e   : > { %v2170_v41 = vmul.f32 %v1837_v49, %v869_v47  ;;  %v1841_v23 = vadd.f32 %v1840_v56, %v4128_v25  ;;  %v1842_v34 = vpop.f32.mrb[47].mxu1  ;;  %v2035_v26 = vpop.f32.mrb[47].mxu0  ;;  %v2034_v40 = vadd.f32 %v2033_v38, %v4134_v46  ;;  %v876_v47 = vmul.f32 %v2823_v32, %v3760_v11 }
 0x28f   : > { %v2171_v14 = vmul.f32 %v1839_v59, %v870_v44  ;;  %v1843_v5 = vadd.f32 %v1842_v34, %v4132_v42  ;;  %v2036_v13 = vadd.f32 %v2035_v26, %v4136_v55  ;;  %v2825_v35 = vpop.eup %2824  ;;  %v808_v44 = vadd.f32 1e-05, %v776_v62  ;;  %v718_v50 = vpop.xlane.xlu1 %717 }
 0x290   : > { %v2234_v21 = vadd.f32 %v2170_v41, %v2030_v37  ;;  %v2172_v57 = vmul.f32 %v1841_v23, %v871_v27  ;;  %v2827_v63 = vpop.eup %2826  ;;  %v721_v41 = vpop.xlane.xlu0 %720  ;;  %v809_v34 = vadd.f32 1e-05, %v777_v51  ;;  %v877_v26 = vmul.f32 %v2825_v35, %v3771_v0 }
 0x291   : > { %v2235_v15 = vadd.f32 %v2171_v14, %v2032_v2  ;;  %v2173_v24 = vmul.f32 %v1843_v5, %v872_v6  ;;  %2834 = vrsqrt.f32 %v808_v44  ;;  %v778_v6 = vmul.f32 0.00390625, %v718_v50 }
 0x292   : > { %2298 = vst [vmem:[%s4152_s16 + $0x60] sm:$0xff] %v2234_v21  ;;  %v2236_v52 = vadd.f32 %v2172_v57, %v2034_v40  ;;  %v878_v5 = vmul.f32 %v2825_v35, %v3774_v58  ;;  %v2829_v40 = vpop.eup %2828  ;;  %v779_v3 = vmul.f32 0.00390625, %v721_v41  ;;  %2836 = vrsqrt.f32 %v809_v34  ;;  %v4640_v34 = vld [vmem:[#allocation41_spill] sm:$0xff] }
 0x293   : > { %2299 = vst [vmem:[%s4152_s16 + $0x68] sm:$0xff] %v2235_v15  ;;  %v2237_v61 = vadd.f32 %v2173_v24, %v2036_v13  ;;  %v1846_v45 = vpop.f32.mrb[48].mxu1  ;;  %v2039_v12 = vpop.f32.mrb[48].mxu0  ;;  %v879_v24 = vmul.f32 %v2827_v63, %v3777_v18 }
 0x294   : > { %2300 = vst [vmem:[%s4152_s16 + $0x70] sm:$0xff] %v2236_v52  ;;  %v1847_v39 = vadd.f32 %v1846_v45, %v4128_v25  ;;  %v1848_v31 = vpop.f32.mrb[49].mxu1  ;;  %v2041_v33 = vpop.f32.mrb[49].mxu0  ;;  %v2040_v60 = vadd.f32 %v2039_v12, %v4134_v46 }
 0x295   : > { %2301 = vst [vmem:[%s4152_s16 + $0x78] sm:$0xff] %v2237_v61  ;;  %v1849_v28 = vadd.f32 %v1848_v31, %v4132_v42  ;;  %v1850_v8 = vpop.f32.mrb[50].mxu1  ;;  %v2043_v54 = vpop.f32.mrb[50].mxu0  ;;  %v2042_v4 = vadd.f32 %v2041_v33, %v4136_v55  ;;  %v4636_v61 = vld [vmem:[#allocation37_spill] sm:$0xff]  ;;  %v810_v31 = vadd.f32 1e-05, %v778_v6 }
 0x296   : > { %v2174_v43 = vmul.f32 %v1847_v39, %v873_v7  ;;  %v1851_v20 = vadd.f32 %v1850_v8, %v4128_v25  ;;  %v1852_v53 = vpop.f32.mrb[51].mxu1  ;;  %v2045_v16 = vpop.f32.mrb[51].mxu0  ;;  %v2044_v10 = vadd.f32 %v2043_v54, %v4134_v46  ;;  %v880_v45 = vmul.f32 %v2827_v63, %v4636_v61 }
 0x297   : > { %v2175_v1 = vmul.f32 %v1849_v28, %v874_v48  ;;  %v1853_v49 = vadd.f32 %v1852_v53, %v4132_v42  ;;  %v2046_v38 = vadd.f32 %v2045_v16, %v4136_v55  ;;  %v2831_v30 = vpop.eup %2830  ;;  %v724_v28 = vpop.xlane.xlu1 %723  ;;  %2838 = vrsqrt.f32 %v810_v31 }
 0x298   : > { %v2238_v36 = vadd.f32 %v2174_v43, %v2040_v60  ;;  %v2176_v29 = vmul.f32 %v1851_v20, %v875_v17  ;;  %v727_v8 = vpop.xlane.xlu0 %726  ;;  %v811_v17 = vadd.f32 1e-05, %v779_v3  ;;  %v4637_v20 = vld [vmem:[#allocation38_spill] sm:$0xff] }
 0x299   : > { %v2239_v59 = vadd.f32 %v2175_v1, %v2042_v4  ;;  %v2177_v56 = vmul.f32 %v1853_v49, %v876_v47  ;;  %v881_v53 = vmul.f32 %v2829_v40, %v4637_v20  ;;  %v780_v4 = vmul.f32 0.00390625, %v724_v28  ;;  %v4638_v47 = vld [vmem:[#allocation39_spill] sm:$0xff] }
 0x29a   : > { %2302 = vst [vmem:[%s4152_s16 + $0x80] sm:$0xff] %v2238_v36  ;;  %v2240_v37 = vadd.f32 %v2176_v29, %v2044_v10  ;;  %v882_v49 = vmul.f32 %v2829_v40, %v4638_v47  ;;  %v2833_v10 = vpop.eup %2832  ;;  %2840 = vrsqrt.f32 %v811_v17 }
 0x29b   : > { %2303 = vst [vmem:[%s4152_s16 + $0x88] sm:$0xff] %v2239_v59  ;;  %v2241_v11 = vadd.f32 %v2177_v56, %v2046_v38  ;;  %v1856_v27 = vpop.f32.mrb[52].mxu1  ;;  %v2049_v23 = vpop.f32.mrb[52].mxu0  ;;  %v4639_v56 = vld [vmem:[#allocation40_spill] sm:$0xff] }
 0x29c   : > { %2304 = vst [vmem:[%s4152_s16 + $0x90] sm:$0xff] %v2240_v37  ;;  %v1857_v32 = vadd.f32 %v1856_v27, %v4128_v25  ;;  %v1858_v14 = vpop.f32.mrb[53].mxu1  ;;  %v2051_v2 = vpop.f32.mrb[53].mxu0  ;;  %v2050_v15 = vadd.f32 %v2049_v23, %v4134_v46  ;;  %v883_v38 = vmul.f32 %v2831_v30, %v4639_v56 }
 0x29d   : > { %2305 = vst [vmem:[%s4152_s16 + $0x98] sm:$0xff] %v2241_v11  ;;  %v1859_v9 = vadd.f32 %v1858_v14, %v4132_v42  ;;  %v1860_v21 = vpop.f32.mrb[54].mxu1  ;;  %v2053_v57 = vpop.f32.mrb[54].mxu0  ;;  %v2052_v58 = vadd.f32 %v2051_v2, %v4136_v55  ;;  %v781_v14 = vmul.f32 0.00390625, %v727_v8  ;;  %v4643_v8 = vld [vmem:[#allocation44_spill] sm:$0xff] }
 0x29e   : > { %v2178_v19 = vmul.f32 %v1857_v32, %v877_v26  ;;  %v1861_v0 = vadd.f32 %v1860_v21, %v4128_v25  ;;  %v1862_v13 = vpop.f32.mrb[55].mxu1  ;;  %v2055_v22 = vpop.f32.mrb[55].mxu0  ;;  %v2054_v18 = vadd.f32 %v2053_v57, %v4134_v46  ;;  %v884_v26 = vmul.f32 %v2831_v30, %v4640_v34 }
 0x29f   : > { %v2179_v52 = vmul.f32 %v1859_v9, %v878_v5  ;;  %v1863_v12 = vadd.f32 %v1862_v13, %v4132_v42  ;;  %v2056_v48 = vadd.f32 %v2055_v22, %v4136_v55  ;;  %v2835_v11 = vpop.eup %2834  ;;  %v812_v9 = vadd.f32 1e-05, %v780_v4 }
 0x2a0   : > { %v2242_v7 = vadd.f32 %v2178_v19, %v2050_v15  ;;  %v2180_v39 = vmul.f32 %v1861_v0, %v879_v24  ;;  %v730_v19 = vpop.xlane.xlu1 %729  ;;  %v733_v15 = vpop.xlane.xlu0 %732  ;;  %v813_v30 = vadd.f32 1e-05, %v781_v14 }
 0x2a1   : > { %v2243_v33 = vadd.f32 %v2179_v52, %v2052_v58  ;;  %v2181_v62 = vmul.f32 %v1863_v12, %v880_v45  ;;  %v4641_v52 = vld [vmem:[#allocation42_spill] sm:$0xff]  ;;  %2842 = vrsqrt.f32 %v812_v9  ;;  %v782_v3 = vmul.f32 0.00390625, %v730_v19 }
 0x2a2   : > { %2306 = vst [vmem:[%s4152_s16 + $0xa0] sm:$0xff] %v2242_v7  ;;  %v2244_v54 = vadd.f32 %v2180_v39, %v2054_v18  ;;  %v885_v58 = vmul.f32 %v2833_v10, %v4641_v52  ;;  %v4642_v7 = vld [vmem:[#allocation43_spill] sm:$0xff]  ;;  %v783_v4 = vmul.f32 0.00390625, %v733_v15  ;;  %2844 = vrsqrt.f32 %v813_v30  ;;  %v4647_v15 = vld [vmem:[#allocation48_spill] sm:$0xff] }
 0x2a3   : > { %2307 = vst [vmem:[%s4152_s16 + $0xa8] sm:$0xff] %v2243_v33  ;;  %v2245_v35 = vadd.f32 %v2181_v62, %v2056_v48  ;;  %v1866_v43 = vpop.f32.mrb[56].mxu1  ;;  %v2059_v60 = vpop.f32.mrb[56].mxu0  ;;  %v886_v39 = vmul.f32 %v2833_v10, %v4642_v7 }
 0x2a4   : > { %2308 = vst [vmem:[%s4152_s16 + $0xb0] sm:$0xff] %v2244_v54  ;;  %v1867_v16 = vadd.f32 %v1866_v43, %v4128_v25  ;;  %v1868_v63 = vpop.f32.mrb[57].mxu1  ;;  %v2061_v1 = vpop.f32.mrb[57].mxu0  ;;  %v2060_v59 = vadd.f32 %v2059_v60, %v4134_v46  ;;  %v887_v54 = vmul.f32 %v2835_v11, %v4643_v8 }
 0x2a5   : > { %2309 = vst [vmem:[%s4152_s16 + $0xb8] sm:$0xff] %v2245_v35  ;;  %v1869_v51 = vadd.f32 %v1868_v63, %v4132_v42  ;;  %v1870_v36 = vpop.f32.mrb[58].mxu1  ;;  %v2063_v29 = vpop.f32.mrb[58].mxu0  ;;  %v2062_v23 = vadd.f32 %v2061_v1, %v4136_v55 }
 0x2a6   : > { %v2182_v44 = vmul.f32 %v1867_v16, %v881_v53  ;;  %v1871_v50 = vadd.f32 %v1870_v36, %v4128_v25  ;;  %v1872_v41 = vpop.f32.mrb[59].mxu1  ;;  %v2065_v37 = vpop.f32.mrb[59].mxu0  ;;  %v2064_v5 = vadd.f32 %v2063_v29, %v4134_v46  ;;  %v4644_v16 = vld [vmem:[#allocation45_spill] sm:$0xff]  ;;  %v814_v36 = vadd.f32 1e-05, %v782_v3 }
 0x2a7   : > { %v2183_v27 = vmul.f32 %v1869_v51, %v882_v49  ;;  %v1873_v32 = vadd.f32 %v1872_v41, %v4132_v42  ;;  %v2066_v40 = vadd.f32 %v2065_v37, %v4136_v55  ;;  %v2837_v62 = vpop.eup %2836  ;;  %v888_v63 = vmul.f32 %v2835_v11, %v4644_v16  ;;  %v739_v56 = vpop.xlane.xlu0 %738 }
 0x2a8   : > { %v2246_v2 = vadd.f32 %v2182_v44, %v2060_v59  ;;  %v2184_v6 = vmul.f32 %v1871_v50, %v883_v38  ;;  %v2839_v17 = vpop.eup %2838  ;;  %v736_v59 = vpop.xlane.xlu1 %735  ;;  %v815_v11 = vadd.f32 1e-05, %v783_v4  ;;  %2846 = vrsqrt.f32 %v814_v36 }
 0x2a9   : > { %v2247_v21 = vadd.f32 %v2183_v27, %v2062_v23  ;;  %v2185_v57 = vmul.f32 %v1873_v32, %v884_v26  ;;  %v4645_v27 = vld [vmem:[#allocation46_spill] sm:$0xff]  ;;  %v784_v14 = vmul.f32 0.00390625, %v736_v59  ;;  %v785_v3 = vmul.f32 0.00390625, %v739_v56  ;;  %v4651_v56 = vld [vmem:[#allocation52_spill] sm:$0xff] }
 0x2aa   : > { %2310 = vst [vmem:[%s4152_s16 + $0xc0] sm:$0xff] %v2246_v2  ;;  %v2248_v24 = vadd.f32 %v2184_v6, %v2064_v5  ;;  %v889_v23 = vmul.f32 %v2837_v62, %v4645_v27  ;;  %v4646_v2 = vld [vmem:[#allocation47_spill] sm:$0xff]  ;;  %2848 = vrsqrt.f32 %v815_v11 }
 0x2ab   : > { %2311 = vst [vmem:[%s4152_s16 + $0xc8] sm:$0xff] %v2247_v21  ;;  %v2249_v0 = vadd.f32 %v2185_v57, %v2066_v40  ;;  %v1876_v13 = vpop.f32.mrb[60].mxu1  ;;  %v2069_v22 = vpop.f32.mrb[60].mxu0  ;;  %v890_v6 = vmul.f32 %v2837_v62, %v4646_v2 }
 0x2ac   : > { %2312 = vst [vmem:[%s4152_s16 + $0xd0] sm:$0xff] %v2248_v24  ;;  %v1877_v61 = vadd.f32 %v1876_v13, %v4128_v25  ;;  %v1878_v45 = vpop.f32.mrb[61].mxu1  ;;  %v2071_v12 = vpop.f32.mrb[61].mxu0  ;;  %v2070_v28 = vadd.f32 %v2069_v22, %v4134_v46  ;;  %v891_v24 = vmul.f32 %v2839_v17, %v4647_v15 }
 0x2ad   : > { %2313 = vst [vmem:[%s4152_s16 + $0xd8] sm:$0xff] %v2249_v0  ;;  %v1879_v18 = vadd.f32 %v1878_v45, %v4132_v42  ;;  %v1880_v31 = vpop.f32.mrb[62].mxu1  ;;  %v2073_v33 = vpop.f32.mrb[62].mxu0  ;;  %v2072_v53 = vadd.f32 %v2071_v12, %v4136_v55 }
 0x2ae   : > { %v2186_v48 = vmul.f32 %v1877_v61, %v885_v58  ;;  %v1881_v35 = vadd.f32 %v1880_v31, %v4128_v25  ;;  %v1882_v43 = vpop.f32.mrb[63].mxu1  ;;  %v2075_v60 = vpop.f32.mrb[63].mxu0  ;;  %v2074_v51 = vadd.f32 %v2073_v33, %v4134_v46  ;;  %v4648_v61 = vld [vmem:[#allocation49_spill] sm:$0xff]  ;;  %v816_v31 = vadd.f32 1e-05, %v784_v14 }
 0x2af   : > { %v2187_v20 = vmul.f32 %v1879_v18, %v886_v39  ;;  %v1883_v1 = vadd.f32 %v1882_v43, %v4132_v42  ;;  %v2076_v44 = vadd.f32 %v2075_v60, %v4136_v55  ;;  %v2841_v57 = vpop.eup %2840  ;;  %v892_v45 = vmul.f32 %v2839_v17, %v4648_v61  ;;  %v745_v8 = vpop.xlane.xlu0 %744 }
 0x2b0   : > { %v2250_v47 = vadd.f32 %v2186_v48, %v2070_v28  ;;  %v2188_v49 = vmul.f32 %v1881_v35, %v887_v54  ;;  %v2843_v30 = vpop.eup %2842  ;;  %v742_v28 = vpop.xlane.xlu1 %741  ;;  %v817_v17 = vadd.f32 1e-05, %v785_v3  ;;  %2850 = vrsqrt.f32 %v816_v31 }
 0x2b1   : > { %v2251_v29 = vadd.f32 %v2187_v20, %v2072_v53  ;;  %v2189_v10 = vmul.f32 %v1883_v1, %v888_v63  ;;  %v4649_v20 = vld [vmem:[#allocation50_spill] sm:$0xff]  ;;  %v786_v4 = vmul.f32 0.00390625, %v742_v28  ;;  %v787_v14 = vmul.f32 0.00390625, %v745_v8  ;;  %v4655_v8 = vld [vmem:[#allocation20_spill] sm:$0xff] }
 0x2b2   : > { %2314 = vst [vmem:[%s4152_s16 + $0xe0] sm:$0xff] %v2250_v47  ;;  %v2252_v38 = vadd.f32 %v2188_v49, %v2074_v51  ;;  %v893_v53 = vmul.f32 %v2841_v57, %v4649_v20  ;;  %v4650_v47 = vld [vmem:[#allocation51_spill] sm:$0xff]  ;;  %2852 = vrsqrt.f32 %v817_v17 }
 0x2b3   : > { %2315 = vst [vmem:[%s4152_s16 + $0xe8] sm:$0xff] %v2251_v29  ;;  %v2253_v50 = vadd.f32 %v2189_v10, %v2076_v44  ;;  %v1886_v41 = vpop.f32.mrb[64].mxu1  ;;  %v2079_v37 = vpop.f32.mrb[64].mxu0  ;;  %v894_v49 = vmul.f32 %v2841_v57, %v4650_v47 }
 0x2b4   : > { %2316 = vst [vmem:[%s4152_s16 + $0xf0] sm:$0xff] %v2252_v38  ;;  %v1887_v34 = vadd.f32 %v1886_v41, %v4128_v25  ;;  %v1888_v26 = vpop.f32.mrb[65].mxu1  ;;  %v2081_v32 = vpop.f32.mrb[65].mxu0  ;;  %v2080_v19 = vadd.f32 %v2079_v37, %v4134_v46  ;;  %v895_v38 = vmul.f32 %v2843_v30, %v4651_v56 }
 0x2b5   : > { %2317 = vst [vmem:[%s4152_s16 + $0xf8] sm:$0xff] %v2253_v50  ;;  %v1889_v5 = vadd.f32 %v1888_v26, %v4132_v42  ;;  %v1890_v9 = vpop.f32.mrb[66].mxu1  ;;  %v2083_v21 = vpop.f32.mrb[66].mxu0  ;;  %v2082_v58 = vadd.f32 %v2081_v32, %v4136_v55 }
 0x2b6   : > { %v2190_v40 = vmul.f32 %v1887_v34, %v889_v23  ;;  %v1891_v0 = vadd.f32 %v1890_v9, %v4128_v25  ;;  %v1892_v13 = vpop.f32.mrb[67].mxu1  ;;  %v2085_v22 = vpop.f32.mrb[67].mxu0  ;;  %v2084_v18 = vadd.f32 %v2083_v21, %v4134_v46  ;;  %v4652_v34 = vld [vmem:[#allocation17_spill] sm:$0xff]  ;;  %v818_v9 = vadd.f32 1e-05, %v786_v4 }
 0x2b7   : > { %v2191_v52 = vmul.f32 %v1889_v5, %v890_v6  ;;  %v1893_v12 = vadd.f32 %v1892_v13, %v4132_v42  ;;  %v2086_v48 = vadd.f32 %v2085_v22, %v4136_v55  ;;  %v2845_v10 = vpop.eup %2844  ;;  %v896_v26 = vmul.f32 %v2843_v30, %v4652_v34  ;;  %v751_v15 = vpop.xlane.xlu0 %750 }
 0x2b8   : > { %v2254_v7 = vadd.f32 %v2190_v40, %v2080_v19  ;;  %v2192_v39 = vmul.f32 %v1891_v0, %v891_v24  ;;  %v2847_v11 = vpop.eup %2846  ;;  %v748_v19 = vpop.xlane.xlu1 %747  ;;  %v819_v30 = vadd.f32 1e-05, %v787_v14  ;;  %2854 = vrsqrt.f32 %v818_v9  ;;  %v4658_v14 = vld [vmem:[#allocation23_spill] sm:$0xff] }
 0x2b9   : > { %v2255_v33 = vadd.f32 %v2191_v52, %v2082_v58  ;;  %v2193_v62 = vmul.f32 %v1893_v12, %v892_v45  ;;  %v4653_v52 = vld [vmem:[#allocation18_spill] sm:$0xff]  ;;  %v788_v3 = vmul.f32 0.00390625, %v748_v19  ;;  %v789_v4 = vmul.f32 0.00390625, %v751_v15  ;;  %v4659_v19 = vld [vmem:[#allocation24_spill] sm:$0xff] }
 0x2ba   : > { %2318 = vst [vmem:[%s4152_s16 + $0x100] sm:$0xff] %v2254_v7  ;;  %v2256_v54 = vadd.f32 %v2192_v39, %v2084_v18  ;;  %v897_v58 = vmul.f32 %v2845_v10, %v4653_v52  ;;  %v4654_v7 = vld [vmem:[#allocation19_spill] sm:$0xff]  ;;  %2856 = vrsqrt.f32 %v819_v30 }
 0x2bb   : > { %2319 = vst [vmem:[%s4152_s16 + $0x108] sm:$0xff] %v2255_v33  ;;  %v2257_v35 = vadd.f32 %v2193_v62, %v2086_v48  ;;  %v1896_v43 = vpop.f32.mrb[68].mxu1  ;;  %v2089_v60 = vpop.f32.mrb[68].mxu0  ;;  %v898_v39 = vmul.f32 %v2845_v10, %v4654_v7 }
 0x2bc   : > { %2320 = vst [vmem:[%s4152_s16 + $0x110] sm:$0xff] %v2256_v54  ;;  %v1897_v16 = vadd.f32 %v1896_v43, %v4128_v25  ;;  %v1898_v63 = vpop.f32.mrb[69].mxu1  ;;  %v2091_v1 = vpop.f32.mrb[69].mxu0  ;;  %v2090_v59 = vadd.f32 %v2089_v60, %v4134_v46  ;;  %v899_v54 = vmul.f32 %v2847_v11, %v4655_v8 }
 0x2bd   : > { %2321 = vst [vmem:[%s4152_s16 + $0x118] sm:$0xff] %v2257_v35  ;;  %v1899_v51 = vadd.f32 %v1898_v63, %v4132_v42  ;;  %v1900_v36 = vpop.f32.mrb[70].mxu1  ;;  %v2093_v29 = vpop.f32.mrb[70].mxu0  ;;  %v2092_v23 = vadd.f32 %v2091_v1, %v4136_v55 }
 0x2be   : > { %v2194_v44 = vmul.f32 %v1897_v16, %v893_v53  ;;  %v1901_v50 = vadd.f32 %v1900_v36, %v4128_v25  ;;  %v1902_v41 = vpop.f32.mrb[71].mxu1  ;;  %v2095_v37 = vpop.f32.mrb[71].mxu0  ;;  %v2094_v5 = vadd.f32 %v2093_v29, %v4134_v46  ;;  %v4656_v16 = vld [vmem:[#allocation21_spill] sm:$0xff]  ;;  %v820_v36 = vadd.f32 1e-05, %v788_v3 }
 0x2bf   : > { %v2195_v27 = vmul.f32 %v1899_v51, %v894_v49  ;;  %v1903_v32 = vadd.f32 %v1902_v41, %v4132_v42  ;;  %v2096_v40 = vadd.f32 %v2095_v37, %v4136_v55  ;;  %v2849_v62 = vpop.eup %2848  ;;  %v900_v63 = vmul.f32 %v2847_v11, %v4656_v16  ;;  %v757_v56 = vpop.xlane.xlu0 %756  ;;  %v4657_v11 = vld [vmem:[#allocation22_spill] sm:$0xff] }
 0x2c0   : > { %v2258_v2 = vadd.f32 %v2194_v44, %v2090_v59  ;;  %v2196_v6 = vmul.f32 %v1901_v50, %v895_v38  ;;  %v2851_v17 = vpop.eup %2850  ;;  %v754_v59 = vpop.xlane.xlu1 %753  ;;  %2858 = vrsqrt.f32 %v820_v36 }
 0x2c1   : > { %v2259_v21 = vadd.f32 %v2195_v27, %v2092_v23  ;;  %v2197_v57 = vmul.f32 %v1903_v32, %v896_v26  ;;  %v901_v27 = vmul.f32 %v2849_v62, %v4657_v11  ;;  %v821_v32 = vadd.f32 1e-05, %v789_v4 }
 0x2c2   : > { %2322 = vst [vmem:[%s4152_s16 + $0x120] sm:$0xff] %v2258_v2  ;;  %v2260_v24 = vadd.f32 %v2196_v6, %v2094_v5  ;;  %v902_v2 = vmul.f32 %v2849_v62, %v4658_v14  ;;  %v903_v15 = vmul.f32 %v2851_v17, %v4659_v19 }
 0x2c3   : > { %2323 = vst [vmem:[%s4152_s16 + $0x128] sm:$0xff] %v2259_v21  ;;  %v2261_v0 = vadd.f32 %v2197_v57, %v2096_v40  ;;  %v1906_v13 = vpop.f32.mrb[72].mxu1  ;;  %v2099_v22 = vpop.f32.mrb[72].mxu0  ;;  %2860 = vrsqrt.f32 %v821_v32 }
 0x2c4   : > { %2324 = vst [vmem:[%s4152_s16 + $0x130] sm:$0xff] %v2260_v24  ;;  %v1907_v61 = vadd.f32 %v1906_v13, %v4128_v25  ;;  %v1908_v45 = vpop.f32.mrb[73].mxu1  ;;  %v2101_v12 = vpop.f32.mrb[73].mxu0  ;;  %v2100_v28 = vadd.f32 %v2099_v22, %v4134_v46 }
 0x2c5   : > { %2325 = vst [vmem:[%s4152_s16 + $0x138] sm:$0xff] %v2261_v0  ;;  %v1909_v18 = vadd.f32 %v1908_v45, %v4132_v42  ;;  %v1910_v31 = vpop.f32.mrb[74].mxu1  ;;  %v2103_v33 = vpop.f32.mrb[74].mxu0  ;;  %v2102_v53 = vadd.f32 %v2101_v12, %v4136_v55  ;;  %v790_v12 = vmul.f32 0.00390625, %v754_v59 }
 0x2c6   : > { %v2198_v48 = vmul.f32 %v1907_v61, %v897_v58  ;;  %v1911_v35 = vadd.f32 %v1910_v31, %v4128_v25  ;;  %v1912_v43 = vpop.f32.mrb[75].mxu1  ;;  %v2105_v60 = vpop.f32.mrb[75].mxu0  ;;  %v2104_v51 = vadd.f32 %v2103_v33, %v4134_v46  ;;  %v4660_v58 = vld [vmem:[#allocation25_spill] sm:$0xff] }
 0x2c7   : > { %v2199_v20 = vmul.f32 %v1909_v18, %v898_v39  ;;  %v1913_v1 = vadd.f32 %v1912_v43, %v4132_v42  ;;  %v2106_v44 = vadd.f32 %v2105_v60, %v4136_v55  ;;  %v2853_v21 = vpop.eup %2852  ;;  %v904_v61 = vmul.f32 %v2851_v17, %v4660_v58  ;;  %v4661_v60 = vld [vmem:[#allocation26_spill] sm:$0xff] }
 0x2c8   : > { %v2262_v47 = vadd.f32 %v2198_v48, %v2100_v28  ;;  %v2200_v49 = vmul.f32 %v1911_v35, %v899_v54  ;;  %v2855_v22 = vpop.eup %2854  ;;  %v791_v18 = vmul.f32 0.00390625, %v757_v56  ;;  %v760_v48 = vpop.xlane.xlu1 %759  ;;  %v822_v43 = vadd.f32 1e-05, %v790_v12 }
 0x2c9   : > { %v2263_v29 = vadd.f32 %v2199_v20, %v2102_v53  ;;  %v2201_v10 = vmul.f32 %v1913_v1, %v900_v63  ;;  %v905_v17 = vmul.f32 %v2853_v21, %v4661_v60  ;;  %v4662_v1 = vld [vmem:[#allocation27_spill] sm:$0xff]  ;;  %v2857_v36 = vpop.eup %2856 }
 0x2ca   : > { %2326 = vst [vmem:[%s4152_s16 + $0x140] sm:$0xff] %v2262_v47  ;;  %v2264_v38 = vadd.f32 %v2200_v49, %v2104_v51  ;;  %v823_v63 = vadd.f32 1e-05, %v791_v18  ;;  %v906_v4 = vmul.f32 %v2853_v21, %v4662_v1  ;;  %2862 = vrsqrt.f32 %v822_v43 }
 0x2cb   : > { %2327 = vst [vmem:[%s4152_s16 + $0x148] sm:$0xff] %v2263_v29  ;;  %v2265_v50 = vadd.f32 %v2201_v10, %v2106_v44  ;;  %v1916_v41 = vpop.f32.mrb[76].mxu1  ;;  %v2109_v37 = vpop.f32.mrb[76].mxu0  ;;  %v4663_v44 = vld [vmem:[#allocation28_spill] sm:$0xff] }
 0x2cc   : > { %2328 = vst [vmem:[%s4152_s16 + $0x150] sm:$0xff] %v2264_v38  ;;  %v1917_v23 = vadd.f32 %v1916_v41, %v4128_v25  ;;  %v1918_v34 = vpop.f32.mrb[77].mxu1  ;;  %v2111_v26 = vpop.f32.mrb[77].mxu0  ;;  %v2110_v40 = vadd.f32 %v2109_v37, %v4134_v46  ;;  %v907_v59 = vmul.f32 %v2855_v22, %v4663_v44  ;;  %2864 = vrsqrt.f32 %v823_v63 }
 0x2cd   : > { %2329 = vst [vmem:[%s4152_s16 + $0x158] sm:$0xff] %v2265_v50  ;;  %v1919_v6 = vadd.f32 %v1918_v34, %v4132_v42  ;;  %v1920_v5 = vpop.f32.mrb[78].mxu1  ;;  %v2113_v9 = vpop.f32.mrb[78].mxu0  ;;  %v2112_v52 = vadd.f32 %v2111_v26, %v4136_v55 }
 0x2ce   : > { %v2202_v57 = vmul.f32 %v1917_v23, %v901_v27  ;;  %v1921_v24 = vadd.f32 %v1920_v5, %v4128_v25  ;;  %v1922_v0 = vpop.f32.mrb[79].mxu1  ;;  %v2115_v13 = vpop.f32.mrb[79].mxu0  ;;  %v2114_v39 = vadd.f32 %v2113_v9, %v4134_v46  ;;  %v4664_v27 = vld [vmem:[#allocation29_spill] sm:$0xff] }
 0x2cf   : > { %v2203_v30 = vmul.f32 %v1919_v6, %v902_v2  ;;  %v1923_v45 = vadd.f32 %v1922_v0, %v4132_v42  ;;  %v2116_v62 = vadd.f32 %v2115_v13, %v4136_v55  ;;  %v2859_v41 = vpop.eup %2858  ;;  %v908_v23 = vmul.f32 %v2855_v22, %v4664_v27 }
 0x2d0   : > { %v2266_v3 = vadd.f32 %v2202_v57, %v2110_v40  ;;  %v2204_v7 = vmul.f32 %v1921_v24, %v903_v15  ;;  %v792_v2 = vmul.f32 0.00390625, %v760_v48  ;;  %v4665_v15 = vld [vmem:[#allocation30_spill] sm:$0xff]  ;;  %v2861_v48 = vpop.eup %2860 }
 0x2d1   : > { %v2267_v31 = vadd.f32 %v2203_v30, %v2112_v52  ;;  %v2205_v33 = vmul.f32 %v1923_v45, %v904_v61  ;;  %v909_v24 = vmul.f32 %v2857_v36, %v4665_v15  ;;  %v4666_v52 = vld [vmem:[#allocation31_spill] sm:$0xff] }
 0x2d2   : > { %2330 = vst [vmem:[%s4152_s16 + $0x160] sm:$0xff] %v2266_v3  ;;  %v2268_v28 = vadd.f32 %v2204_v7, %v2114_v39  ;;  %v824_v30 = vadd.f32 1e-05, %v792_v2  ;;  %v910_v58 = vmul.f32 %v2857_v36, %v4666_v52  ;;  %v4667_v39 = vld [vmem:[#allocation32_spill] sm:$0xff]  ;;  %v4669_v36 = vld [vmem:[#allocation53_spill] sm:$0xff] }
 0x2d3   : > { %2331 = vst [vmem:[%s4152_s16 + $0x168] sm:$0xff] %v2267_v31  ;;  %v2269_v8 = vadd.f32 %v2205_v33, %v2116_v62  ;;  %v1926_v54 = vpop.f32.mrb[80].mxu1  ;;  %v2119_v35 = vpop.f32.mrb[80].mxu0  ;;  %v911_v18 = vmul.f32 %v2859_v41, %v4667_v39 }
 0x2d4   : > { %2332 = vst [vmem:[%s4152_s16 + $0x170] sm:$0xff] %v2268_v28  ;;  %v1927_v20 = vadd.f32 %v1926_v54, %v4128_v25  ;;  %v1928_v53 = vpop.f32.mrb[81].mxu1  ;;  %v2121_v16 = vpop.f32.mrb[81].mxu0  ;;  %v2120_v10 = vadd.f32 %v2119_v35, %v4134_v46  ;;  %v4668_v54 = vld [vmem:[#allocation33_spill] sm:$0xff]  ;;  %2866 = vrsqrt.f32 %v824_v30 }
 0x2d5   : > { %2333 = vst [vmem:[%s4152_s16 + $0x178] sm:$0xff] %v2269_v8  ;;  %v1929_v47 = vadd.f32 %v1928_v53, %v4132_v42  ;;  %v1930_v49 = vpop.f32.mrb[82].mxu1  ;;  %v2123_v51 = vpop.f32.mrb[82].mxu0  ;;  %v2122_v11 = vadd.f32 %v2121_v16, %v4136_v55  ;;  %v912_v35 = vmul.f32 %v2859_v41, %v4668_v54  ;;  %v4675_v54 = vld [vmem:[#allocation57_spill] sm:$0xff] }
 0x2d6   : > { %v2206_v29 = vmul.f32 %v1927_v20, %v905_v17  ;;  %v1931_v56 = vadd.f32 %v1930_v49, %v4128_v25  ;;  %v1932_v38 = vpop.f32.mrb[83].mxu1  ;;  %v2125_v50 = vpop.f32.mrb[83].mxu0  ;;  %v2124_v14 = vadd.f32 %v2123_v51, %v4134_v46 }
 0x2d7   : > { %v2207_v37 = vmul.f32 %v1929_v47, %v906_v4  ;;  %v1933_v34 = vadd.f32 %v1932_v38, %v4132_v42  ;;  %v2126_v9 = vadd.f32 %v2125_v50, %v4136_v55  ;;  %v2863_v1 = vpop.eup %2862 }
 0x2d8   : > { %v2270_v26 = vadd.f32 %v2206_v29, %v2120_v10  ;;  %v2208_v32 = vmul.f32 %v1931_v56, %v907_v59  ;;  %v913_v29 = vmul.f32 %v2861_v48, %v4669_v36  ;;  %v4670_v56 = vld [vmem:[#allocation54_spill] sm:$0xff]  ;;  %v2865_v2 = vpop.eup %2864 }
 0x2d9   : > { %v2271_v6 = vadd.f32 %v2207_v37, %v2122_v11  ;;  %v2209_v5 = vmul.f32 %v1933_v34, %v908_v23  ;;  %v914_v38 = vmul.f32 %v2861_v48, %v4670_v56  ;;  %v4671_v23 = vld [vmem:[#allocation34_spill] sm:$0xff] }
 0x2da   : > { %2334 = vst [vmem:[%s4152_s16 + $0x180] sm:$0xff] %v2270_v26  ;;  %v2272_v21 = vadd.f32 %v2208_v32, %v2124_v14  ;;  %v915_v34 = vmul.f32 %v2863_v1, %v4671_v23 }
 0x2db   : > { %2335 = vst [vmem:[%s4152_s16 + $0x188] sm:$0xff] %v2271_v6  ;;  %v2273_v57 = vadd.f32 %v2209_v5, %v2126_v9  ;;  %v1936_v40 = vpop.f32.mrb[84].mxu1  ;;  %v2129_v19 = vpop.f32.mrb[84].mxu0  ;;  %v4672_v9 = vld [vmem:[#allocation35_spill] sm:$0xff] }
 0x2dc   : > { %2336 = vst [vmem:[%s4152_s16 + $0x190] sm:$0xff] %v2272_v21  ;;  %v1937_v0 = vadd.f32 %v1936_v40, %v4128_v25  ;;  %v1938_v13 = vpop.f32.mrb[85].mxu1  ;;  %v2131_v22 = vpop.f32.mrb[85].mxu0  ;;  %v2130_v7 = vadd.f32 %v2129_v19, %v4134_v46  ;;  %v916_v21 = vmul.f32 %v2863_v1, %v4672_v9 }
 0x2dd   : > { %2337 = vst [vmem:[%s4152_s16 + $0x198] sm:$0xff] %v2273_v57  ;;  %v1939_v61 = vadd.f32 %v1938_v13, %v4132_v42  ;;  %v1940_v45 = vpop.f32.mrb[86].mxu1  ;;  %v2133_v12 = vpop.f32.mrb[86].mxu0  ;;  %v2132_v8 = vadd.f32 %v2131_v22, %v4136_v55 }
 0x2de   : > { %v2210_v3 = vmul.f32 %v1937_v0, %v909_v24  ;;  %v1941_v31 = vadd.f32 %v1940_v45, %v4128_v25  ;;  %v1942_v33 = vpop.f32.mrb[87].mxu1  ;;  %v2135_v62 = vpop.f32.mrb[87].mxu0  ;;  %v2134_v20 = vadd.f32 %v2133_v12, %v4134_v46  ;;  %v4673_v45 = vld [vmem:[#allocation55_spill] sm:$0xff] }
 0x2df   : > { %v2211_v28 = vmul.f32 %v1939_v61, %v910_v58  ;;  %v1943_v43 = vadd.f32 %v1942_v33, %v4132_v42  ;;  %v2136_v63 = vadd.f32 %v2135_v62, %v4136_v55  ;;  %v2867_v30 = vpop.eup %2866  ;;  %v917_v12 = vmul.f32 %v2865_v2, %v4673_v45 }
 0x2e0   : > { %v2274_v60 = vadd.f32 %v2210_v3, %v2130_v7  ;;  %v2212_v17 = vmul.f32 %v1941_v31, %v911_v18  ;;  %v4674_v18 = vld [vmem:[#allocation56_spill] sm:$0xff] }
 0x2e1   : > { %v2275_v53 = vadd.f32 %v2211_v28, %v2132_v8  ;;  %v2213_v16 = vmul.f32 %v1943_v43, %v912_v35  ;;  %v918_v31 = vmul.f32 %v2865_v2, %v4674_v18  ;;  %v919_v35 = vmul.f32 %v2867_v30, %v4675_v54 }
 0x2e2   : > { %2338 = vst [vmem:[%s4152_s16 + $0x1a0] sm:$0xff] %v2274_v60  ;;  %v2276_v4 = vadd.f32 %v2212_v17, %v2134_v20 }
 0x2e3   : > { %2339 = vst [vmem:[%s4152_s16 + $0x1a8] sm:$0xff] %v2275_v53  ;;  %v2277_v47 = vadd.f32 %v2213_v16, %v2136_v63  ;;  %v1946_v49 = vpop.f32.mrb[88].mxu1  ;;  %v2139_v51 = vpop.f32.mrb[88].mxu0  ;;  %v4676_v16 = vld [vmem:[#allocation36_spill] sm:$0xff] }
 0x2e4   : > { %2340 = vst [vmem:[%s4152_s16 + $0x1b0] sm:$0xff] %v2276_v4  ;;  %v1947_v10 = vadd.f32 %v1946_v49, %v4128_v25  ;;  %v1948_v44 = vpop.f32.mrb[89].mxu1  ;;  %v2141_v59 = vpop.f32.mrb[89].mxu0  ;;  %v2140_v27 = vadd.f32 %v2139_v51, %v4134_v46  ;;  %v920_v63 = vmul.f32 %v2867_v30, %v4676_v16 }
 0x2e5   : > { %2341 = vst [vmem:[%s4152_s16 + $0x1b8] sm:$0xff] %v2277_v47  ;;  %v1949_v50 = vadd.f32 %v1948_v44, %v4132_v42  ;;  %v1950_v41 = vpop.f32.mrb[90].mxu1  ;;  %v2143_v37 = vpop.f32.mrb[90].mxu0  ;;  %v2142_v5 = vadd.f32 %v2141_v59, %v4136_v55 }
 0x2e6   : > { %v2214_v11 = vmul.f32 %v1947_v10, %v913_v29  ;;  %v1951_v26 = vadd.f32 %v1950_v41, %v4128_v25  ;;  %v1952_v32 = vpop.f32.mrb[91].mxu1  ;;  %v2145_v14 = vpop.f32.mrb[91].mxu0  ;;  %v2144_v15 = vadd.f32 %v2143_v37, %v4134_v46 }
 0x2e7   : > { %v2215_v6 = vmul.f32 %v1949_v50, %v914_v38  ;;  %v1953_v57 = vadd.f32 %v1952_v32, %v4132_v42  ;;  %v2146_v13 = vadd.f32 %v2145_v14, %v4136_v55 }
 0x2e8   : > { %v2278_v40 = vadd.f32 %v2214_v11, %v2140_v27  ;;  %v2216_v19 = vmul.f32 %v1951_v26, %v915_v34 }
 0x2e9   : > { %v2279_v24 = vadd.f32 %v2215_v6, %v2142_v5  ;;  %v2217_v0 = vmul.f32 %v1953_v57, %v916_v21 }
 0x2ea   : > { %2342 = vst [vmem:[%s4152_s16 + $0x1c0] sm:$0xff] %v2278_v40  ;;  %v2280_v22 = vadd.f32 %v2216_v19, %v2144_v15 }
 0x2eb   : > { %2343 = vst [vmem:[%s4152_s16 + $0x1c8] sm:$0xff] %v2279_v24  ;;  %v2281_v52 = vadd.f32 %v2217_v0, %v2146_v13  ;;  %v1956_v58 = vpop.f32.mrb[92].mxu1  ;;  %v2149_v61 = vpop.f32.mrb[92].mxu0 }
 0x2ec   : > { %2344 = vst [vmem:[%s4152_s16 + $0x1d0] sm:$0xff] %v2280_v22  ;;  %v1957_v3 = vadd.f32 %v1956_v58, %v4128_v25  ;;  %v1958_v7 = vpop.f32.mrb[93].mxu1  ;;  %v2151_v39 = vpop.f32.mrb[93].mxu0  ;;  %v2150_v8 = vadd.f32 %v2149_v61, %v4134_v46 }
 0x2ed   : > { %2345 = vst [vmem:[%s4152_s16 + $0x1d8] sm:$0xff] %v2281_v52  ;;  %v1959_v33 = vadd.f32 %v1958_v7, %v4132_v42  ;;  %v1960_v62 = vpop.f32.mrb[94].mxu1  ;;  %v2153_v48 = vpop.f32.mrb[94].mxu0  ;;  %v2152_v53 = vadd.f32 %v2151_v39, %v4136_v55 }
 0x2ee   : > { %v2218_v28 = vmul.f32 %v1957_v3, %v917_v12  ;;  %v1961_v43 = vadd.f32 %v1960_v62, %v4128_v25  ;;  %v1962_v60 = vpop.f32.mrb[95].mxu1  ;;  %v2155_v17 = vpop.f32.mrb[95].mxu0  ;;  %v2154_v25 = vadd.f32 %v2153_v48, %v4134_v46 }
 0x2ef   : > { %v2219_v20 = vmul.f32 %v1959_v33, %v918_v31  ;;  %v1963_v1 = vadd.f32 %v1962_v60, %v4132_v42  ;;  %v2156_v36 = vadd.f32 %v2155_v17, %v4136_v55 }
 0x2f0   : > { %v2282_v4 = vadd.f32 %v2218_v28, %v2150_v8  ;;  %v2220_v47 = vmul.f32 %v1961_v43, %v919_v35 }
 0x2f1   : > { %v2283_v49 = vadd.f32 %v2219_v20, %v2152_v53  ;;  %v2221_v51 = vmul.f32 %v1963_v1, %v920_v63 }
 0x2f2   : > { %2346 = vst [vmem:[%s4152_s16 + $0x1e0] sm:$0xff] %v2282_v4  ;;  %v2284_v29 = vadd.f32 %v2220_v47, %v2154_v25 }
 0x2f3   : > { %2347 = vst [vmem:[%s4152_s16 + $0x1e8] sm:$0xff] %v2283_v49  ;;  %v2285_v42 = vadd.f32 %v2221_v51, %v2156_v36 }
 0x2f4   : > { %2348 = vst [vmem:[%s4152_s16 + $0x1f0] sm:$0xff] %v2284_v29 }
 0x2f5   : > { %2349 = vst [vmem:[%s4152_s16 + $0x1f8] sm:$0xff] %v2285_v42 }
 0x2f6   : > { %2997 = shalt.err (!%p2994_p5)
}
 0x2f7   : > { %s2998_s0 = scalar_lea.hbm %s4400_s13, 8192  ;;  %s3002_s15 = scalar_lea.hbm %s4455_s6, 16384 }
 0x2f8   : > { %p2999_p9 = scmp.ne.s32.totalorder %s4400_s13, %s2998_s0  ;;  %p3003_p11 = scmp.lt.u32.totalorder %s4400_s13, %s4455_s6 }
 0x2f9   : > { %p3004_p2 = scmp.lt.u32.totalorder %s3002_s15, %s2998_s0  ;;  %p3006_p1 = scmp.lt.u32.totalorder %s2998_s0, %s4400_s13 }
 0x2fa   : > { %p3000_p0 = pnand %p2999_p9, %p4677_p13 }
 0x2fb   : > { %p3005_p12 = por %p3004_p2, %p3003_p11 }
 0x2fc   : > { %p3001_p8 = pneg %p3000_p0 }
 0x2fd   : > { %p3007_p6 = por %p3006_p1, %p3005_p12 }
 0x2ff   : > { %p3008_p10 = pnand %p3007_p6, %p3001_p8 }
 0x301   : > { %3011 = shalt.err (!%p3008_p10)
}
 0x302   : > { %s3074_s14 = smov 256   ;;  %s3075_s11 = smov 16  }
 0x303   : > { %2617 = dma.vmem_to_hbm [thread:$0]  (%p4677_p13), %s4402_s20, 8192, %s4400_s13, %s2351_s25, %s3074_s14, %s3074_s14, %s3075_s11  }
 0x304 PF: > { %s2380_s16 = sand.u32 1, %s3050_s21   ;;  %p4678_p4 = scmp.ne.s32.totalorder %s4532_s28, 0 }
 0x305   : > { %p4679_p7 = scmp.ge.s32.totalorder %s3062_s24, 2  ;;  %s2381_s2 = scalar_lea.sflag [#allocation4], %s2380_s16 }
 0x307   : > { %p2634_p3 = pnand %p4679_p7, %p4678_p4 }
 0x309   : > { %3045 = dma.done.wait (!%p2634_p3), %s2381_s2, 8192  }
 0x30a   : > { %3047 = vsyncadd (!%p2634_p3), %s2381_s2, 4294959104  ;;  %s4680_s7 = sld [smem:[#allocation16_spill]]  ;;  %p23_p5 = scmp.ge.s32.totalorder %s3227_s9, 4  }
 0x30b   : > { %s4681_s21 = smov %s3054_s22  ;;  %s4682_s22 = smov %s3058_s23 }
 0x30c   : > { %s4684_s24 = smov %s3227_s9  ;;  %25 = sbr.rel (!%p23_p5) target bundleno = 12 (0xc), region = 110 }
 0x310   : > { %s4683_s23 = smov %s4680_s7 }
 0x313   :  { %2386 = vsyncpa [#allocation3], 1 }
 0x314   :  { %2388 = vsyncpa [#allocation3 + $0x1], 1 }
 0x315   :  { %2389 = vsyncpa [#allocation6], 1 }
 0x316   :  { %2391 = vsyncpa [#allocation6 + $0x1], 1 }
 0x317   :  { %2392 = vsyncpa [#allocation9], 1 }
 0x318   :  { %2393 = vsyncpa [#allocation4], 1 }
 0x319   :  { %2395 = vsyncpa [#allocation4 + $0x1], 1 }

// kernel: tpu_custom_call.1
= control target key start
LH: loop header
LB: loop body
LE: loop exit
PB: predicated region body
PF: predicated region fallthrough
CT: control target
= control target key end

     0   :  { %s4449_s0 = inlined_call_operand.hbm [shape: f32[512,256], index: 0, kind: input, shape index: {}]   ;;  %s4450_s1 = inlined_call_operand.hbm [shape: f32[512,128], index: 1, kind: input, shape index: {}]   ;;  %s4451_s2 = inlined_call_operand.hbm [shape: bf16[128,256], index: 2, kind: input, shape index: {}]   ;;  %s4452_s3 = inlined_call_operand.vmem [shape: f32[1,256], index: 3, kind: input, shape index: {}]   ;;  %s4453_s4 = inlined_call_operand.hbm [shape: bf16[256,512], index: 4, kind: input, shape index: {}]   ;;  %s4454_s5 = inlined_call_operand.vmem [shape: f32[1,512], index: 5, kind: input, shape index: {}]   ;;  %s4455_s6 = inlined_call_operand.hbm [shape: f32[512,256], index: 6, kind: output, shape index: {}]  }
   0x1   :  { %4528 = sst [smem:[#allocation58_spill]] %s4449_s0 }
   0x2   :  { %4529 = sst [smem:[#allocation59_spill]] %s4451_s2 }
   0x3   :  { %4530 = sst [smem:[#allocation60_spill]] %s4453_s4 }
   0x4   :  { %11 = vsyncpa [#allocation3], 0 }
   0x5   :  { %13 = vsyncpa [#allocation3 + $0x1], 0 }
   0x6   :  { %14 = vsyncpa [#allocation6], 0 }
   0x7   :  { %16 = vsyncpa [#allocation6 + $0x1], 0 }
   0x8   :  { %17 = vsyncpa [#allocation9], 0 }
   0x9   :  { %18 = vsyncpa [#allocation4], 0 }
   0xa   :  { %20 = vsyncpa [#allocation4 + $0x1], 0  ;;  %s3111_s21 = smov 0   ;;  %s3113_s22 = smov 0  }
   0xb   :  { %s3115_s23 = smov 0   ;;  %s3117_s24 = smov 0  }
   0xc LB: > { %s3132_s25 = sadd.s32 4294967295, %s3062_s24   ;;  %s2480_s26 = sadd.s32 4294967294, %s3062_s24   ;;  %s3062_s24 = sphi %s3117_s24, %s4684_s24   ;;  %s3058_s23 = sphi %s3115_s23, %s4683_s23   ;;  %s3054_s22 = sphi %s3113_s22, %s4682_s22   ;;  %s3050_s21 = sphi %s3111_s21, %s4681_s21  }
   0xd   : > { %p46_p0 = scmp.ne.s32.totalorder %s3054_s22, %s3050_s21  ;;  %p4456_p1 = scmp.eq.s32.totalorder %s3132_s25, 0 }
   0xe   : > { %p186_p3 = scmp.eq.s32.totalorder %s2480_s26, 1  ;;  %p2481_p5 = scmp.ge.s32.totalorder %s3062_s24, 1 }
   0xf   : > { %p3141_p4 = por %p4456_p1, %p46_p0  ;;  %p193_p7 = scmp.lt.s32.totalorder %s3062_s24, 3 }
  0x10   : > { %p3146_p6 = por %p186_p3, %p46_p0  ;;  %s3064_s30 = smov [#allocation7]  }
  0x11   : > { %s4531_s27 = scalar_select %p3141_p4, 1, 0 }
  0x12   : > { %s4532_s28 = scalar_select %p3146_p6, 1, 0 }
  0x13   : > { %p3151_p8 = pnand %p2481_p5, %p193_p7  ;;  %s205_s7 = sshll.u32 %s3064_s30, 4  ;;  %s3155_s7 = int_to_ptr.vmem [resolvable:$true] %s205_s7 }
  0x14   : > { %s3065_s9 = smov [#allocation8]   ;;  %s4535_s2 = sld [smem:[#allocation59_spill]] }
  0x15   : > { %p2619_p9 = pneg %p3151_p8  ;;  %s221_s10 = sshll.u32 %s3065_s9, 4  ;;  %s3166_s10 = int_to_ptr.vmem [resolvable:$true] %s221_s10 }
  0x17   : > { %p3162_p11 = pnand %p2619_p9, %p4456_p1 }
  0x19   : > { %p2870_p13 = pneg %p3162_p11 }
  0x1a   : > { %s2868_s13 = scalar_lea.hbm %s4535_s2, 2048 }
  0x1b   : > { %p2869_p12 = scmp.ne.s32.totalorder %s4535_s2, %s2868_s13  ;;  %p2875_p5 = scmp.lt.u32.totalorder %s2868_s13, %s4535_s2 }
  0x1d   : > { %p2871_p0 = pnand %p2870_p13, %p2869_p12 }
  0x1f   : > { %p2872_p3 = pneg %p2871_p0 }
  0x21   : > { %p2877_p7 = pnand %p2875_p5, %p2872_p3 }
  0x23   : > { %2880 = shalt.err (!%p2877_p7)
}
  0x24   : > { %s2881_s18 = scalar_lea.vmem %s3155_s7, 2048  ;;  %p2889_p2 = scmp.lt.s32.totalorder %s3155_s7, %s3155_s7 }
  0x25   : > { %p2882_p9 = scmp.ne.s32.totalorder %s3155_s7, %s2881_s18  ;;  %p2890_p12 = scmp.lt.s32.totalorder %s2881_s18, %s2881_s18 }
  0x27   : > { %p2884_p10 = pnand %p2882_p9, %p2870_p13  ;;  %p2891_p0 = por %p2890_p12, %p2889_p2 }
  0x29   : > { %p2885_p1 = pneg %p2884_p10 }
  0x2b   : > { %p2892_p6 = pnand %p2891_p0, %p2885_p1 }
  0x2d   : > { %2895 = shalt.err (!%p2892_p6)
}
  0x2e   : > { %s4457_s19 = smov 128   ;;  %s4458_s20 = smov 8  }
  0x2f   : > { %2622 = dma.hbm_to_vmem [thread:$0]  (!%p3162_p11), %s4535_s2, 2048, %s3155_s7, [#allocation6], %s4457_s19, %s4457_s19, %s4458_s20  }
  0x30   : > { %s4536_s4 = sld [smem:[#allocation60_spill]] }
  0x36   : > { %s2896_s12 = scalar_lea.hbm %s4536_s4, 8192 }
  0x37   : > { %p2897_p1 = scmp.ne.s32.totalorder %s4536_s4, %s2896_s12  ;;  %p2903_p10 = scmp.lt.u32.totalorder %s2896_s12, %s4536_s4 }
  0x39   : > { %p2899_p2 = pnand %p2897_p1, %p2870_p13 }
  0x3b   : > { %p2900_p6 = pneg %p2899_p2 }
  0x3d   : > { %p2905_p3 = pnand %p2903_p10, %p2900_p6 }
  0x3f   : > { %2908 = shalt.err (!%p2905_p3)
}
  0x40   : > { %s2909_s7 = scalar_lea.vmem %s3166_s10, 8192  ;;  %p2917_p12 = scmp.lt.s32.totalorder %s3166_s10, %s3166_s10 }
  0x41   : > { %p2910_p5 = scmp.ne.s32.totalorder %s3166_s10, %s2909_s7  ;;  %p2918_p0 = scmp.lt.s32.totalorder %s2909_s7, %s2909_s7 }
  0x43   : > { %p2912_p7 = pnand %p2910_p5, %p2870_p13  ;;  %p2919_p1 = por %p2918_p0, %p2917_p12 }
  0x45   : > { %p2913_p9 = pneg %p2912_p7 }
  0x47   : > { %p2920_p2 = pnand %p2919_p1, %p2913_p9 }
  0x49   : > { %2923 = shalt.err (!%p2920_p2)
}
  0x4a   : > { %s4459_s17 = smov 256   ;;  %s4460_s18 = smov 16  }
  0x4b   : > { %2625 = dma.hbm_to_vmem [thread:$0]  (!%p3162_p11), %s4536_s4, 8192, %s3166_s10, [#allocation9], %s4459_s17, %s4459_s17, %s4460_s18  }
  0x4c   : > { %s3227_s9 = sadd.s32 1, %s3062_s24   ;;  %s33_s12 = sadd.s32 1, %s3058_s23 }
  0x4d   : > { %s30_s11 = ssub.s32 %s3062_s24, %s3227_s9  ;;  %p40_p6 = scmp.ne.s32.totalorder %s3058_s23, %s3054_s22 }
  0x4e   : > { %p31_p13 = scmp.eq.s32.totalorder %s30_s11, 0  ;;  %p41_p10 = scmp.eq.s32.totalorder %s3062_s24, 0 }
  0x4f   : > { %p4538_p5 = scmp.eq.s32.totalorder %s3132_s25, 1  ;;  %p2639_p9 = scmp.lt.s32.totalorder %s3062_s24, 2 }
  0x50   : > { %s3236_s13 = scalar_select %p31_p13, %s3058_s23, %s33_s12  }
  0x51   : > { %p42_p3 = por %p41_p10, %p40_p6  ;;  %p3240_p7 = por %p4538_p5, %p40_p6 }
  0x52   : > { %4537 = sst [smem:[#allocation16_spill]] %s3236_s13  ;;  %s3246_s14 = sand.u32 1, %s3058_s23  }
  0x53   : > { %s4539_s8 = scalar_select %p3240_p7, 1, 0 }
  0x54   : > { %s2485_s10 = sshll.u32 %s3246_s14, 9  ;;  %s2585_s15 = sshll.u32 %s3062_s24, 13 }
  0x55   : > { %s4540_s0 = sld [smem:[#allocation58_spill]]  ;;  %s242_s30 = scalar_lea.vmem [#allocation2], %s2485_s10 }
  0x56   : > { %s250_s11 = sshll.u32 %s242_s30, 4  ;;  %p3257_p11 = pnand %p2639_p9, %p42_p3  ;;  %s3255_s11 = int_to_ptr.vmem [resolvable:$true] %s250_s11 }
  0x57   : > { %s2489_s20 = sshll.u32 %s3246_s14, 8  ;;  %s239_s17 = scalar_lea.sflag [#allocation3], %s3246_s14 }
  0x58   : > { %p2926_p0 = pneg %p3257_p11 }
  0x5b   : > { %s3253_s26 = scalar_lea.hbm %s4540_s0, %s2585_s15  ;;  %s2929_s7 = scalar_lea.hbm %s4540_s0, 16384 }
  0x5c   : > { %s2924_s16 = scalar_lea.hbm %s3253_s26, 8192  ;;  %p2930_p13 = scmp.lt.u32.totalorder %s3253_s26, %s4540_s0 }
  0x5d   : > { %p2925_p12 = scmp.ne.s32.totalorder %s3253_s26, %s2924_s16  ;;  %p2931_p6 = scmp.lt.u32.totalorder %s2929_s7, %s2924_s16 }
  0x5e   : > { %p2933_p3 = scmp.lt.u32.totalorder %s2924_s16, %s3253_s26 }
  0x5f   : > { %p2927_p1 = pnand %p2926_p0, %p2925_p12  ;;  %p2932_p10 = por %p2931_p6, %p2930_p13 }
  0x61   : > { %p2928_p2 = pneg %p2927_p1  ;;  %p2934_p5 = por %p2933_p3, %p2932_p10 }
  0x63   : > { %p2935_p9 = pnand %p2934_p5, %p2928_p2 }
  0x65   : > { %2938 = shalt.err (!%p2935_p9)
}
  0x66   : > { %s2939_s19 = scalar_lea.vmem %s3255_s11, 8192  ;;  %s3070_s10 = smov [#allocation2]  }
  0x67   : > { %p2940_p12 = scmp.ne.s32.totalorder %s3255_s11, %s2939_s19  ;;  %s2944_s15 = sshll.u32 %s3070_s10, 4  ;;  %s2945_s15 = int_to_ptr.vmem [resolvable:$false] %s2944_s15 }
  0x68   : > { %s2946_s18 = scalar_lea.vmem %s2945_s15, 16384  ;;  %p2947_p4 = scmp.lt.s32.totalorder %s3255_s11, %s2945_s15 }
  0x69   : > { %p2942_p1 = pnand %p2940_p12, %p2926_p0  ;;  %p2948_p13 = scmp.lt.s32.totalorder %s2946_s18, %s2939_s19 }
  0x6b   : > { %p2943_p7 = pneg %p2942_p1  ;;  %p2949_p6 = por %p2948_p13, %p2947_p4 }
  0x6d   : > { %p2950_p10 = pnand %p2949_p6, %p2943_p7 }
  0x6f   : > { %2953 = shalt.err (!%p2950_p10)
}
  0x70   : > { %s4542_s16 = smov 16   ;;  %s4543_s7 = smov 256  }
  0x71   : > { %2629 = dma.hbm_to_vmem [thread:$0]  (!%p3257_p11), %s3253_s26, 8192, %s3255_s11, %s239_s17, %s4543_s7, %s4543_s7, %s4542_s16  }
  0x72   : > { %s2586_s30 = sshll.u32 %s3062_s24, 12  ;;  %s264_s18 = scalar_lea.vmem [#allocation5], %s2489_s20 }
  0x73   : > { %s3298_s15 = scalar_lea.hbm %s4450_s1, %s2586_s30  ;;  %s271_s0 = sshll.u32 %s264_s18, 4  ;;  %s3302_s0 = int_to_ptr.vmem [resolvable:$true] %s271_s0 }
  0x74   : > { %s4544_s2 = sand.u32 1, %s3062_s24   ;;  %s2954_s13 = scalar_lea.hbm %s3298_s15, 4096 }
  0x75   : > { %s3306_s4 = scalar_lea.sflag [#allocation6], %s4544_s2  ;;  %p2955_p4 = scmp.ne.s32.totalorder %s3298_s15, %s2954_s13 }
  0x76   : > { %s2959_s14 = scalar_lea.hbm %s4450_s1, 8192  ;;  %p2960_p3 = scmp.lt.u32.totalorder %s3298_s15, %s4450_s1 }
  0x77   : > { %p2957_p7 = pnand %p2955_p4, %p2926_p0  ;;  %p2961_p5 = scmp.lt.u32.totalorder %s2959_s14, %s2954_s13 }
  0x78   : > { %p2963_p12 = scmp.lt.u32.totalorder %s2954_s13, %s3298_s15 }
  0x79   : > { %p2958_p2 = pneg %p2957_p7  ;;  %p2962_p9 = por %p2961_p5, %p2960_p3 }
  0x7b   : > { %p2964_p1 = por %p2963_p12, %p2962_p9 }
  0x7d   : > { %p2965_p13 = pnand %p2964_p1, %p2958_p2 }
  0x7f   : > { %2968 = shalt.err (!%p2965_p13)
}
  0x80   : > { %s2969_s2 = scalar_lea.vmem %s3302_s0, 4096  ;;  %s3071_s20 = smov [#allocation5]  }
  0x81   : > { %p2970_p6 = scmp.ne.s32.totalorder %s3302_s0, %s2969_s2  ;;  %s2974_s7 = sshll.u32 %s3071_s20, 4  ;;  %s2975_s7 = int_to_ptr.vmem [resolvable:$false] %s2974_s7 }
  0x82   : > { %s2976_s30 = scalar_lea.vmem %s2975_s7, 8192  ;;  %p2977_p7 = scmp.lt.s32.totalorder %s3302_s0, %s2975_s7 }
  0x83   : > { %p2972_p10 = pnand %p2970_p6, %p2926_p0  ;;  %p2978_p3 = scmp.lt.s32.totalorder %s2976_s30, %s2969_s2 }
  0x85   : > { %p2973_p4 = pneg %p2972_p10  ;;  %p2979_p5 = por %p2978_p3, %p2977_p7 }
  0x87   : > { %p2980_p9 = pnand %p2979_p5, %p2973_p4 }
  0x89   : > { %2983 = shalt.err (!%p2980_p9)
}
  0x8a   : > { %s4545_s13 = smov 8   ;;  %s4546_s10 = smov 128  }
  0x8b   : > { %2632 = dma.hbm_to_vmem [thread:$0]  (!%p3257_p11), %s3298_s15, 4096, %s3302_s0, %s3306_s4, %s4546_s10, %s4546_s10, %s4545_s13  }
  0x8c   : > { %283 = sbr.rel (%p3151_p8) target bundleno = 772 (0x304), region = 44 }
  0x93   : > { %s3338_s19 = sand.u32 1, %s3054_s22   ;;  %p4547_p0 = scmp.ne.s32.totalorder %s4531_s27, 0 }
  0x94   : > { %s2493_s18 = sshll.u32 %s3338_s19, 9  ;;  %s286_s17 = scalar_lea.sflag [#allocation3], %s3338_s19 }
  0x95   : > { %s3344_s12 = scalar_lea.vmem [#allocation2], %s2493_s18 }
  0x96   : > { %3029 = dma.done.wait (%p4547_p0), %s286_s17, 8192  }
  0x97   : > { %3031 = vsyncadd (%p4547_p0), %s286_s17, 4294959104  ;;  %s294_s0 = sand.u32 1, %s3132_s25   ;;  %s2494_s4 = sshll.u32 %s3338_s19, 8 }
  0x98   : > { %s295_s29 = scalar_lea.sflag [#allocation6], %s294_s0  ;;  %s3352_s15 = scalar_lea.vmem [#allocation5], %s2494_s4 }
  0x99   : > { %3033 = dma.done.wait (%p4547_p0), %s295_s29, 4096  }
  0x9a   : > { %3035 = vsyncadd (%p4547_p0), %s295_s29, 4294963200  ;;  %p4548_p8 = scmp.eq.s32.totalorder %s3132_s25, 0 }
  0x9c   : > { %3037 = dma.done.wait (%p4548_p8), [#allocation6], 2048   ;;  %p4549_p11 = pmov %p4548_p8 }
  0x9d   : > { %p4550_p2 = pmov %p4548_p8 }
  0x9e   : > { %3039 = vsyncadd (%p4549_p11), [#allocation6], 4294965248 }
  0x9f   : > { %3041 = dma.done.wait (%p4550_p2), [#allocation9], 8192   ;;  %p4551_p12 = pmov %p4550_p2 }
  0xa0   : > { %v4463_v0 = vmov 0   ;;  %v2684_v1 = vld [vmem:[#allocation7 + $0x4] ss:$8 sps:$4 sm:$0xff]   ;;  %v2686_v2 = vld [vmem:[#allocation7] ss:$8 sps:$4 sm:$0xff]   ;;  %v3383_v15 = vld [vmem:[%s3344_s12 + $0x10] sm:$0xff] }
  0xa1   : > { %3043 = vsyncadd (%p4551_p12), [#allocation9], 4294959104  ;;  %1109 = vmatprep.mubr.bf16.mxu0 %v4463_v0  ;;  %1189 = vmatprep.mubr.bf16.mxu1 %v4463_v0  ;;  %v2687_v3 = vld [vmem:[#allocation7 + $0x14] ss:$8 sps:$4 sm:$0xff]   ;;  %v2689_v4 = vld [vmem:[#allocation7 + $0x10] ss:$8 sps:$4 sm:$0xff]  }
  0xa2   : > { %1077 = vmatprep.subr.bf16.mxu0 %v2684_v1  ;;  %2589 = vmatprep.subr.bf16.mxu1 %v2684_v1  ;;  %v2690_v5 = vld [vmem:[#allocation7 + $0x24] ss:$8 sps:$4 sm:$0xff]   ;;  %v2692_v6 = vld [vmem:[#allocation7 + $0x20] ss:$8 sps:$4 sm:$0xff]   ;;  %v2693_v7 = vld [vmem:[#allocation7 + $0x34] ss:$8 sps:$4 sm:$0xff]  }
  0xa3   : > { %1078 = vmatpush1.bf16.msra.mxu0 %v2686_v2  ;;  %2597 = vmatpush1.bf16.msra.mxu1 %v2686_v2  ;;  %v2695_v8 = vld [vmem:[#allocation7 + $0x30] ss:$8 sps:$4 sm:$0xff]   ;;  %v2696_v9 = vld [vmem:[#allocation7 + $0x44] ss:$8 sps:$4 sm:$0xff]   ;;  %v2698_v16 = vld [vmem:[#allocation7 + $0x40] ss:$8 sps:$4 sm:$0xff]  }
  0xa4   : > { %1079 = vmatprep.subr.bf16.mxu0 %v2687_v3  ;;  %2590 = vmatprep.subr.bf16.mxu1 %v2687_v3  ;;  %v3369_v10 = vld [vmem:[%s3344_s12] sm:$0xff]  ;;  %v3372_v11 = vld [vmem:[%s3344_s12 + $0x8] sm:$0xff]  ;;  %v3388_v18 = vld [vmem:[%s3344_s12 + $0x18] sm:$0xff]  ;;  %s4152_s16 = scalar_lea.vmem [#allocation10], %s2493_s18  ;;  %s2588_s2 = sshll.u32 %s3132_s25, 13 }
  0xa5   : > { %v408_v12 = vadd.f32 %v3372_v11, %v3369_v10  ;;  %v3377_v13 = vld [vmem:[%s3344_s12 + $0x20] sm:$0xff]  ;;  %v3380_v14 = vld [vmem:[%s3344_s12 + $0x28] sm:$0xff]  ;;  %v2699_v19 = vld [vmem:[#allocation7 + $0x54] ss:$8 sps:$4 sm:$0xff]   ;;  %v411_v20 = vadd.f32 %v3388_v18, %v3383_v15  ;;  %s2365_s20 = sshll.u32 %s4152_s16, 4  ;;  %s4400_s13 = scalar_lea.hbm %s4455_s6, %s2588_s2  ;;  %s4402_s20 = int_to_ptr.vmem [resolvable:$true] %s2365_s20 }
  0xa6   : > { %v414_v17 = vadd.f32 %v3380_v14, %v3377_v13  ;;  %v3393_v21 = vld [vmem:[%s3344_s12 + $0x30] sm:$0xff]  ;;  %v3396_v22 = vld [vmem:[%s3344_s12 + $0x38] sm:$0xff]  ;;  %v3401_v24 = vld [vmem:[%s3344_s12 + $0x40] sm:$0xff]  ;;  %s2351_s25 = scalar_lea.sflag [#allocation4], %s3338_s19  ;;  %s2984_s10 = scalar_lea.vmem %s4402_s20, 8192 }
  0xa7   : > { %1080 = vmatpush1.bf16.msra.mxu0 %v2689_v4  ;;  %2598 = vmatpush1.bf16.msra.mxu1 %v2689_v4  ;;  %v417_v23 = vadd.f32 %v3396_v22, %v3393_v21  ;;  %v3404_v25 = vld [vmem:[%s3344_s12 + $0x48] sm:$0xff]  ;;  %v3407_v26 = vld [vmem:[%s3344_s12 + $0x50] sm:$0xff]  ;;  %v3410_v27 = vld [vmem:[%s3344_s12 + $0x58] sm:$0xff]  ;;  %p2985_p1 = scmp.ne.s32.totalorder %s4402_s20, %s2984_s10  ;;  %p4677_p13 = scmp.ne.s32.totalorder %s4539_s8, 0 }
  0xa8   : > { %1081 = vmatprep.subr.bf16.mxu0 %v2690_v5  ;;  %2591 = vmatprep.subr.bf16.mxu1 %v2690_v5  ;;  %v2701_v28 = vld [vmem:[#allocation7 + $0x50] ss:$8 sps:$4 sm:$0xff]   ;;  %v2702_v29 = vld [vmem:[#allocation7 + $0x64] ss:$8 sps:$4 sm:$0xff]   ;;  %v420_v30 = vadd.f32 %v3404_v25, %v3401_v24  ;;  %v423_v31 = vadd.f32 %v3410_v27, %v3407_v26  ;;  %v2704_v36 = vld [vmem:[#allocation7 + $0x60] ss:$8 sps:$4 sm:$0xff]  }
  0xa9   : > { %409 = vadd.xlane.f32.xlu0 %v408_v12  ;;  %415 = vadd.xlane.f32.xlu1 %v414_v17  ;;  %v3417_v32 = vld [vmem:[%s3344_s12 + $0x60] sm:$0xff]  ;;  %v3420_v33 = vld [vmem:[%s3344_s12 + $0x68] sm:$0xff]  ;;  %v3423_v34 = vld [vmem:[%s3344_s12 + $0x70] sm:$0xff]  ;;  %p2986_p6 = pnand %p2985_p1, %p4677_p13  ;;  %s3073_s18 = smov [#allocation10]  }
  0xaa   : > { %v3426_v35 = vld [vmem:[%s3344_s12 + $0x78] sm:$0xff]  ;;  %v426_v38 = vadd.f32 %v3420_v33, %v3417_v32  ;;  %v3433_v41 = vld [vmem:[%s3344_s12 + $0x80] sm:$0xff]  ;;  %v3436_v42 = vld [vmem:[%s3344_s12 + $0x88] sm:$0xff]  ;;  %s2988_s17 = sshll.u32 %s3073_s18, 4  ;;  %s2989_s17 = int_to_ptr.vmem [resolvable:$false] %s2988_s17 }
  0xab   : > { %1082 = vmatpush1.bf16.msra.mxu0 %v2692_v6  ;;  %2599 = vmatpush1.bf16.msra.mxu1 %v2692_v6  ;;  %v2705_v37 = vld [vmem:[#allocation7 + $0x74] ss:$8 sps:$4 sm:$0xff]   ;;  %v2707_v39 = vld [vmem:[#allocation7 + $0x70] ss:$8 sps:$4 sm:$0xff]   ;;  %v429_v40 = vadd.f32 %v3426_v35, %v3423_v34  ;;  %v921_v43 = vld [vmem:[%s3352_s15] sm:$0xff]  ;;  %v432_v49 = vadd.f32 %v3436_v42, %v3433_v41  ;;  %p2987_p10 = pneg %p2986_p6  ;;  %p2991_p4 = scmp.lt.s32.totalorder %s4402_s20, %s2989_s17 }
  0xac   : > { %1083 = vmatprep.subr.bf16.mxu0 %v2693_v7  ;;  %2592 = vmatprep.subr.bf16.mxu1 %v2693_v7  ;;  %v3440_v44 = vld [vmem:[%s3344_s12 + $0x90] sm:$0xff]  ;;  %v3443_v45 = vld [vmem:[%s3344_s12 + $0x98] sm:$0xff]  ;;  %v922_v46 = vld [vmem:[%s3352_s15 + $0x8] sm:$0xff] }
  0xad   : > { %412 = vadd.xlane.f32.xlu0 %v411_v20  ;;  %418 = vadd.xlane.f32.xlu1 %v417_v23  ;;  %v937_v47 = vld [vmem:[%s3352_s15 + $0x80] sm:$0xff]  ;;  %v938_v48 = vld [vmem:[%s3352_s15 + $0x88] sm:$0xff]  ;;  %v435_v50 = vadd.f32 %v3443_v45, %v3440_v44  ;;  %v953_v53 = vpack.c.bf16 %v922_v46, %v921_v43  ;;  %v3459_v54 = vld [vmem:[%s3344_s12 + $0xb0] sm:$0xff] }
  0xae   : > { %v3453_v51 = vld [vmem:[%s3344_s12 + $0xa0] sm:$0xff]  ;;  %v3456_v52 = vld [vmem:[%s3344_s12 + $0xa8] sm:$0xff]  ;;  %v3462_v55 = vld [vmem:[%s3344_s12 + $0xb8] sm:$0xff]  ;;  %v961_v56 = vpack.c.bf16 %v938_v48, %v937_v47 }
  0xaf   : > { %1084 = vmatpush1.bf16.msra.mxu0 %v2695_v8  ;;  %2600 = vmatpush1.bf16.msra.mxu1 %v2695_v8  ;;  %v438_v57 = vadd.f32 %v3456_v52, %v3453_v51  ;;  %v441_v58 = vadd.f32 %v3462_v55, %v3459_v54  ;;  %v3469_v59 = vld [vmem:[%s3344_s12 + $0xc0] sm:$0xff]  ;;  %v3472_v60 = vld [vmem:[%s3344_s12 + $0xc8] sm:$0xff]  ;;  %v923_v61 = vld [vmem:[%s3352_s15 + $0x10] sm:$0xff] }
  0xb0   : > { %1085 = vmatprep.subr.bf16.mxu0 %v2696_v9  ;;  %2593 = vmatprep.subr.bf16.mxu1 %v2696_v9  ;;  %v3476_v62 = vld [vmem:[%s3344_s12 + $0xd0] sm:$0xff]  ;;  %v3479_v63 = vld [vmem:[%s3344_s12 + $0xd8] sm:$0xff]  ;;  %v444_v4 = vadd.f32 %v3472_v60, %v3469_v59  ;;  %v3491_v6 = vld [vmem:[%s3344_s12 + $0xe0] sm:$0xff] }
  0xb1   : > { %421 = vadd.xlane.f32.xlu0 %v420_v30  ;;  %424 = vadd.xlane.f32.xlu1 %v423_v31  ;;  %v924_v1 = vld [vmem:[%s3352_s15 + $0x18] sm:$0xff]  ;;  %v939_v2 = vld [vmem:[%s3352_s15 + $0x90] sm:$0xff]  ;;  %v447_v5 = vadd.f32 %v3479_v63, %v3476_v62  ;;  %v3494_v7 = vld [vmem:[%s3344_s12 + $0xe8] sm:$0xff] }
  0xb2   : > { %v940_v3 = vld [vmem:[%s3352_s15 + $0x98] sm:$0xff]  ;;  %v954_v8 = vpack.c.bf16 %v924_v1, %v923_v61  ;;  %v3497_v9 = vld [vmem:[%s3344_s12 + $0xf0] sm:$0xff]  ;;  %v450_v17 = vadd.f32 %v3494_v7, %v3491_v6  ;;  %v925_v20 = vld [vmem:[%s3352_s15 + $0x20] sm:$0xff] }
  0xb3   : > { %1086 = vmatpush1.bf16.msra.mxu0 %v2698_v16  ;;  %2601 = vmatpush1.bf16.msra.mxu1 %v2698_v16  ;;  %v3500_v12 = vld [vmem:[%s3344_s12 + $0xf8] sm:$0xff]  ;;  %v962_v16 = vpack.c.bf16 %v940_v3, %v939_v2  ;;  %v926_v23 = vld [vmem:[%s3352_s15 + $0x28] sm:$0xff]  ;;  %v3515_v30 = vld [vmem:[%s3344_s12 + $0x100] sm:$0xff] }
  0xb4   : > { %1087 = vmatprep.subr.bf16.mxu0 %v2699_v19  ;;  %2594 = vmatprep.subr.bf16.mxu1 %v2699_v19  ;;  %v3505_v19 = vld [vmem:[%s3344_s12 + $0x110] sm:$0xff]  ;;  %v3518_v31 = vld [vmem:[%s3344_s12 + $0x108] sm:$0xff]  ;;  %v3541_v61 = vld [vmem:[%s3344_s12 + $0x140] sm:$0xff] }
  0xb5   : > { %427 = vadd.xlane.f32.xlu0 %v426_v38  ;;  %430 = vadd.xlane.f32.xlu1 %v429_v40  ;;  %v3524_v38 = vld [vmem:[%s3344_s12 + $0x120] sm:$0xff]  ;;  %v456_v46 = vadd.f32 %v3518_v31, %v3515_v30  ;;  %v3533_v47 = vld [vmem:[%s3344_s12 + $0x130] sm:$0xff]  ;;  %v2711_v48 = vld [vmem:[#allocation8 + $0x8] ss:$16 sps:$4 sm:$0xff]   ;;  %4553 = vst [vmem:[#allocation18_spill] sm:$0xff] %v3541_v61 }
  0xb6   : > { %v2708_v40 = vld [vmem:[#allocation8] ss:$16 sps:$4 sm:$0xff]   ;;  %v2710_v43 = vld [vmem:[#allocation8 + $0x4] ss:$16 sps:$4 sm:$0xff]   ;;  %v3544_v1 = vld [vmem:[%s3344_s12 + $0x148] sm:$0xff] }
  0xb7   : > { %1088 = vmatpush1.bf16.msra.mxu0 %v2701_v28  ;;  %2602 = vmatpush1.bf16.msra.mxu1 %v2701_v28  ;;  %v453_v28 = vadd.f32 %v3500_v12, %v3497_v9  ;;  %4554 = vst [vmem:[#allocation19_spill] sm:$0xff] %v3544_v1  ;;  %v3549_v3 = vld [vmem:[%s3344_s12 + $0x150] sm:$0xff] }
  0xb8   : > { %1089 = vmatprep.subr.bf16.mxu0 %v2702_v29  ;;  %2595 = vmatprep.subr.bf16.mxu1 %v2702_v29  ;;  %v3512_v29 = vld [vmem:[%s3344_s12 + $0x118] sm:$0xff]  ;;  %4555 = vst [vmem:[#allocation20_spill] sm:$0xff] %v3549_v3 }
  0xb9   : > { %433 = vadd.xlane.f32.xlu0 %v432_v49  ;;  %436 = vadd.xlane.f32.xlu1 %v435_v50  ;;  %v459_v49 = vadd.f32 %v3512_v29, %v3505_v19  ;;  %v2713_v50 = vld [vmem:[#allocation8 + $0xc] ss:$16 sps:$4 sm:$0xff]  }
  0xbb   : > { %1090 = vmatpush1.bf16.msra.mxu0 %v2704_v36  ;;  %2603 = vmatpush1.bf16.msra.mxu1 %v2704_v36  ;;  %v941_v36 = vld [vmem:[%s3352_s15 + $0xa0] sm:$0xff] }
  0xbc   : > { %1091 = vmatprep.subr.bf16.mxu0 %v2705_v37  ;;  %2596 = vmatprep.subr.bf16.mxu1 %v2705_v37  ;;  %v942_v37 = vld [vmem:[%s3352_s15 + $0xa8] sm:$0xff] }
  0xbd   : > { %439 = vadd.xlane.f32.xlu0 %v438_v57  ;;  %442 = vadd.xlane.f32.xlu1 %v441_v58  ;;  %v963_v57 = vpack.c.bf16 %v942_v37, %v941_v36  ;;  %v2716_v58 = vld [vmem:[#allocation8 + $0x24] ss:$16 sps:$4 sm:$0xff]  }
  0xbe   : > { %v2722_v36 = vld [vmem:[#allocation8 + $0x44] ss:$16 sps:$4 sm:$0xff]  }
  0xbf   : > { %1092 = vmatpush1.bf16.msra.mxu0 %v2707_v39  ;;  %2604 = vmatpush1.bf16.msra.mxu1 %v2707_v39  ;;  %v3527_v39 = vld [vmem:[%s3344_s12 + $0x128] sm:$0xff]  ;;  %v3561_v37 = vld [vmem:[%s3344_s12 + $0x160] sm:$0xff] }
  0xc0   : > { %1772 = vmatprep.subr.bf16.mxu1 %v2710_v43  ;;  %1965 = vmatprep.subr.bf16.mxu0 %v2713_v50  ;;  %v462_v2 = vadd.f32 %v3527_v39, %v3524_v38  ;;  %4557 = vst [vmem:[#allocation22_spill] sm:$0xff] %v3561_v37  ;;  %v944_v43 = vld [vmem:[%s3352_s15 + $0xb8] sm:$0xff] }
  0xc1   : > { %445 = vadd.xlane.f32.xlu0 %v444_v4  ;;  %448 = vadd.xlane.f32.xlu1 %v447_v5  ;;  %v3552_v4 = vld [vmem:[%s3344_s12 + $0x158] sm:$0xff]  ;;  %v2714_v5 = vld [vmem:[#allocation8 + $0x20] ss:$16 sps:$4 sm:$0xff]  }
  0xc2   : > { %1110 = vmatmul.mubr.bf16.vlgmr.msra.gmra.mrb[0].mxu0 %v953_v53  ;;  %1190 = vmatmul.mubr.bf16.vlgmr.msra.gmra.mrb[0].mxu1 %v961_v56  ;;  %v955_v53 = vpack.c.bf16 %v926_v23, %v925_v20  ;;  %v3538_v56 = vld [vmem:[%s3344_s12 + $0x138] sm:$0xff]  ;;  %4556 = vst [vmem:[#allocation21_spill] sm:$0xff] %v3552_v4  ;;  %v943_v20 = vld [vmem:[%s3352_s15 + $0xb0] sm:$0xff]  ;;  %v471_v50 = vadd.f32 %v3552_v4, %v3549_v3  ;;  %v946_v4 = vld [vmem:[%s3352_s15 + $0xc8] sm:$0xff] }
  0xc3   : > { %1119 = vmatprep.mubr.bf16.mxu0 %v4463_v0  ;;  %1199 = vmatprep.mubr.bf16.mxu1 %v4463_v0  ;;  %4552 = vst [vmem:[#allocation17_spill] sm:$0xff] %v3538_v56  ;;  %v2719_v23 = vld [vmem:[#allocation8 + $0x2c] ss:$16 sps:$4 sm:$0xff]   ;;  %v3611_v3 = vld [vmem:[%s3344_s12 + $0x1b0] sm:$0xff] }
  0xc4   : > { %1773 = vmatpush1.bf16.msra.mxu1 %v2708_v40  ;;  %1966 = vmatpush1.bf16.msra.mxu0 %v2711_v48  ;;  %v3564_v40 = vld [vmem:[%s3344_s12 + $0x168] sm:$0xff]  ;;  %v468_v48 = vadd.f32 %v3544_v1, %v3541_v61  ;;  %4568 = vst [vmem:[#allocation32_spill] sm:$0xff] %v3611_v3  ;;  %v3614_v61 = vld [vmem:[%s3344_s12 + $0x1b8] sm:$0xff] }
  0xc5   : > { %451 = vadd.xlane.f32.xlu0 %v450_v17  ;;  %454 = vadd.xlane.f32.xlu1 %v453_v28  ;;  %v465_v17 = vadd.f32 %v3538_v56, %v3533_v47  ;;  %v2717_v28 = vld [vmem:[#allocation8 + $0x28] ss:$16 sps:$4 sm:$0xff]   ;;  %4558 = vst [vmem:[#allocation23_spill] sm:$0xff] %v3564_v40  ;;  %4569 = vst [vmem:[#allocation33_spill] sm:$0xff] %v3614_v61 }
  0xc6   : > { %1774 = vmatprep.subr.bf16.mxu1 %v2716_v58  ;;  %1967 = vmatprep.subr.bf16.mxu0 %v2719_v23  ;;  %v3573_v58 = vld [vmem:[%s3344_s12 + $0x170] sm:$0xff]  ;;  %v3582_v1 = vld [vmem:[%s3344_s12 + $0x188] sm:$0xff]  ;;  %v3652_v56 = vld [vmem:[%s3344_s12 + $0x1f8] sm:$0xff] }
  0xc7   : > { %4559 = vst [vmem:[#allocation24_spill] sm:$0xff] %v3573_v58  ;;  %4562 = vst [vmem:[#allocation27_spill] sm:$0xff] %v3582_v1  ;;  %v3587_v23 = vld [vmem:[%s3344_s12 + $0x190] sm:$0xff] }
  0xc8   : > { %1775 = vmatpush1.bf16.msra.mxu1 %v2714_v5  ;;  %1968 = vmatpush1.bf16.msra.mxu0 %v2717_v28  ;;  %v3579_v5 = vld [vmem:[%s3344_s12 + $0x180] sm:$0xff]  ;;  %4563 = vst [vmem:[#allocation28_spill] sm:$0xff] %v3587_v23  ;;  %v930_v28 = vld [vmem:[%s3352_s15 + $0x48] sm:$0xff]  ;;  %4572 = vst [vmem:[#allocation36_spill] sm:$0xff] %v3652_v56 }
  0xc9   : > { %457 = vadd.xlane.f32.xlu0 %v456_v46  ;;  %460 = vadd.xlane.f32.xlu1 %v459_v49  ;;  %v2725_v46 = vld [vmem:[#allocation8 + $0x4c] ss:$16 sps:$4 sm:$0xff]   ;;  %v2720_v49 = vld [vmem:[#allocation8 + $0x40] ss:$16 sps:$4 sm:$0xff]   ;;  %4561 = vst [vmem:[#allocation26_spill] sm:$0xff] %v3579_v5 }
  0xca   : > { %1120 = vmatmul.mubr.bf16.gmra.mrb[4].mxu0 %v954_v8  ;;  %1200 = vmatmul.mubr.bf16.gmra.mrb[4].mxu1 %v962_v16  ;;  %v927_v8 = vld [vmem:[%s3352_s15 + $0x30] sm:$0xff]  ;;  %v928_v16 = vld [vmem:[%s3352_s15 + $0x38] sm:$0xff] }
  0xcb   : > { %1129 = vmatprep.mubr.bf16.mxu0 %v4463_v0  ;;  %1209 = vmatprep.mubr.bf16.mxu1 %v4463_v0 }
  0xcc   : > { %1776 = vmatprep.subr.bf16.mxu1 %v2722_v36  ;;  %1969 = vmatprep.subr.bf16.mxu0 %v2725_v46  ;;  %v2731_v46 = vld [vmem:[#allocation8 + $0x6c] ss:$16 sps:$4 sm:$0xff]  }
  0xcd   : > { %463 = vadd.xlane.f32.xlu0 %v462_v2  ;;  %466 = vadd.xlane.f32.xlu1 %v465_v17  ;;  %v964_v2 = vpack.c.bf16 %v944_v43, %v943_v20  ;;  %v474_v17 = vadd.f32 %v3564_v40, %v3561_v37  ;;  %v929_v20 = vld [vmem:[%s3352_s15 + $0x40] sm:$0xff]  ;;  %v4565_v40 = vmov 0   ;;  %v3601_v37 = vld [vmem:[%s3344_s12 + $0x1a8] sm:$0xff] }
  0xce   : > { %1777 = vmatpush1.bf16.msra.mxu1 %v2720_v49  ;;  %v2726_v43 = vld [vmem:[#allocation8 + $0x60] ss:$16 sps:$4 sm:$0xff]   ;;  %4567 = vst [vmem:[#allocation31_spill] sm:$0xff] %v3601_v37 }
  0xcf   : > { %v3598_v49 = vld [vmem:[%s3344_s12 + $0x1a0] sm:$0xff] }
  0xd0   : > { %4566 = vst [vmem:[#allocation30_spill] sm:$0xff] %v3598_v49 }
  0xd1   : > { %469 = vadd.xlane.f32.xlu0 %v468_v48  ;;  %472 = vadd.xlane.f32.xlu1 %v471_v50  ;;  %v2734_v48 = vld [vmem:[#allocation8 + $0x84] ss:$16 sps:$4 sm:$0xff]  }
  0xd2   : > { %1130 = vmatmul.mubr.bf16.gmra.mrb[8].mxu0 %v955_v53  ;;  %1210 = vmatmul.mubr.bf16.gmra.mrb[8].mxu1 %v963_v57  ;;  %v2728_v53 = vld [vmem:[#allocation8 + $0x64] ss:$16 sps:$4 sm:$0xff]   ;;  %v956_v57 = vpack.c.bf16 %v928_v16, %v927_v8  ;;  %v3590_v8 = vld [vmem:[%s3344_s12 + $0x198] sm:$0xff] }
  0xd3   : > { %1139 = vmatprep.mubr.bf16.mxu0 %v4463_v0  ;;  %1219 = vmatprep.mubr.bf16.mxu1 %v4463_v0  ;;  %v3576_v0 = vld [vmem:[%s3344_s12 + $0x178] sm:$0xff]  ;;  %4564 = vst [vmem:[#allocation29_spill] sm:$0xff] %v3590_v8  ;;  %v945_v50 = vld [vmem:[%s3352_s15 + $0xc0] sm:$0xff] }
  0xd4   : > { %4560 = vst [vmem:[#allocation25_spill] sm:$0xff] %v3576_v0  ;;  %v2723_v16 = vld [vmem:[#allocation8 + $0x48] ss:$16 sps:$4 sm:$0xff]   ;;  %v477_v36 = vadd.f32 %v3576_v0, %v3573_v58  ;;  %1778 = vmatprep.subr.bf16.mxu1 %v2728_v53  ;;  %v480_v53 = vadd.f32 %v3582_v1, %v3579_v5  ;;  %v2732_v0 = vld [vmem:[#allocation8 + $0x80] ss:$16 sps:$4 sm:$0xff]   ;;  %v957_v58 = vpack.c.bf16 %v930_v28, %v929_v20 }
  0xd5   : > { %475 = vadd.xlane.f32.xlu0 %v474_v17  ;;  %1970 = vmatpush1.bf16.msra.mxu0 %v2723_v16  ;;  %v965_v17 = vpack.c.bf16 %v946_v4, %v945_v50  ;;  %v3617_v16 = vld [vmem:[%s3344_s12 + $0x1c0] sm:$0xff]  ;;  %v3620_v1 = vld [vmem:[%s3344_s12 + $0x1c8] sm:$0xff]  ;;  %v3628_v20 = vld [vmem:[%s3344_s12 + $0x1d8] sm:$0xff] }
  0xd6   : > { %478 = vadd.xlane.f32.xlu1 %v477_v36  ;;  %1779 = vmatpush1.bf16.msra.mxu1 %v2726_v43  ;;  %v486_v36 = vadd.f32 %v3601_v37, %v3598_v49  ;;  %v3625_v43 = vld [vmem:[%s3344_s12 + $0x1d0] sm:$0xff]  ;;  %4571 = vst [vmem:[#allocation35_spill] sm:$0xff] %v3628_v20  ;;  %v2737_v28 = vld [vmem:[#allocation8 + $0x8c] ss:$16 sps:$4 sm:$0xff]  }
  0xd7   : > { %1971 = vmatprep.subr.bf16.mxu0 %v2731_v46  ;;  %1780 = vmatprep.subr.bf16.mxu1 %v2734_v48  ;;  %4570 = vst [vmem:[#allocation34_spill] sm:$0xff] %v3625_v43  ;;  %v931_v4 = vld [vmem:[%s3352_s15 + $0x50] sm:$0xff]  ;;  %v932_v46 = vld [vmem:[%s3352_s15 + $0x58] sm:$0xff]  ;;  %v489_v48 = vadd.f32 %v3614_v61, %v3611_v3 }
  0xd8   : > { %v947_v50 = vld [vmem:[%s3352_s15 + $0xd0] sm:$0xff]  ;;  %v2743_v49 = vld [vmem:[#allocation8 + $0xac] ss:$16 sps:$4 sm:$0xff]   ;;  %v2741_v61 = vld [vmem:[#allocation8 + $0xa8] ss:$16 sps:$4 sm:$0xff]   ;;  %v958_v3 = vpack.c.bf16 %v932_v46, %v931_v4 }
  0xd9   : > { %481 = vadd.xlane.f32.xlu0 %v480_v53  ;;  %v2735_v53 = vld [vmem:[#allocation8 + $0x88] ss:$16 sps:$4 sm:$0xff]   ;;  %v2740_v37 = vld [vmem:[#allocation8 + $0xa4] ss:$16 sps:$4 sm:$0xff]  }
  0xda   : > { %1140 = vmatmul.mubr.bf16.gmra.mrb[12].mxu0 %v956_v57  ;;  %1220 = vmatmul.mubr.bf16.gmra.mrb[12].mxu1 %v964_v2  ;;  %v2729_v57 = vld [vmem:[#allocation8 + $0x68] ss:$16 sps:$4 sm:$0xff]   ;;  %v483_v2 = vadd.f32 %v3590_v8, %v3587_v23  ;;  %v2738_v23 = vld [vmem:[#allocation8 + $0xa0] ss:$16 sps:$4 sm:$0xff]  }
  0xdb   : > { %1149 = vmatprep.mubr.bf16.mxu0 %v4565_v40  ;;  %1229 = vmatprep.mubr.bf16.mxu1 %v4565_v40  ;;  %v3640_v8 = vld [vmem:[%s3344_s12 + $0x1e8] sm:$0xff]  ;;  %v3649_v5 = vld [vmem:[%s3344_s12 + $0x1f0] sm:$0xff]  ;;  %v949_v46 = vld [vmem:[%s3352_s15 + $0xe0] sm:$0xff] }
  0xdc   : > { %1972 = vmatpush1.bf16.msra.mxu0 %v2729_v57  ;;  %484 = vadd.xlane.f32.xlu1 %v483_v2  ;;  %v3637_v57 = vld [vmem:[%s3344_s12 + $0x1e0] sm:$0xff]  ;;  %v948_v2 = vld [vmem:[%s3352_s15 + $0xd8] sm:$0xff]  ;;  %v501_v4 = vadd.f32 %v3652_v56, %v3649_v5  ;;  %s2990_s12 = scalar_lea.vmem %s2989_s17, 16384 }
  0xdd   : > { %1781 = vmatpush1.bf16.msra.mxu1 %v2732_v0  ;;  %487 = vadd.xlane.f32.xlu0 %v486_v36  ;;  %v492_v0 = vadd.f32 %v3620_v1, %v3617_v16  ;;  %v966_v36 = vpack.c.bf16 %v948_v2, %v947_v50  ;;  %v2755_v50 = vld [vmem:[#allocation8 + $0xec] ss:$16 sps:$4 sm:$0xff]   ;;  %v2750_v2 = vld [vmem:[#allocation8 + $0xe0] ss:$16 sps:$4 sm:$0xff]   ;;  %v2764_v56 = vld [vmem:[#allocation8 + $0x124] ss:$16 sps:$4 sm:$0xff]   ;;  %p2992_p7 = scmp.lt.s32.totalorder %s2990_s12, %s2984_s10 }
  0xde   : > { %1973 = vmatprep.subr.bf16.mxu0 %v2737_v28  ;;  %1782 = vmatprep.subr.bf16.mxu1 %v2740_v37  ;;  %v498_v28 = vadd.f32 %v3640_v8, %v3637_v57  ;;  %v2747_v37 = vld [vmem:[#allocation8 + $0xc8] ss:$16 sps:$4 sm:$0xff]  }
  0xdf   : > { %p2993_p3 = por %p2992_p7, %p2991_p4 }
  0xe0   : > { %490 = vadd.xlane.f32.xlu1 %v489_v48  ;;  %1974 = vmatpush1.bf16.msra.mxu0 %v2735_v53  ;;  %v2744_v48 = vld [vmem:[#allocation8 + $0xc0] ss:$16 sps:$4 sm:$0xff]   ;;  %v934_v53 = vld [vmem:[%s3352_s15 + $0x68] sm:$0xff] }
  0xe1   : > { %1975 = vmatprep.subr.bf16.mxu0 %v2743_v49  ;;  %1783 = vmatpush1.bf16.msra.mxu1 %v2738_v23  ;;  %v2752_v23 = vld [vmem:[#allocation8 + $0xe4] ss:$16 sps:$4 sm:$0xff]   ;;  %v950_v49 = vld [vmem:[%s3352_s15 + $0xe8] sm:$0xff]  ;;  %p2994_p5 = pnand %p2993_p3, %p2987_p10 }
  0xe2   : > { %1150 = vmatmul.mubr.bf16.gmra.mrb[16].mxu0 %v957_v58  ;;  %1230 = vmatmul.mubr.bf16.gmra.mrb[16].mxu1 %v965_v17  ;;  %v2746_v58 = vld [vmem:[#allocation8 + $0xc4] ss:$16 sps:$4 sm:$0xff]   ;;  %v495_v17 = vadd.f32 %v3628_v20, %v3625_v43  ;;  %v2749_v43 = vld [vmem:[#allocation8 + $0xcc] ss:$16 sps:$4 sm:$0xff]  }
  0xe3   : > { %1159 = vmatprep.mubr.bf16.mxu0 %v4565_v40  ;;  %1239 = vmatprep.mubr.bf16.mxu1 %v4565_v40  ;;  %v933_v20 = vld [vmem:[%s3352_s15 + $0x60] sm:$0xff] }
  0xe4   : > { %493 = vadd.xlane.f32.xlu0 %v492_v0  ;;  %1784 = vmatprep.subr.bf16.mxu1 %v2746_v58  ;;  %v2758_v0 = vld [vmem:[#allocation8 + $0x104] ss:$16 sps:$4 sm:$0xff]   ;;  %v967_v58 = vpack.c.bf16 %v950_v49, %v949_v46  ;;  %v2767_v46 = vld [vmem:[#allocation8 + $0x12c] ss:$16 sps:$4 sm:$0xff]  }
  0xe5   : > { %496 = vadd.xlane.f32.xlu1 %v495_v17  ;;  %1976 = vmatpush1.bf16.msra.mxu0 %v2741_v61  ;;  %v959_v61 = vpack.c.bf16 %v934_v53, %v933_v20  ;;  %v2756_v17 = vld [vmem:[#allocation8 + $0x100] ss:$16 sps:$4 sm:$0xff]   ;;  %v2759_v53 = vld [vmem:[#allocation8 + $0x108] ss:$16 sps:$4 sm:$0xff]  }
  0xe6   : > { %1785 = vmatpush1.bf16.msra.mxu1 %v2744_v48  ;;  %1977 = vmatprep.subr.bf16.mxu0 %v2749_v43  ;;  %v936_v43 = vld [vmem:[%s3352_s15 + $0x78] sm:$0xff]  ;;  %v951_v20 = vld [vmem:[%s3352_s15 + $0xf0] sm:$0xff] }
  0xe7   : > { %1786 = vmatprep.subr.bf16.mxu1 %v2752_v23  ;;  %v952_v48 = vld [vmem:[%s3352_s15 + $0xf8] sm:$0xff] }
  0xe8   : > { %499 = vadd.xlane.f32.xlu0 %v498_v28  ;;  %v935_v28 = vld [vmem:[%s3352_s15 + $0x70] sm:$0xff]  ;;  %v968_v49 = vpack.c.bf16 %v952_v48, %v951_v20  ;;  %v2783_v20 = vld [vmem:[#allocation8 + $0x188] ss:$16 sps:$4 sm:$0xff]  }
  0xe9   : > { %502 = vadd.xlane.f32.xlu1 %v501_v4  ;;  %1978 = vmatpush1.bf16.msra.mxu0 %v2747_v37  ;;  %v2762_v4 = vld [vmem:[#allocation8 + $0x120] ss:$16 sps:$4 sm:$0xff]   ;;  %v2770_v37 = vld [vmem:[#allocation8 + $0x144] ss:$16 sps:$4 sm:$0xff]   ;;  %v960_v23 = vpack.c.bf16 %v936_v43, %v935_v28  ;;  %v2785_v28 = vld [vmem:[#allocation8 + $0x18c] ss:$16 sps:$4 sm:$0xff]  }
  0xea   : > { %1160 = vmatmul.mubr.bf16.gmra.mrb[20].mxu0 %v958_v3  ;;  %1240 = vmatmul.mubr.bf16.gmra.mrb[20].mxu1 %v966_v36  ;;  %v2753_v3 = vld [vmem:[#allocation8 + $0xe8] ss:$16 sps:$4 sm:$0xff]   ;;  %v2761_v36 = vld [vmem:[#allocation8 + $0x10c] ss:$16 sps:$4 sm:$0xff]   ;;  %v2788_v43 = vld [vmem:[#allocation8 + $0x1a4] ss:$16 sps:$4 sm:$0xff]  }
  0xeb   : > { %1169 = vmatprep.mubr.bf16.mxu0 %v4565_v40  ;;  %1249 = vmatprep.mubr.bf16.mxu1 %v4565_v40  ;;  %v2786_v48 = vld [vmem:[#allocation8 + $0x1a0] ss:$16 sps:$4 sm:$0xff]  }
  0xec   : > { %1979 = vmatprep.subr.bf16.mxu0 %v2755_v50  ;;  %1787 = vmatpush1.bf16.msra.mxu1 %v2750_v2  ;;  %v2765_v50 = vld [vmem:[#allocation8 + $0x128] ss:$16 sps:$4 sm:$0xff]   ;;  %v2768_v2 = vld [vmem:[#allocation8 + $0x140] ss:$16 sps:$4 sm:$0xff]  }
  0xed   : > { %1788 = vmatprep.subr.bf16.mxu1 %v2758_v0  ;;  %1980 = vmatpush1.bf16.msra.mxu0 %v2753_v3  ;;  %v2773_v0 = vld [vmem:[#allocation8 + $0x14c] ss:$16 sps:$4 sm:$0xff]   ;;  %v2782_v3 = vld [vmem:[#allocation8 + $0x184] ss:$16 sps:$4 sm:$0xff]  }
  0xee   : > { %1981 = vmatprep.subr.bf16.mxu0 %v2761_v36  ;;  %v2780_v36 = vld [vmem:[#allocation8 + $0x180] ss:$16 sps:$4 sm:$0xff]  }
  0xf0   : > { %1789 = vmatpush1.bf16.msra.mxu1 %v2756_v17  ;;  %v2777_v17 = vld [vmem:[#allocation8 + $0x168] ss:$16 sps:$4 sm:$0xff]  }
  0xf1   : > { %1790 = vmatprep.subr.bf16.mxu1 %v2764_v56  ;;  %1982 = vmatpush1.bf16.msra.mxu0 %v2759_v53  ;;  %v2779_v56 = vld [vmem:[#allocation8 + $0x16c] ss:$16 sps:$4 sm:$0xff]  }
  0xf2   : > { %1170 = vmatmul.mubr.bf16.gmra.mrb[24].mxu0 %v959_v61  ;;  %1250 = vmatmul.mubr.bf16.gmra.mrb[24].mxu1 %v967_v58  ;;  %v2771_v61 = vld [vmem:[#allocation8 + $0x148] ss:$16 sps:$4 sm:$0xff]   ;;  %v2774_v58 = vld [vmem:[#allocation8 + $0x160] ss:$16 sps:$4 sm:$0xff]   ;;  %v2791_v53 = vld [vmem:[#allocation8 + $0x1ac] ss:$16 sps:$4 sm:$0xff]  }
  0xf3   : > { %1179 = vmatprep.mubr.bf16.mxu0 %v4565_v40  ;;  %1259 = vmatprep.mubr.bf16.mxu1 %v4565_v40  ;;  %v2776_v40 = vld [vmem:[#allocation8 + $0x164] ss:$16 sps:$4 sm:$0xff]  }
  0xf4   : > { %1791 = vmatpush1.bf16.msra.mxu1 %v2762_v4  ;;  %1983 = vmatprep.subr.bf16.mxu0 %v2767_v46  ;;  %v2789_v4 = vld [vmem:[#allocation8 + $0x1a8] ss:$16 sps:$4 sm:$0xff]   ;;  %v2794_v46 = vld [vmem:[#allocation8 + $0x1c4] ss:$16 sps:$4 sm:$0xff]  }
  0xf5   : > { %1792 = vmatprep.subr.bf16.mxu1 %v2770_v37  ;;  %1984 = vmatpush1.bf16.msra.mxu0 %v2765_v50  ;;  %v2797_v37 = vld [vmem:[#allocation8 + $0x1cc] ss:$16 sps:$4 sm:$0xff]   ;;  %v2800_v50 = vld [vmem:[#allocation8 + $0x1e4] ss:$16 sps:$4 sm:$0xff]  }
  0xf6   : > { %1985 = vmatprep.subr.bf16.mxu0 %v2773_v0  ;;  %v2798_v0 = vld [vmem:[#allocation8 + $0x1e0] ss:$16 sps:$4 sm:$0xff]  }
  0xf8   : > { %1793 = vmatpush1.bf16.msra.mxu1 %v2768_v2  ;;  %v2803_v2 = vld [vmem:[#allocation8 + $0x1ec] ss:$16 sps:$4 sm:$0xff]  }
  0xf9   : > { %1794 = vmatprep.subr.bf16.mxu1 %v2776_v40  ;;  %1986 = vmatpush1.bf16.msra.mxu0 %v2771_v61  ;;  %v2801_v40 = vld [vmem:[#allocation8 + $0x1e8] ss:$16 sps:$4 sm:$0xff]  }
  0xfa   : > { %1180 = vmatmul.mubr.bf16.gmra.mrb[28].mxu0 %v960_v23  ;;  %1260 = vmatmul.mubr.bf16.gmra.mrb[28].mxu1 %v968_v49  ;;  %v2792_v23 = vld [vmem:[#allocation8 + $0x1c0] ss:$16 sps:$4 sm:$0xff]   ;;  %v2795_v49 = vld [vmem:[#allocation8 + $0x1c8] ss:$16 sps:$4 sm:$0xff]  }
  0xfb   : > { %1987 = vmatprep.subr.bf16.mxu0 %v2779_v56 }
  0xfc   : > { %1795 = vmatpush1.bf16.msra.mxu1 %v2774_v58 }
  0xfd   : > { %1796 = vmatprep.subr.bf16.mxu1 %v2782_v3  ;;  %1988 = vmatpush1.bf16.msra.mxu0 %v2777_v17 }
  0xfe   : > { %1989 = vmatprep.subr.bf16.mxu0 %v2785_v28 }
 0x100   : > { %1797 = vmatpush1.bf16.msra.mxu1 %v2780_v36 }
 0x101   : > { %1798 = vmatprep.subr.bf16.mxu1 %v2788_v43  ;;  %1990 = vmatpush1.bf16.msra.mxu0 %v2783_v20 }
 0x102   : > { %1991 = vmatprep.subr.bf16.mxu0 %v2791_v53 }
 0x104   : > { %1799 = vmatpush1.bf16.msra.mxu1 %v2786_v48 }
 0x105   : > { %1992 = vmatpush1.bf16.msra.mxu0 %v2789_v4  ;;  %1800 = vmatprep.subr.bf16.mxu1 %v2794_v46 }
 0x106   : > { %1993 = vmatprep.subr.bf16.mxu0 %v2797_v37 }
 0x108   : > { %1801 = vmatpush1.bf16.msra.mxu1 %v2792_v23 }
 0x109   : > { %1994 = vmatpush1.bf16.msra.mxu0 %v2795_v49  ;;  %1802 = vmatprep.subr.bf16.mxu1 %v2800_v50 }
 0x10a   : > { %1995 = vmatprep.subr.bf16.mxu0 %v2803_v2 }
 0x10c   : > { %1803 = vmatpush1.bf16.msra.mxu1 %v2798_v0 }
 0x10d   : > { %1996 = vmatpush1.bf16.msra.mxu0 %v2801_v40 }
 0x136   : > { %v410_v61 = vpop.xlane.xlu0 %409  ;;  %v416_v56 = vpop.xlane.xlu1 %415 }
 0x137   : > { %v505_v58 = vmul.f32 0.00390625, %v410_v61  ;;  %v507_v3 = vmul.f32 0.00390625, %v416_v56 }
 0x139   : > { %v3671_v17 = vsub.f32 %v3369_v10, %v505_v58  ;;  %v3674_v36 = vsub.f32 %v3372_v11, %v505_v58  ;;  %v3677_v28 = vsub.f32 %v3377_v13, %v507_v3  ;;  %v3680_v43 = vsub.f32 %v3380_v14, %v507_v3 }
 0x13a   : > { %v413_v20 = vpop.xlane.xlu0 %412  ;;  %v419_v53 = vpop.xlane.xlu1 %418 }
 0x13b   : > { %v506_v48 = vmul.f32 0.00390625, %v413_v20  ;;  %v601_v4 = vmul.f32 %v3671_v17, %v3671_v17  ;;  %v602_v46 = vmul.f32 %v3674_v36, %v3674_v36  ;;  %v508_v10 = vmul.f32 0.00390625, %v419_v53 }
 0x13c   : > { %v605_v11 = vmul.f32 %v3677_v28, %v3677_v28  ;;  %v606_v13 = vmul.f32 %v3680_v43, %v3680_v43 }
 0x13d   : > { %v3691_v37 = vsub.f32 %v3383_v15, %v506_v48  ;;  %v3694_v14 = vsub.f32 %v3388_v18, %v506_v48  ;;  %v665_v23 = vadd.f32 %v602_v46, %v601_v4  ;;  %v3697_v49 = vsub.f32 %v3393_v21, %v508_v10 }
 0x13e   : > { %v3700_v50 = vsub.f32 %v3396_v22, %v508_v10  ;;  %v422_v2 = vpop.xlane.xlu0 %421  ;;  %v425_v0 = vpop.xlane.xlu1 %424  ;;  %v671_v61 = vadd.f32 %v606_v13, %v605_v11 }
 0x13f   : > { %666 = vadd.xlane.f32.xlu0 %v665_v23  ;;  %v509_v40 = vmul.f32 0.00390625, %v422_v2  ;;  %v603_v58 = vmul.f32 %v3691_v37, %v3691_v37  ;;  %v604_v15 = vmul.f32 %v3694_v14, %v3694_v14  ;;  %v510_v18 = vmul.f32 0.00390625, %v425_v0 }
 0x140   : > { %v607_v56 = vmul.f32 %v3697_v49, %v3697_v49  ;;  %v608_v21 = vmul.f32 %v3700_v50, %v3700_v50 }
 0x141   : > { %v3711_v22 = vsub.f32 %v3401_v24, %v509_v40  ;;  %v3714_v3 = vsub.f32 %v3404_v25, %v509_v40  ;;  %v668_v20 = vadd.f32 %v604_v15, %v603_v58  ;;  %v3717_v48 = vsub.f32 %v3407_v26, %v510_v18 }
 0x142   : > { %v3720_v53 = vsub.f32 %v3410_v27, %v510_v18  ;;  %v428_v4 = vpop.xlane.xlu0 %427  ;;  %v431_v46 = vpop.xlane.xlu1 %430  ;;  %v674_v11 = vadd.f32 %v608_v21, %v607_v56 }
 0x143   : > { %672 = vadd.xlane.f32.xlu0 %v671_v61  ;;  %669 = vadd.xlane.f32.xlu1 %v668_v20  ;;  %v511_v10 = vmul.f32 0.00390625, %v428_v4  ;;  %v609_v24 = vmul.f32 %v3711_v22, %v3711_v22  ;;  %v610_v25 = vmul.f32 %v3714_v3, %v3714_v3  ;;  %v512_v13 = vmul.f32 0.00390625, %v431_v46 }
 0x144   : > { %v611_v26 = vmul.f32 %v3717_v48, %v3717_v48  ;;  %v612_v27 = vmul.f32 %v3720_v53, %v3720_v53 }
 0x145   : > { %v3731_v23 = vsub.f32 %v3417_v32, %v511_v10  ;;  %v3734_v2 = vsub.f32 %v3420_v33, %v511_v10  ;;  %v677_v0 = vadd.f32 %v610_v25, %v609_v24  ;;  %v3737_v40 = vsub.f32 %v3423_v34, %v512_v13 }
 0x146   : > { %v3740_v61 = vsub.f32 %v3426_v35, %v512_v13  ;;  %v434_v58 = vpop.xlane.xlu0 %433  ;;  %v437_v15 = vpop.xlane.xlu1 %436  ;;  %v680_v56 = vadd.f32 %v612_v27, %v611_v26 }
 0x147   : > { %675 = vadd.xlane.f32.xlu1 %v674_v11  ;;  %v513_v18 = vmul.f32 0.00390625, %v434_v58  ;;  %678 = vadd.xlane.f32.xlu0 %v677_v0  ;;  %v613_v32 = vmul.f32 %v3731_v23, %v3731_v23  ;;  %v614_v33 = vmul.f32 %v3734_v2, %v3734_v2  ;;  %v514_v21 = vmul.f32 0.00390625, %v437_v15 }
 0x148   : > { %v615_v34 = vmul.f32 %v3737_v40, %v3737_v40  ;;  %v616_v35 = vmul.f32 %v3740_v61, %v3740_v61 }
 0x149   : > { %v3751_v20 = vsub.f32 %v3433_v41, %v513_v18  ;;  %v3754_v4 = vsub.f32 %v3436_v42, %v513_v18  ;;  %v683_v46 = vadd.f32 %v614_v33, %v613_v32  ;;  %v3757_v10 = vsub.f32 %v3440_v44, %v514_v21 }
 0x14a   : > { %v3760_v11 = vsub.f32 %v3443_v45, %v514_v21  ;;  %v440_v24 = vpop.xlane.xlu0 %439  ;;  %v443_v25 = vpop.xlane.xlu1 %442  ;;  %v686_v26 = vadd.f32 %v616_v35, %v615_v34 }
 0x14b   : > { %681 = vadd.xlane.f32.xlu1 %v680_v56  ;;  %v515_v13 = vmul.f32 0.00390625, %v440_v24  ;;  %684 = vadd.xlane.f32.xlu0 %v683_v46  ;;  %v617_v41 = vmul.f32 %v3751_v20, %v3751_v20  ;;  %v618_v42 = vmul.f32 %v3754_v4, %v3754_v4  ;;  %v516_v27 = vmul.f32 0.00390625, %v443_v25 }
 0x14c   : > { %v619_v44 = vmul.f32 %v3757_v10, %v3757_v10  ;;  %v620_v45 = vmul.f32 %v3760_v11, %v3760_v11 }
 0x14d   : > { %v3771_v0 = vsub.f32 %v3453_v51, %v515_v13  ;;  %v3774_v58 = vsub.f32 %v3456_v52, %v515_v13  ;;  %v689_v15 = vadd.f32 %v618_v42, %v617_v41  ;;  %v3777_v18 = vsub.f32 %v3459_v54, %v516_v27 }
 0x14e   : > { %v3780_v56 = vsub.f32 %v3462_v55, %v516_v27  ;;  %v446_v32 = vpop.xlane.xlu0 %445  ;;  %v449_v33 = vpop.xlane.xlu1 %448  ;;  %v692_v34 = vadd.f32 %v620_v45, %v619_v44 }
 0x14f   : > { %687 = vadd.xlane.f32.xlu1 %v686_v26  ;;  %v517_v21 = vmul.f32 0.00390625, %v446_v32  ;;  %690 = vadd.xlane.f32.xlu0 %v689_v15  ;;  %v621_v51 = vmul.f32 %v3771_v0, %v3771_v0  ;;  %v622_v52 = vmul.f32 %v3774_v58, %v3774_v58  ;;  %v518_v35 = vmul.f32 0.00390625, %v449_v33 }
 0x150   : > { %4573 = vst [vmem:[#allocation37_spill] sm:$0xff] %v3780_v56  ;;  %v623_v54 = vmul.f32 %v3777_v18, %v3777_v18  ;;  %v624_v55 = vmul.f32 %v3780_v56, %v3780_v56 }
 0x151   : > { %v3791_v46 = vsub.f32 %v3469_v59, %v517_v21  ;;  %v3794_v24 = vsub.f32 %v3472_v60, %v517_v21  ;;  %v695_v25 = vadd.f32 %v622_v52, %v621_v51  ;;  %v3797_v13 = vsub.f32 %v3476_v62, %v518_v35 }
 0x152   : > { %v3800_v26 = vsub.f32 %v3479_v63, %v518_v35  ;;  %v452_v41 = vpop.xlane.xlu0 %451  ;;  %v455_v42 = vpop.xlane.xlu1 %454  ;;  %v698_v44 = vadd.f32 %v624_v55, %v623_v54 }
 0x153   : > { %4574 = vst [vmem:[#allocation38_spill] sm:$0xff] %v3791_v46  ;;  %4575 = vst [vmem:[#allocation39_spill] sm:$0xff] %v3794_v24  ;;  %693 = vadd.xlane.f32.xlu1 %v692_v34  ;;  %v519_v27 = vmul.f32 0.00390625, %v452_v41  ;;  %696 = vadd.xlane.f32.xlu0 %v695_v25  ;;  %v625_v59 = vmul.f32 %v3791_v46, %v3791_v46  ;;  %v626_v60 = vmul.f32 %v3794_v24, %v3794_v24 }
 0x154   : > { %4576 = vst [vmem:[#allocation40_spill] sm:$0xff] %v3797_v13  ;;  %4577 = vst [vmem:[#allocation41_spill] sm:$0xff] %v3800_v26  ;;  %v520_v45 = vmul.f32 0.00390625, %v455_v42  ;;  %v627_v62 = vmul.f32 %v3797_v13, %v3797_v13  ;;  %v628_v63 = vmul.f32 %v3800_v26, %v3800_v26 }
 0x155   : > { %v3811_v15 = vsub.f32 %v3491_v6, %v519_v27  ;;  %v3814_v32 = vsub.f32 %v3494_v7, %v519_v27  ;;  %v701_v33 = vadd.f32 %v626_v60, %v625_v59 }
 0x156   : > { %v3817_v21 = vsub.f32 %v3497_v9, %v520_v45  ;;  %v3820_v34 = vsub.f32 %v3500_v12, %v520_v45  ;;  %v458_v51 = vpop.xlane.xlu0 %457  ;;  %v461_v52 = vpop.xlane.xlu1 %460  ;;  %v704_v54 = vadd.f32 %v628_v63, %v627_v62 }
 0x157   : > { %4578 = vst [vmem:[#allocation42_spill] sm:$0xff] %v3811_v15  ;;  %4579 = vst [vmem:[#allocation43_spill] sm:$0xff] %v3814_v32  ;;  %699 = vadd.xlane.f32.xlu1 %v698_v44  ;;  %v521_v35 = vmul.f32 0.00390625, %v458_v51  ;;  %702 = vadd.xlane.f32.xlu0 %v701_v33  ;;  %v629_v6 = vmul.f32 %v3811_v15, %v3811_v15  ;;  %v630_v7 = vmul.f32 %v3814_v32, %v3814_v32 }
 0x158   : > { %4580 = vst [vmem:[#allocation44_spill] sm:$0xff] %v3817_v21  ;;  %4581 = vst [vmem:[#allocation45_spill] sm:$0xff] %v3820_v34  ;;  %v522_v55 = vmul.f32 0.00390625, %v461_v52  ;;  %v631_v9 = vmul.f32 %v3817_v21, %v3817_v21  ;;  %v632_v12 = vmul.f32 %v3820_v34, %v3820_v34 }
 0x159   : > { %v3831_v25 = vsub.f32 %v3515_v30, %v521_v35  ;;  %v3834_v41 = vsub.f32 %v3518_v31, %v521_v35  ;;  %v707_v42 = vadd.f32 %v630_v7, %v629_v6 }
 0x15a   : > { %v3837_v27 = vsub.f32 %v3505_v19, %v522_v55  ;;  %v3840_v44 = vsub.f32 %v3512_v29, %v522_v55  ;;  %v464_v59 = vpop.xlane.xlu0 %463  ;;  %v467_v60 = vpop.xlane.xlu1 %466  ;;  %v710_v62 = vadd.f32 %v632_v12, %v631_v9 }
 0x15b   : > { %4582 = vst [vmem:[#allocation46_spill] sm:$0xff] %v3831_v25  ;;  %4583 = vst [vmem:[#allocation47_spill] sm:$0xff] %v3834_v41  ;;  %705 = vadd.xlane.f32.xlu1 %v704_v54  ;;  %v523_v45 = vmul.f32 0.00390625, %v464_v59  ;;  %708 = vadd.xlane.f32.xlu0 %v707_v42  ;;  %v633_v30 = vmul.f32 %v3831_v25, %v3831_v25  ;;  %v634_v31 = vmul.f32 %v3834_v41, %v3834_v41  ;;  %v4589_v54 = vld [vmem:[#allocation17_spill] sm:$0xff] }
 0x15c   : > { %4584 = vst [vmem:[#allocation48_spill] sm:$0xff] %v3837_v27  ;;  %4585 = vst [vmem:[#allocation49_spill] sm:$0xff] %v3840_v44  ;;  %v524_v63 = vmul.f32 0.00390625, %v467_v60  ;;  %v635_v19 = vmul.f32 %v3837_v27, %v3837_v27  ;;  %v636_v29 = vmul.f32 %v3840_v44, %v3840_v44  ;;  %v4591_v60 = vld [vmem:[#allocation18_spill] sm:$0xff] }
 0x15d   : > { %v3851_v33 = vsub.f32 %v3524_v38, %v523_v45  ;;  %v3854_v51 = vsub.f32 %v3527_v39, %v523_v45  ;;  %v713_v52 = vadd.f32 %v634_v31, %v633_v30 }
 0x15e   : > { %v3857_v35 = vsub.f32 %v3533_v47, %v524_v63  ;;  %v3860_v6 = vsub.f32 %v4589_v54, %v524_v63  ;;  %v470_v7 = vpop.xlane.xlu0 %469  ;;  %v473_v55 = vpop.xlane.xlu1 %472  ;;  %v716_v12 = vadd.f32 %v636_v29, %v635_v19  ;;  %v4595_v63 = vld [vmem:[#allocation20_spill] sm:$0xff]  ;;  %v4597_v29 = vld [vmem:[#allocation21_spill] sm:$0xff] }
 0x15f   : > { %4586 = vst [vmem:[#allocation50_spill] sm:$0xff] %v3851_v33  ;;  %4587 = vst [vmem:[#allocation51_spill] sm:$0xff] %v3854_v51  ;;  %711 = vadd.xlane.f32.xlu1 %v710_v62  ;;  %v525_v9 = vmul.f32 0.00390625, %v470_v7  ;;  %714 = vadd.xlane.f32.xlu0 %v713_v52  ;;  %v637_v38 = vmul.f32 %v3851_v33, %v3851_v33  ;;  %v638_v39 = vmul.f32 %v3854_v51, %v3854_v51  ;;  %v4593_v62 = vld [vmem:[#allocation19_spill] sm:$0xff] }
 0x160   : > { %4588 = vst [vmem:[#allocation52_spill] sm:$0xff] %v3857_v35  ;;  %4590 = vst [vmem:[#allocation17_spill] sm:$0xff] %v3860_v6  ;;  %v526_v42 = vmul.f32 0.00390625, %v473_v55  ;;  %v639_v47 = vmul.f32 %v3857_v35, %v3857_v35  ;;  %v640_v59 = vmul.f32 %v3860_v6, %v3860_v6 }
 0x161   : > { %v3871_v45 = vsub.f32 %v4591_v60, %v525_v9  ;;  %v3874_v30 = vsub.f32 %v4593_v62, %v525_v9  ;;  %v719_v31 = vadd.f32 %v638_v39, %v637_v38 }
 0x162   : > { %v3877_v19 = vsub.f32 %v4595_v63, %v526_v42  ;;  %v3880_v52 = vsub.f32 %v4597_v29, %v526_v42  ;;  %v476_v54 = vpop.xlane.xlu0 %475  ;;  %v722_v35 = vadd.f32 %v640_v59, %v639_v47  ;;  %v4599_v42 = vld [vmem:[#allocation22_spill] sm:$0xff]  ;;  %v4603_v59 = vld [vmem:[#allocation24_spill] sm:$0xff] }
 0x163   : > { %4592 = vst [vmem:[#allocation18_spill] sm:$0xff] %v3871_v45  ;;  %4594 = vst [vmem:[#allocation19_spill] sm:$0xff] %v3874_v30  ;;  %717 = vadd.xlane.f32.xlu1 %v716_v12  ;;  %v479_v7 = vpop.xlane.xlu1 %478  ;;  %v527_v55 = vmul.f32 0.00390625, %v476_v54  ;;  %720 = vadd.xlane.f32.xlu0 %v719_v31  ;;  %v641_v60 = vmul.f32 %v3871_v45, %v3871_v45  ;;  %v642_v9 = vmul.f32 %v3874_v30, %v3874_v30  ;;  %v4601_v12 = vld [vmem:[#allocation23_spill] sm:$0xff]  ;;  %v4605_v54 = vld [vmem:[#allocation25_spill] sm:$0xff] }
 0x164   : > { %4596 = vst [vmem:[#allocation20_spill] sm:$0xff] %v3877_v19  ;;  %4598 = vst [vmem:[#allocation21_spill] sm:$0xff] %v3880_v52  ;;  %v528_v62 = vmul.f32 0.00390625, %v479_v7  ;;  %v643_v38 = vmul.f32 %v3877_v19, %v3877_v19  ;;  %v644_v39 = vmul.f32 %v3880_v52, %v3880_v52 }
 0x165   : > { %v3891_v63 = vsub.f32 %v4599_v42, %v527_v55  ;;  %v3894_v29 = vsub.f32 %v4601_v12, %v527_v55  ;;  %v725_v47 = vadd.f32 %v642_v9, %v641_v60 }
 0x166   : > { %v3897_v31 = vsub.f32 %v4603_v59, %v528_v62  ;;  %v3900_v45 = vsub.f32 %v4605_v54, %v528_v62  ;;  %v482_v7 = vpop.xlane.xlu0 %481  ;;  %v728_v6 = vadd.f32 %v644_v39, %v643_v38  ;;  %v4607_v62 = vld [vmem:[#allocation26_spill] sm:$0xff]  ;;  %v4611_v39 = vld [vmem:[#allocation28_spill] sm:$0xff] }
 0x167   : > { %4600 = vst [vmem:[#allocation22_spill] sm:$0xff] %v3891_v63  ;;  %4602 = vst [vmem:[#allocation23_spill] sm:$0xff] %v3894_v29  ;;  %723 = vadd.xlane.f32.xlu1 %v722_v35  ;;  %v529_v19 = vmul.f32 0.00390625, %v482_v7  ;;  %726 = vadd.xlane.f32.xlu0 %v725_v47  ;;  %v645_v42 = vmul.f32 %v3891_v63, %v3891_v63  ;;  %v646_v55 = vmul.f32 %v3894_v29, %v3894_v29  ;;  %v4609_v35 = vld [vmem:[#allocation27_spill] sm:$0xff]  ;;  %v4613_v7 = vld [vmem:[#allocation29_spill] sm:$0xff] }
 0x168   : > { %4604 = vst [vmem:[#allocation24_spill] sm:$0xff] %v3897_v31  ;;  %4606 = vst [vmem:[#allocation25_spill] sm:$0xff] %v3900_v45  ;;  %v647_v60 = vmul.f32 %v3897_v31, %v3897_v31  ;;  %v648_v9 = vmul.f32 %v3900_v45, %v3900_v45 }
 0x169   : > { %v485_v30 = vpop.xlane.xlu1 %484  ;;  %v3911_v59 = vsub.f32 %v4607_v62, %v529_v19  ;;  %v3914_v54 = vsub.f32 %v4609_v35, %v529_v19  ;;  %v731_v38 = vadd.f32 %v646_v55, %v645_v42 }
 0x16a   : > { %v530_v12 = vmul.f32 0.00390625, %v485_v30  ;;  %v488_v30 = vpop.xlane.xlu0 %487  ;;  %v734_v52 = vadd.f32 %v648_v9, %v647_v60  ;;  %v4619_v9 = vld [vmem:[#allocation32_spill] sm:$0xff] }
 0x16b   : > { %4608 = vst [vmem:[#allocation26_spill] sm:$0xff] %v3911_v59  ;;  %4610 = vst [vmem:[#allocation27_spill] sm:$0xff] %v3914_v54  ;;  %729 = vadd.xlane.f32.xlu1 %v728_v6  ;;  %v531_v31 = vmul.f32 0.00390625, %v488_v30  ;;  %732 = vadd.xlane.f32.xlu0 %v731_v38  ;;  %v649_v62 = vmul.f32 %v3911_v59, %v3911_v59  ;;  %v650_v19 = vmul.f32 %v3914_v54, %v3914_v54  ;;  %v4617_v6 = vld [vmem:[#allocation31_spill] sm:$0xff]  ;;  %v4621_v30 = vld [vmem:[#allocation33_spill] sm:$0xff] }
 0x16c   : > { %v3917_v47 = vsub.f32 %v4611_v39, %v530_v12  ;;  %v3920_v63 = vsub.f32 %v4613_v7, %v530_v12  ;;  %v4615_v12 = vld [vmem:[#allocation30_spill] sm:$0xff] }
 0x16d   : > { %v491_v29 = vpop.xlane.xlu1 %490  ;;  %v3931_v39 = vsub.f32 %v4615_v12, %v531_v31  ;;  %v3934_v7 = vsub.f32 %v4617_v6, %v531_v31  ;;  %v737_v60 = vadd.f32 %v650_v19, %v649_v62 }
 0x16e   : > { %4612 = vst [vmem:[#allocation28_spill] sm:$0xff] %v3917_v47  ;;  %4614 = vst [vmem:[#allocation29_spill] sm:$0xff] %v3920_v63  ;;  %v532_v35 = vmul.f32 0.00390625, %v491_v29  ;;  %v651_v42 = vmul.f32 %v3917_v47, %v3917_v47  ;;  %v652_v55 = vmul.f32 %v3920_v63, %v3920_v63 }
 0x16f   : > { %4616 = vst [vmem:[#allocation30_spill] sm:$0xff] %v3931_v39  ;;  %4618 = vst [vmem:[#allocation31_spill] sm:$0xff] %v3934_v7  ;;  %735 = vadd.xlane.f32.xlu1 %v734_v52  ;;  %738 = vadd.xlane.f32.xlu0 %v737_v60  ;;  %v653_v12 = vmul.f32 %v3931_v39, %v3931_v39  ;;  %v654_v31 = vmul.f32 %v3934_v7, %v3934_v7 }
 0x170   : > { %v3937_v38 = vsub.f32 %v4619_v9, %v532_v35  ;;  %v3940_v59 = vsub.f32 %v4621_v30, %v532_v35  ;;  %v740_v45 = vadd.f32 %v652_v55, %v651_v42  ;;  %v4625_v55 = vld [vmem:[#allocation34_spill] sm:$0xff]  ;;  %v4627_v9 = vld [vmem:[#allocation35_spill] sm:$0xff] }
 0x171   : > { %v494_v29 = vpop.xlane.xlu0 %493  ;;  %v743_v42 = vadd.f32 %v654_v31, %v653_v12 }
 0x172   : > { %4620 = vst [vmem:[#allocation32_spill] sm:$0xff] %v3937_v38  ;;  %4622 = vst [vmem:[#allocation33_spill] sm:$0xff] %v3940_v59  ;;  %v497_v54 = vpop.xlane.xlu1 %496  ;;  %v533_v47 = vmul.f32 0.00390625, %v494_v29  ;;  %v655_v62 = vmul.f32 %v3937_v38, %v3937_v38  ;;  %v656_v19 = vmul.f32 %v3940_v59, %v3940_v59 }
 0x173   : > { %v534_v6 = vmul.f32 0.00390625, %v497_v54  ;;  %741 = vadd.xlane.f32.xlu1 %v740_v45  ;;  %744 = vadd.xlane.f32.xlu0 %v743_v42  ;;  %v4632_v42 = vld [vmem:[#allocation36_spill] sm:$0xff] }
 0x174   : > { %v3951_v35 = vsub.f32 %v3617_v16, %v533_v47  ;;  %v3954_v52 = vsub.f32 %v3620_v1, %v533_v47  ;;  %v746_v7 = vadd.f32 %v656_v19, %v655_v62 }
 0x175   : > { %v3957_v60 = vsub.f32 %v4625_v55, %v534_v6  ;;  %v3960_v30 = vsub.f32 %v4627_v9, %v534_v6  ;;  %v500_v54 = vpop.xlane.xlu0 %499 }
 0x176   : > { %4623 = vst [vmem:[#allocation53_spill] sm:$0xff] %v3951_v35  ;;  %4624 = vst [vmem:[#allocation54_spill] sm:$0xff] %v3954_v52  ;;  %v503_v29 = vpop.xlane.xlu1 %502  ;;  %v535_v38 = vmul.f32 0.00390625, %v500_v54  ;;  %v657_v16 = vmul.f32 %v3951_v35, %v3951_v35  ;;  %v658_v1 = vmul.f32 %v3954_v52, %v3954_v52 }
 0x177   : > { %4626 = vst [vmem:[#allocation34_spill] sm:$0xff] %v3957_v60  ;;  %4628 = vst [vmem:[#allocation35_spill] sm:$0xff] %v3960_v30  ;;  %v536_v47 = vmul.f32 0.00390625, %v503_v29  ;;  %v659_v12 = vmul.f32 %v3957_v60, %v3957_v60  ;;  %v660_v31 = vmul.f32 %v3960_v30, %v3960_v30  ;;  %747 = vadd.xlane.f32.xlu1 %v746_v7 }
 0x178   : > { %v3971_v6 = vsub.f32 %v3637_v57, %v535_v38  ;;  %v3974_v45 = vsub.f32 %v3640_v8, %v535_v38  ;;  %v749_v62 = vadd.f32 %v658_v1, %v657_v16  ;;  %v987_v16 = vlaneseq }
 0x179   : > { %v3977_v19 = vsub.f32 %v3649_v5, %v536_v47  ;;  %v3980_v55 = vsub.f32 %v4632_v42, %v536_v47  ;;  %v752_v9 = vadd.f32 %v660_v31, %v659_v12  ;;  %v985_v47 = vld [vmem:[%s4452_s3] sm:$0x3] }
 0x17a   : > { %4629 = vst [vmem:[#allocation55_spill] sm:$0xff] %v3971_v6  ;;  %4630 = vst [vmem:[#allocation56_spill] sm:$0xff] %v3974_v45  ;;  %750 = vadd.xlane.f32.xlu0 %v749_v62  ;;  %v661_v54 = vmul.f32 %v3971_v6, %v3971_v6  ;;  %v662_v57 = vmul.f32 %v3974_v45, %v3974_v45  ;;  %v3990_v7 = vshrl.u32 %v987_v16, 7 }
 0x17b   : > { %4631 = vst [vmem:[#allocation57_spill] sm:$0xff] %v3977_v19  ;;  %4633 = vst [vmem:[#allocation36_spill] sm:$0xff] %v3980_v55  ;;  %v663_v8 = vmul.f32 %v3977_v19, %v3977_v19  ;;  %v664_v38 = vmul.f32 %v3980_v55, %v3980_v55  ;;  %753 = vadd.xlane.f32.xlu1 %v752_v9 }
 0x17c   : > { %v755_v5 = vadd.f32 %v662_v57, %v661_v54  ;;  %v4501_v1 = vsub.s32 0, %v3990_v7  ;;  %v4504_v12 = vsub.s32 1, %v3990_v7 }
 0x17d   : > { %v758_v29 = vadd.f32 %v664_v38, %v663_v8 }
 0x17e   : > { %756 = vadd.xlane.f32.xlu0 %v755_v5  ;;  %v3999_v31 = vrot.slane %v985_v47, %v4501_v1  ;;  %v4003_v62 = vrot.slane %v985_v47, %v4504_v12 }
 0x17f   : > { %759 = vadd.xlane.f32.xlu1 %v758_v29 }
 0x195   : > { %v1111_v42 = vpop.f32.mrb[0].mxu0  ;;  %v1191_v9 = vpop.f32.mrb[0].mxu1 }
 0x196   : > { %v1112_v54 = vadd.f32 %v1111_v42, %v3999_v31  ;;  %v1113_v57 = vpop.f32.mrb[1].mxu0  ;;  %v1192_v8 = vadd.f32 %v1191_v9, %v3999_v31  ;;  %v1193_v38 = vpop.f32.mrb[1].mxu1 }
 0x197   : > { %v1114_v5 = vadd.f32 %v1113_v57, %v4003_v62  ;;  %v1115_v29 = vpop.f32.mrb[2].mxu0  ;;  %v1194_v16 = vadd.f32 %v1193_v38, %v4003_v62  ;;  %v1195_v55 = vpop.f32.mrb[2].mxu1 }
 0x198   : > { %v1116_v1 = vadd.f32 %v1115_v29, %v3999_v31  ;;  %v1117_v19 = vpop.f32.mrb[3].mxu0  ;;  %v1302_v45 = vmax.f32 %v1192_v8, 0.0  ;;  %v1196_v47 = vadd.f32 %v1195_v55, %v3999_v31  ;;  %v1197_v12 = vpop.f32.mrb[3].mxu1  ;;  %v1270_v9 = vmax.f32 %v1112_v54, 0.0 }
 0x199   : > { %v1118_v6 = vadd.f32 %v1117_v19, %v4003_v62  ;;  %v1303_v42 = vmax.f32 %v1194_v16, 0.0  ;;  %v1198_v30 = vadd.f32 %v1197_v12, %v4003_v62  ;;  %v1271_v57 = vmax.f32 %v1114_v5, 0.0 }
 0x19a   : > { %v1272_v60 = vmax.f32 %v1116_v1, 0.0  ;;  %v1304_v52 = vmax.f32 %v1196_v47, 0.0 }
 0x19b   : > { %v1273_v35 = vmax.f32 %v1118_v6, 0.0  ;;  %v1305_v59 = vmax.f32 %v1198_v30, 0.0 }
 0x19c   : > { %v1334_v38 = vpack.c.bf16 %v1272_v60, %v1270_v9  ;;  %v4013_v39 = vpack.c.bf16 %v1304_v52, %v1302_v45 }
 0x19d   : > { %v1335_v29 = vpack.c.bf16 %v1273_v35, %v1271_v57  ;;  %v1121_v63 = vpop.f32.mrb[4].mxu0  ;;  %v4015_v8 = vpack.c.bf16 %v1305_v59, %v1303_v42  ;;  %v1201_v55 = vpop.f32.mrb[4].mxu1 }
 0x19e   : > { %v1122_v51 = vadd.f32 %v1121_v63, %v3999_v31  ;;  %v1123_v19 = vpop.f32.mrb[5].mxu0  ;;  %v1202_v16 = vadd.f32 %v1201_v55, %v3999_v31  ;;  %v1203_v12 = vpop.f32.mrb[5].mxu1 }
 0x19f   : > { %v1124_v1 = vadd.f32 %v1123_v19, %v4003_v62  ;;  %v1125_v54 = vpop.f32.mrb[6].mxu0  ;;  %1804 = vmatprep.mubr.bf16.mxu1 %v1335_v29  ;;  %1997 = vmatprep.mubr.bf16.mxu0 %v1335_v29  ;;  %v1204_v60 = vadd.f32 %v1203_v12, %v4003_v62  ;;  %v1205_v52 = vpop.f32.mrb[6].mxu1 }
 0x1a0   : > { %v1126_v35 = vadd.f32 %v1125_v54, %v3999_v31  ;;  %v1127_v30 = vpop.f32.mrb[7].mxu0  ;;  %1805 = vmatmul.mubr.bf16.vlgmr.msra.gmra.mrb[32].mxu1 %v1334_v38  ;;  %1998 = vmatmul.mubr.bf16.vlgmr.msra.gmra.mrb[32].mxu0 %v1334_v38  ;;  %v1306_v59 = vmax.f32 %v1202_v16, 0.0  ;;  %v1206_v63 = vadd.f32 %v1205_v52, %v3999_v31  ;;  %v1207_v6 = vpop.f32.mrb[7].mxu1  ;;  %v1274_v42 = vmax.f32 %v1122_v51, 0.0 }
 0x1a1   : > { %v1128_v45 = vadd.f32 %v1127_v30, %v4003_v62  ;;  %v1307_v5 = vmax.f32 %v1204_v60, 0.0  ;;  %v1208_v47 = vadd.f32 %v1207_v6, %v4003_v62  ;;  %v1275_v29 = vmax.f32 %v1124_v1, 0.0 }
 0x1a2   : > { %v1276_v9 = vmax.f32 %v1126_v35, 0.0  ;;  %v1308_v57 = vmax.f32 %v1206_v63, 0.0 }
 0x1a3   : > { %v1277_v55 = vmax.f32 %v1128_v45, 0.0  ;;  %v1309_v19 = vmax.f32 %v1208_v47, 0.0 }
 0x1a4   : > { %v1336_v12 = vpack.c.bf16 %v1276_v9, %v1274_v42  ;;  %v4025_v54 = vpack.c.bf16 %v1308_v57, %v1306_v59 }
 0x1a5   : > { %v1337_v33 = vpack.c.bf16 %v1277_v55, %v1275_v29  ;;  %v1131_v38 = vpop.f32.mrb[8].mxu0  ;;  %v4027_v16 = vpack.c.bf16 %v1309_v19, %v1307_v5  ;;  %v1211_v52 = vpop.f32.mrb[8].mxu1 }
 0x1a6   : > { %v1132_v44 = vadd.f32 %v1131_v38, %v3999_v31  ;;  %v1133_v30 = vpop.f32.mrb[9].mxu0  ;;  %v1212_v60 = vadd.f32 %v1211_v52, %v3999_v31  ;;  %v1213_v6 = vpop.f32.mrb[9].mxu1 }
 0x1a7   : > { %v1134_v51 = vadd.f32 %v1133_v30, %v4003_v62  ;;  %v1135_v35 = vpop.f32.mrb[10].mxu0  ;;  %1814 = vmatprep.mubr.bf16.mxu1 %v1337_v33  ;;  %2007 = vmatprep.mubr.bf16.mxu0 %v1337_v33  ;;  %v1214_v1 = vadd.f32 %v1213_v6, %v4003_v62  ;;  %v1215_v59 = vpop.f32.mrb[10].mxu1 }
 0x1a8   : > { %v1136_v63 = vadd.f32 %v1135_v35, %v3999_v31  ;;  %v1137_v45 = vpop.f32.mrb[11].mxu0  ;;  %1815 = vmatmul.mubr.bf16.gmra.mrb[36].mxu1 %v1336_v12  ;;  %2008 = vmatmul.mubr.bf16.gmra.mrb[36].mxu0 %v1336_v12  ;;  %v1310_v5 = vmax.f32 %v1212_v60, 0.0  ;;  %v1216_v47 = vadd.f32 %v1215_v59, %v3999_v31  ;;  %v1217_v42 = vpop.f32.mrb[11].mxu1  ;;  %v1278_v55 = vmax.f32 %v1132_v44, 0.0 }
 0x1a9   : > { %v1138_v9 = vadd.f32 %v1137_v45, %v4003_v62  ;;  %v1311_v57 = vmax.f32 %v1214_v1, 0.0  ;;  %v1218_v29 = vadd.f32 %v1217_v42, %v4003_v62  ;;  %v1279_v38 = vmax.f32 %v1134_v51, 0.0 }
 0x1aa   : > { %v1280_v19 = vmax.f32 %v1136_v63, 0.0  ;;  %v1312_v33 = vmax.f32 %v1216_v47, 0.0 }
 0x1ab   : > { %v1281_v52 = vmax.f32 %v1138_v9, 0.0  ;;  %v1313_v30 = vmax.f32 %v1218_v29, 0.0 }
 0x1ac   : > { %v1338_v6 = vpack.c.bf16 %v1280_v19, %v1278_v55  ;;  %v4037_v35 = vpack.c.bf16 %v1312_v33, %v1310_v5 }
 0x1ad   : > { %v1339_v27 = vpack.c.bf16 %v1281_v52, %v1279_v38  ;;  %v1141_v12 = vpop.f32.mrb[12].mxu0  ;;  %v4039_v60 = vpack.c.bf16 %v1313_v30, %v1311_v57  ;;  %v1221_v59 = vpop.f32.mrb[12].mxu1 }
 0x1ae   : > { %v1142_v41 = vadd.f32 %v1141_v12, %v3999_v31  ;;  %v1143_v45 = vpop.f32.mrb[13].mxu0  ;;  %v1222_v1 = vadd.f32 %v1221_v59, %v3999_v31  ;;  %v1223_v42 = vpop.f32.mrb[13].mxu1 }
 0x1af   : > { %v1144_v44 = vadd.f32 %v1143_v45, %v4003_v62  ;;  %v1145_v63 = vpop.f32.mrb[14].mxu0  ;;  %1824 = vmatprep.mubr.bf16.mxu1 %v1339_v27  ;;  %2017 = vmatprep.mubr.bf16.mxu0 %v1339_v27  ;;  %v1224_v51 = vadd.f32 %v1223_v42, %v4003_v62  ;;  %v1225_v5 = vpop.f32.mrb[14].mxu1 }
 0x1b0   : > { %v1146_v47 = vadd.f32 %v1145_v63, %v3999_v31  ;;  %v1147_v9 = vpop.f32.mrb[15].mxu0  ;;  %1825 = vmatmul.mubr.bf16.gmra.mrb[40].mxu1 %v1338_v6  ;;  %2018 = vmatmul.mubr.bf16.gmra.mrb[40].mxu0 %v1338_v6  ;;  %v1314_v57 = vmax.f32 %v1222_v1, 0.0  ;;  %v1226_v29 = vadd.f32 %v1225_v5, %v3999_v31  ;;  %v1227_v55 = vpop.f32.mrb[15].mxu1  ;;  %v1282_v52 = vmax.f32 %v1142_v41, 0.0 }
 0x1b1   : > { %v1148_v19 = vadd.f32 %v1147_v9, %v4003_v62  ;;  %v1315_v33 = vmax.f32 %v1224_v51, 0.0  ;;  %v1228_v38 = vadd.f32 %v1227_v55, %v4003_v62  ;;  %v1283_v12 = vmax.f32 %v1144_v44, 0.0 }
 0x1b2   : > { %v1284_v30 = vmax.f32 %v1146_v47, 0.0  ;;  %v1316_v27 = vmax.f32 %v1226_v29, 0.0 }
 0x1b3   : > { %v1285_v59 = vmax.f32 %v1148_v19, 0.0  ;;  %v1317_v45 = vmax.f32 %v1228_v38, 0.0 }
 0x1b4   : > { %v1340_v42 = vpack.c.bf16 %v1284_v30, %v1282_v52  ;;  %v4049_v63 = vpack.c.bf16 %v1316_v27, %v1314_v57 }
 0x1b5   : > { %v1341_v25 = vpack.c.bf16 %v1285_v59, %v1283_v12  ;;  %v1151_v6 = vpop.f32.mrb[16].mxu0  ;;  %v4051_v1 = vpack.c.bf16 %v1317_v45, %v1315_v33  ;;  %v1231_v5 = vpop.f32.mrb[16].mxu1 }
 0x1b6   : > { %v1152_v34 = vadd.f32 %v1151_v6, %v3999_v31  ;;  %v1153_v9 = vpop.f32.mrb[17].mxu0  ;;  %v1232_v51 = vadd.f32 %v1231_v5, %v3999_v31  ;;  %v1233_v55 = vpop.f32.mrb[17].mxu1 }
 0x1b7   : > { %v1154_v41 = vadd.f32 %v1153_v9, %v4003_v62  ;;  %v1155_v47 = vpop.f32.mrb[18].mxu0  ;;  %1834 = vmatprep.mubr.bf16.mxu1 %v1341_v25  ;;  %2027 = vmatprep.mubr.bf16.mxu0 %v1341_v25  ;;  %v1234_v44 = vadd.f32 %v1233_v55, %v4003_v62  ;;  %v1235_v57 = vpop.f32.mrb[18].mxu1 }
 0x1b8   : > { %v1156_v29 = vadd.f32 %v1155_v47, %v3999_v31  ;;  %v1157_v19 = vpop.f32.mrb[19].mxu0  ;;  %1835 = vmatmul.mubr.bf16.gmra.mrb[44].mxu1 %v1340_v42  ;;  %2028 = vmatmul.mubr.bf16.gmra.mrb[44].mxu0 %v1340_v42  ;;  %v1318_v33 = vmax.f32 %v1232_v51, 0.0  ;;  %v1236_v38 = vadd.f32 %v1235_v57, %v3999_v31  ;;  %v1237_v52 = vpop.f32.mrb[19].mxu1  ;;  %v1286_v59 = vmax.f32 %v1152_v34, 0.0 }
 0x1b9   : > { %v1158_v30 = vadd.f32 %v1157_v19, %v4003_v62  ;;  %v1319_v27 = vmax.f32 %v1234_v44, 0.0  ;;  %v1238_v12 = vadd.f32 %v1237_v52, %v4003_v62  ;;  %v1287_v6 = vmax.f32 %v1154_v41, 0.0 }
 0x1ba   : > { %v1288_v45 = vmax.f32 %v1156_v29, 0.0  ;;  %v1320_v25 = vmax.f32 %v1236_v38, 0.0 }
 0x1bb   : > { %v1289_v5 = vmax.f32 %v1158_v30, 0.0  ;;  %v1321_v9 = vmax.f32 %v1238_v12, 0.0 }
 0x1bc   : > { %v1342_v55 = vpack.c.bf16 %v1288_v45, %v1286_v59  ;;  %v4061_v47 = vpack.c.bf16 %v1320_v25, %v1318_v33 }
 0x1bd   : > { %v1343_v21 = vpack.c.bf16 %v1289_v5, %v1287_v6  ;;  %v1161_v42 = vpop.f32.mrb[20].mxu0  ;;  %v4063_v51 = vpack.c.bf16 %v1321_v9, %v1319_v27  ;;  %v1241_v57 = vpop.f32.mrb[20].mxu1 }
 0x1be   : > { %v1162_v32 = vadd.f32 %v1161_v42, %v3999_v31  ;;  %v1163_v19 = vpop.f32.mrb[21].mxu0  ;;  %v1242_v44 = vadd.f32 %v1241_v57, %v3999_v31  ;;  %v1243_v52 = vpop.f32.mrb[21].mxu1 }
 0x1bf   : > { %v1164_v34 = vadd.f32 %v1163_v19, %v4003_v62  ;;  %v1165_v29 = vpop.f32.mrb[22].mxu0  ;;  %1844 = vmatprep.mubr.bf16.mxu1 %v1343_v21  ;;  %2037 = vmatprep.mubr.bf16.mxu0 %v1343_v21  ;;  %v1244_v41 = vadd.f32 %v1243_v52, %v4003_v62  ;;  %v1245_v33 = vpop.f32.mrb[22].mxu1 }
 0x1c0   : > { %v1166_v38 = vadd.f32 %v1165_v29, %v3999_v31  ;;  %v1167_v30 = vpop.f32.mrb[23].mxu0  ;;  %1845 = vmatmul.mubr.bf16.gmra.mrb[48].mxu1 %v1342_v55  ;;  %2038 = vmatmul.mubr.bf16.gmra.mrb[48].mxu0 %v1342_v55  ;;  %v1322_v27 = vmax.f32 %v1242_v44, 0.0  ;;  %v1246_v12 = vadd.f32 %v1245_v33, %v3999_v31  ;;  %v1247_v59 = vpop.f32.mrb[23].mxu1  ;;  %v1290_v5 = vmax.f32 %v1162_v32, 0.0 }
 0x1c1   : > { %v1168_v45 = vadd.f32 %v1167_v30, %v4003_v62  ;;  %v1323_v25 = vmax.f32 %v1244_v41, 0.0  ;;  %v1248_v6 = vadd.f32 %v1247_v59, %v4003_v62  ;;  %v1291_v42 = vmax.f32 %v1164_v34, 0.0 }
 0x1c2   : > { %v1292_v9 = vmax.f32 %v1166_v38, 0.0  ;;  %v1324_v21 = vmax.f32 %v1246_v12, 0.0 }
 0x1c3   : > { %v1293_v57 = vmax.f32 %v1168_v45, 0.0  ;;  %v1325_v19 = vmax.f32 %v1248_v6, 0.0 }
 0x1c4   : > { %v1344_v52 = vpack.c.bf16 %v1292_v9, %v1290_v5  ;;  %v4073_v29 = vpack.c.bf16 %v1324_v21, %v1322_v27 }
 0x1c5   : > { %v1345_v15 = vpack.c.bf16 %v1293_v57, %v1291_v42  ;;  %v1171_v55 = vpop.f32.mrb[24].mxu0  ;;  %v4075_v44 = vpack.c.bf16 %v1325_v19, %v1323_v25  ;;  %v1251_v33 = vpop.f32.mrb[24].mxu1 }
 0x1c6   : > { %v1172_v26 = vadd.f32 %v1171_v55, %v3999_v31  ;;  %v1173_v30 = vpop.f32.mrb[25].mxu0  ;;  %v1252_v41 = vadd.f32 %v1251_v33, %v3999_v31  ;;  %v1253_v59 = vpop.f32.mrb[25].mxu1 }
 0x1c7   : > { %v1174_v32 = vadd.f32 %v1173_v30, %v4003_v62  ;;  %v1175_v38 = vpop.f32.mrb[26].mxu0  ;;  %1854 = vmatprep.mubr.bf16.mxu1 %v1345_v15  ;;  %2047 = vmatprep.mubr.bf16.mxu0 %v1345_v15  ;;  %v1254_v34 = vadd.f32 %v1253_v59, %v4003_v62  ;;  %v1255_v27 = vpop.f32.mrb[26].mxu1 }
 0x1c8   : > { %v1176_v12 = vadd.f32 %v1175_v38, %v3999_v31  ;;  %v1177_v45 = vpop.f32.mrb[27].mxu0  ;;  %1855 = vmatmul.mubr.bf16.gmra.mrb[52].mxu1 %v1344_v52  ;;  %2048 = vmatmul.mubr.bf16.gmra.mrb[52].mxu0 %v1344_v52  ;;  %v1326_v25 = vmax.f32 %v1252_v41, 0.0  ;;  %v1256_v6 = vadd.f32 %v1255_v27, %v3999_v31  ;;  %v1257_v5 = vpop.f32.mrb[27].mxu1  ;;  %v1294_v57 = vmax.f32 %v1172_v26, 0.0 }
 0x1c9   : > { %v1178_v9 = vadd.f32 %v1177_v45, %v4003_v62  ;;  %v1327_v21 = vmax.f32 %v1254_v34, 0.0  ;;  %v1258_v42 = vadd.f32 %v1257_v5, %v4003_v62  ;;  %v1295_v55 = vmax.f32 %v1174_v32, 0.0 }
 0x1ca   : > { %v1296_v19 = vmax.f32 %v1176_v12, 0.0  ;;  %v1328_v15 = vmax.f32 %v1256_v6, 0.0 }
 0x1cb   : > { %v1297_v33 = vmax.f32 %v1178_v9, 0.0  ;;  %v1329_v30 = vmax.f32 %v1258_v42, 0.0 }
 0x1cc   : > { %v1346_v59 = vpack.c.bf16 %v1296_v19, %v1294_v57  ;;  %v4085_v38 = vpack.c.bf16 %v1328_v15, %v1326_v25 }
 0x1cd   : > { %v1347_v13 = vpack.c.bf16 %v1297_v33, %v1295_v55  ;;  %v1181_v52 = vpop.f32.mrb[28].mxu0  ;;  %v1363_v41 = vpack.c.bf16 %v1329_v30, %v1327_v21  ;;  %v1261_v24 = vpop.f32.mrb[28].mxu1 }
 0x1ce   : > { %v1182_v27 = vadd.f32 %v1181_v52, %v3999_v31  ;;  %v1183_v46 = vpop.f32.mrb[29].mxu0  ;;  %v1262_v34 = vadd.f32 %v1261_v24, %v3999_v31  ;;  %v1263_v45 = vpop.f32.mrb[29].mxu1 }
 0x1cf   : > { %v1184_v26 = vadd.f32 %v1183_v46, %v4003_v62  ;;  %v1185_v12 = vpop.f32.mrb[30].mxu0  ;;  %1864 = vmatprep.mubr.bf16.mxu1 %v1347_v13  ;;  %2057 = vmatprep.mubr.bf16.mxu0 %v1347_v13  ;;  %v1264_v32 = vadd.f32 %v1263_v45, %v4003_v62  ;;  %v1265_v6 = vpop.f32.mrb[30].mxu1 }
 0x1d0   : > { %v1186_v25 = vadd.f32 %v1185_v12, %v3999_v31  ;;  %v1187_v5 = vpop.f32.mrb[31].mxu0  ;;  %1865 = vmatmul.mubr.bf16.gmra.mrb[56].mxu1 %v1346_v59  ;;  %2058 = vmatmul.mubr.bf16.gmra.mrb[56].mxu0 %v1346_v59  ;;  %v1330_v9 = vmax.f32 %v1262_v34, 0.0  ;;  %v1266_v21 = vadd.f32 %v1265_v6, %v3999_v31  ;;  %v1267_v42 = vpop.f32.mrb[31].mxu1  ;;  %v1298_v19 = vmax.f32 %v1182_v27, 0.0 }
 0x1d1   : > { %v1188_v24 = vadd.f32 %v1187_v5, %v4003_v62  ;;  %v1331_v57 = vmax.f32 %v1264_v32, 0.0  ;;  %v1268_v46 = vadd.f32 %v1267_v42, %v4003_v62  ;;  %v1299_v55 = vmax.f32 %v1184_v26, 0.0  ;;  %v670_v31 = vpop.xlane.xlu1 %669 }
 0x1d2   : > { %v1300_v15 = vmax.f32 %v1186_v25, 0.0  ;;  %v1332_v13 = vmax.f32 %v1266_v21, 0.0  ;;  %v1442_v27 = vsub.s32 2, %v3990_v7  ;;  %v1446_v34 = vsub.s32 3, %v3990_v7 }
 0x1d3   : > { %v1301_v33 = vmax.f32 %v1188_v24, 0.0  ;;  %v1333_v30 = vmax.f32 %v1268_v46, 0.0  ;;  %v4634_v6 = vsub.s32 0, %v3990_v7  ;;  %v4635_v21 = vsub.s32 1, %v3990_v7 }
 0x1d4   : > { %v1348_v52 = vpack.c.bf16 %v1300_v15, %v1298_v19  ;;  %v1364_v45 = vpack.c.bf16 %v1332_v13, %v1330_v9 }
 0x1d5   : > { %v1349_v12 = vpack.c.bf16 %v1301_v33, %v1299_v55  ;;  %v1365_v56 = vpack.c.bf16 %v1333_v30, %v1331_v57 }
 0x1d7   : > { %1874 = vmatprep.mubr.bf16.mxu1 %v1349_v12  ;;  %2067 = vmatprep.mubr.bf16.mxu0 %v1349_v12 }
 0x1d8   : > { %1875 = vmatmul.mubr.bf16.gmra.mrb[60].mxu1 %v1348_v52  ;;  %2068 = vmatmul.mubr.bf16.gmra.mrb[60].mxu0 %v1348_v52 }
 0x1d9   : > { %1884 = vmatprep.mubr.bf16.mxu1 %v4015_v8  ;;  %2077 = vmatprep.mubr.bf16.mxu0 %v4015_v8  ;;  %v762_v8 = vmul.f32 0.00390625, %v670_v31 }
 0x1e0   : > { %1885 = vmatmul.mubr.bf16.gmra.mrb[64].mxu1 %v4013_v39  ;;  %2078 = vmatmul.mubr.bf16.gmra.mrb[64].mxu0 %v4013_v39  ;;  %v667_v39 = vpop.xlane.xlu0 %666 }
 0x1e1   : > { %1894 = vmatprep.mubr.bf16.mxu1 %v4027_v16  ;;  %2087 = vmatprep.mubr.bf16.mxu0 %v4027_v16  ;;  %v761_v62 = vmul.f32 0.00390625, %v667_v39 }
 0x1e3   : > { %v793_v16 = vadd.f32 1e-05, %v761_v62 }
 0x1e5   : > { %2804 = vrsqrt.f32 %v793_v16 }
 0x1e8   : > { %1895 = vmatmul.mubr.bf16.gmra.mrb[68].mxu1 %v4025_v54  ;;  %2088 = vmatmul.mubr.bf16.gmra.mrb[68].mxu0 %v4025_v54  ;;  %v673_v54 = vpop.xlane.xlu0 %672 }
 0x1e9   : > { %1904 = vmatprep.mubr.bf16.mxu1 %v4039_v60  ;;  %2097 = vmatprep.mubr.bf16.mxu0 %v4039_v60  ;;  %v794_v60 = vadd.f32 1e-05, %v762_v8 }
 0x1eb   : > { %2806 = vrsqrt.f32 %v794_v60 }
 0x1ef   : > { %v2805_v5 = vpop.eup %2804 }
 0x1f0   : > { %1905 = vmatmul.mubr.bf16.gmra.mrb[72].mxu1 %v4037_v35  ;;  %2098 = vmatmul.mubr.bf16.gmra.mrb[72].mxu0 %v4037_v35  ;;  %v676_v35 = vpop.xlane.xlu1 %675  ;;  %v857_v30 = vmul.f32 %v2805_v5, %v3671_v17  ;;  %v858_v39 = vmul.f32 %v2805_v5, %v3674_v36 }
 0x1f1   : > { %1914 = vmatprep.mubr.bf16.mxu1 %v4051_v1  ;;  %2107 = vmatprep.mubr.bf16.mxu0 %v4051_v1  ;;  %v763_v1 = vmul.f32 0.00390625, %v673_v54 }
 0x1f5   : > { %v2807_v19 = vpop.eup %2806 }
 0x1f8   : > { %1915 = vmatmul.mubr.bf16.gmra.mrb[76].mxu1 %v4049_v63  ;;  %2108 = vmatmul.mubr.bf16.gmra.mrb[76].mxu0 %v4049_v63  ;;  %v679_v63 = vpop.xlane.xlu0 %678 }
 0x1f9   : > { %1924 = vmatprep.mubr.bf16.mxu1 %v4063_v51  ;;  %2117 = vmatprep.mubr.bf16.mxu0 %v4063_v51  ;;  %v682_v51 = vpop.xlane.xlu1 %681 }
 0x1fc   : > { %v685_v59 = vpop.xlane.xlu0 %684 }
 0x1fd   : > { %v767_v32 = vmul.f32 0.00390625, %v685_v59  ;;  %v688_v24 = vpop.xlane.xlu1 %687 }
 0x1fe   : > { %v768_v7 = vmul.f32 0.00390625, %v688_v24 }
 0x1ff   : > { %v799_v33 = vadd.f32 1e-05, %v767_v32 }
 0x200   : > { %1925 = vmatmul.mubr.bf16.gmra.mrb[80].mxu1 %v4061_v47  ;;  %2118 = vmatmul.mubr.bf16.gmra.mrb[80].mxu0 %v4061_v47  ;;  %v764_v47 = vmul.f32 0.00390625, %v676_v35  ;;  %v691_v57 = vpop.xlane.xlu0 %690  ;;  %v859_v35 = vmul.f32 %v2807_v19, %v3691_v37 }
 0x201   : > { %1934 = vmatprep.mubr.bf16.mxu1 %v4075_v44  ;;  %2127 = vmatprep.mubr.bf16.mxu0 %v4075_v44  ;;  %v765_v44 = vmul.f32 0.00390625, %v679_v63 }
 0x203   : > { %v797_v26 = vadd.f32 1e-05, %v765_v44 }
 0x204   : > { %v697_v32 = vpop.xlane.xlu0 %696 }
 0x208   : > { %1935 = vmatmul.mubr.bf16.gmra.mrb[84].mxu1 %v4073_v29  ;;  %2128 = vmatmul.mubr.bf16.gmra.mrb[84].mxu0 %v4073_v29  ;;  %v795_v29 = vadd.f32 1e-05, %v763_v1 }
 0x209   : > { %1944 = vmatprep.mubr.bf16.mxu1 %v1363_v41  ;;  %2137 = vmatprep.mubr.bf16.mxu0 %v1363_v41  ;;  %v1430_v41 = vld [vmem:[%s4454_s5] sm:$0xf] }
 0x20a   : > { %2808 = vrsqrt.f32 %v795_v29  ;;  %v4128_v25 = vrot.slane %v1430_v41, %v4634_v6  ;;  %v4132_v42 = vrot.slane %v1430_v41, %v4635_v21  ;;  %v4134_v46 = vrot.slane %v1430_v41, %v1442_v27 }
 0x20b   : > { %v4136_v55 = vrot.slane %v1430_v41, %v1446_v34  ;;  %v769_v29 = vmul.f32 0.00390625, %v691_v57  ;;  %v800_v41 = vadd.f32 1e-05, %v768_v7 }
 0x20d   : > { %v801_v24 = vadd.f32 1e-05, %v769_v29 }
 0x210   : > { %1945 = vmatmul.mubr.bf16.gmra.mrb[88].mxu1 %v4085_v38  ;;  %2138 = vmatmul.mubr.bf16.gmra.mrb[88].mxu0 %v4085_v38  ;;  %v766_v38 = vmul.f32 0.00390625, %v682_v51  ;;  %v860_v51 = vmul.f32 %v2807_v19, %v3694_v14 }
 0x211   : > { %1954 = vmatprep.mubr.bf16.mxu1 %v1365_v56  ;;  %2147 = vmatprep.mubr.bf16.mxu0 %v1365_v56  ;;  %v796_v56 = vadd.f32 1e-05, %v764_v47 }
 0x212   : > { %v798_v9 = vadd.f32 1e-05, %v766_v38 }
 0x213   : > { %2810 = vrsqrt.f32 %v796_v56 }
 0x214   : > { %2812 = vrsqrt.f32 %v797_v26  ;;  %v2809_v38 = vpop.eup %2808  ;;  %v694_v26 = vpop.xlane.xlu1 %693 }
 0x215   : > { %2814 = vrsqrt.f32 %v798_v9  ;;  %v861_v57 = vmul.f32 %v2809_v38, %v3677_v28 }
 0x216   : > { %2816 = vrsqrt.f32 %v799_v33 }
 0x217   : > { %2818 = vrsqrt.f32 %v800_v41 }
 0x218   : > { %1955 = vmatmul.mubr.bf16.gmra.mrb[92].mxu1 %v1364_v45  ;;  %2148 = vmatmul.mubr.bf16.gmra.mrb[92].mxu0 %v1364_v45  ;;  %2820 = vrsqrt.f32 %v801_v24 }
 0x21d   : > { %v2811_v6 = vpop.eup %2810 }
 0x273   : > { %v1806_v15 = vpop.f32.mrb[32].mxu1  ;;  %v1999_v13 = vpop.f32.mrb[32].mxu0 }
 0x274   : > { %v1807_v52 = vadd.f32 %v1806_v15, %v4128_v25  ;;  %v1808_v45 = vpop.f32.mrb[33].mxu1  ;;  %v2001_v12 = vpop.f32.mrb[33].mxu0  ;;  %v2000_v16 = vadd.f32 %v1999_v13, %v4134_v46 }
 0x275   : > { %v1809_v31 = vadd.f32 %v1808_v45, %v4132_v42  ;;  %v1810_v62 = vpop.f32.mrb[34].mxu1  ;;  %v2003_v8 = vpop.f32.mrb[34].mxu0  ;;  %v2002_v47 = vadd.f32 %v2001_v12, %v4136_v55 }
 0x276   : > { %v2158_v54 = vmul.f32 %v1807_v52, %v857_v30  ;;  %v1811_v60 = vadd.f32 %v1810_v62, %v4128_v25  ;;  %v1812_v17 = vpop.f32.mrb[35].mxu1  ;;  %v2005_v63 = vpop.f32.mrb[35].mxu0  ;;  %v2004_v56 = vadd.f32 %v2003_v8, %v4134_v46  ;;  %v770_v30 = vmul.f32 0.00390625, %v694_v26 }
 0x277   : > { %v2159_v1 = vmul.f32 %v1809_v31, %v858_v39  ;;  %v1813_v36 = vadd.f32 %v1812_v17, %v4132_v42  ;;  %v2006_v34 = vadd.f32 %v2005_v63, %v4136_v55  ;;  %v862_v52 = vmul.f32 %v2809_v38, %v3680_v43  ;;  %v2813_v39 = vpop.eup %2812 }
 0x278   : > { %v2222_v44 = vadd.f32 %v2158_v54, %v2000_v16  ;;  %v2160_v59 = vmul.f32 %v1811_v60, %v859_v35  ;;  %v863_v62 = vmul.f32 %v2811_v6, %v3697_v49  ;;  %v2815_v16 = vpop.eup %2814  ;;  %v864_v60 = vmul.f32 %v2811_v6, %v3700_v50 }
 0x279   : > { %v2223_v37 = vadd.f32 %v2159_v1, %v2002_v47  ;;  %v2161_v27 = vmul.f32 %v1813_v36, %v860_v51  ;;  %v771_v63 = vmul.f32 0.00390625, %v697_v32  ;;  %v802_v51 = vadd.f32 1e-05, %v770_v30 }
 0x27a   : > { %2286 = vst [vmem:[%s4152_s16] sm:$0xff] %v2222_v44  ;;  %v2224_v14 = vadd.f32 %v2160_v59, %v2004_v56  ;;  %v700_v59 = vpop.xlane.xlu1 %699  ;;  %v703_v56 = vpop.xlane.xlu0 %702 }
 0x27b   : > { %2287 = vst [vmem:[%s4152_s16 + $0x8] sm:$0xff] %v2223_v37  ;;  %v2225_v5 = vadd.f32 %v2161_v27, %v2006_v34  ;;  %v1816_v9 = vpop.f32.mrb[36].mxu1  ;;  %v2009_v21 = vpop.f32.mrb[36].mxu0  ;;  %v803_v27 = vadd.f32 1e-05, %v771_v63  ;;  %v865_v34 = vmul.f32 %v2813_v39, %v3711_v22  ;;  %2822 = vrsqrt.f32 %v802_v51 }
 0x27c   : > { %2288 = vst [vmem:[%s4152_s16 + $0x10] sm:$0xff] %v2224_v14  ;;  %v1817_v19 = vadd.f32 %v1816_v9, %v4128_v25  ;;  %v1818_v15 = vpop.f32.mrb[37].mxu1  ;;  %v2011_v13 = vpop.f32.mrb[37].mxu0  ;;  %v2010_v33 = vadd.f32 %v2009_v21, %v4134_v46  ;;  %v772_v6 = vmul.f32 0.00390625, %v700_v59 }
 0x27d   : > { %2289 = vst [vmem:[%s4152_s16 + $0x18] sm:$0xff] %v2225_v5  ;;  %v1819_v45 = vadd.f32 %v1818_v15, %v4132_v42  ;;  %v1820_v12 = vpop.f32.mrb[38].mxu1  ;;  %v2013_v7 = vpop.f32.mrb[38].mxu0  ;;  %v2012_v43 = vadd.f32 %v2011_v13, %v4136_v55  ;;  %v866_v5 = vmul.f32 %v2813_v39, %v3714_v3  ;;  %v867_v13 = vmul.f32 %v2815_v16, %v3717_v48 }
 0x27e   : > { %v2162_v31 = vmul.f32 %v1817_v19, %v861_v57  ;;  %v1821_v28 = vadd.f32 %v1820_v12, %v4128_v25  ;;  %v1822_v8 = vpop.f32.mrb[39].mxu1  ;;  %v2015_v54 = vpop.f32.mrb[39].mxu0  ;;  %v2014_v49 = vadd.f32 %v2013_v7, %v4134_v46  ;;  %v868_v7 = vmul.f32 %v2815_v16, %v3720_v53 }
 0x27f   : > { %v2163_v35 = vmul.f32 %v1819_v45, %v862_v52  ;;  %v1823_v17 = vadd.f32 %v1822_v8, %v4132_v42  ;;  %v2016_v44 = vadd.f32 %v2015_v54, %v4136_v55  ;;  %v2817_v19 = vpop.eup %2816  ;;  %2824 = vrsqrt.f32 %v803_v27 }
 0x280   : > { %v2226_v1 = vadd.f32 %v2162_v31, %v2010_v33  ;;  %v2164_v47 = vmul.f32 %v1821_v28, %v863_v62  ;;  %v2819_v45 = vpop.eup %2818  ;;  %v773_v31 = vmul.f32 0.00390625, %v703_v56  ;;  %v804_v28 = vadd.f32 1e-05, %v772_v6 }
 0x281   : > { %v2227_v36 = vadd.f32 %v2163_v35, %v2012_v43  ;;  %v2165_v29 = vmul.f32 %v1823_v17, %v864_v60  ;;  %v706_v43 = vpop.xlane.xlu1 %705  ;;  %v709_v60 = vpop.xlane.xlu0 %708  ;;  %v871_v27 = vmul.f32 %v2819_v45, %v3737_v40  ;;  %v872_v6 = vmul.f32 %v2819_v45, %v3740_v61 }
 0x282   : > { %2290 = vst [vmem:[%s4152_s16 + $0x20] sm:$0xff] %v2226_v1  ;;  %v2228_v38 = vadd.f32 %v2164_v47, %v2014_v49  ;;  %v805_v1 = vadd.f32 1e-05, %v773_v31  ;;  %v869_v47 = vmul.f32 %v2817_v19, %v3731_v23  ;;  %2826 = vrsqrt.f32 %v804_v28 }
 0x283   : > { %2291 = vst [vmem:[%s4152_s16 + $0x28] sm:$0xff] %v2227_v36  ;;  %v2229_v50 = vadd.f32 %v2165_v29, %v2016_v44  ;;  %v1826_v41 = vpop.f32.mrb[40].mxu1  ;;  %v2019_v37 = vpop.f32.mrb[40].mxu0  ;;  %v774_v29 = vmul.f32 0.00390625, %v706_v43  ;;  %v870_v44 = vmul.f32 %v2817_v19, %v3734_v2 }
 0x284   : > { %2292 = vst [vmem:[%s4152_s16 + $0x30] sm:$0xff] %v2228_v38  ;;  %v1827_v26 = vadd.f32 %v1826_v41, %v4128_v25  ;;  %v1828_v32 = vpop.f32.mrb[41].mxu1  ;;  %v2021_v14 = vpop.f32.mrb[41].mxu0  ;;  %v2020_v24 = vadd.f32 %v2019_v37, %v4134_v46  ;;  %2828 = vrsqrt.f32 %v805_v1 }
 0x285   : > { %2293 = vst [vmem:[%s4152_s16 + $0x38] sm:$0xff] %v2229_v50  ;;  %v1829_v9 = vadd.f32 %v1828_v32, %v4132_v42  ;;  %v1830_v21 = vpop.f32.mrb[42].mxu1  ;;  %v2023_v57 = vpop.f32.mrb[42].mxu0  ;;  %v2022_v3 = vadd.f32 %v2021_v14, %v4136_v55  ;;  %v806_v19 = vadd.f32 1e-05, %v774_v29 }
 0x286   : > { %v2166_v15 = vmul.f32 %v1827_v26, %v865_v34  ;;  %v1831_v22 = vadd.f32 %v1830_v21, %v4128_v25  ;;  %v1832_v30 = vpop.f32.mrb[43].mxu1  ;;  %v2025_v52 = vpop.f32.mrb[43].mxu0  ;;  %v2024_v48 = vadd.f32 %v2023_v57, %v4134_v46 }
 0x287   : > { %v2167_v12 = vmul.f32 %v1829_v9, %v866_v5  ;;  %v1833_v39 = vadd.f32 %v1832_v30, %v4132_v42  ;;  %v2026_v35 = vadd.f32 %v2025_v52, %v4136_v55  ;;  %v2821_v50 = vpop.eup %2820  ;;  %v775_v9 = vmul.f32 0.00390625, %v709_v60  ;;  %v715_v30 = vpop.xlane.xlu0 %714 }
 0x288   : > { %v2230_v33 = vadd.f32 %v2166_v15, %v2020_v24  ;;  %v2168_v62 = vmul.f32 %v1831_v22, %v867_v13  ;;  %v2823_v32 = vpop.eup %2822  ;;  %v712_v22 = vpop.xlane.xlu1 %711  ;;  %2830 = vrsqrt.f32 %v806_v19 }
 0x289   : > { %v2231_v8 = vadd.f32 %v2167_v12, %v2022_v3  ;;  %v2169_v54 = vmul.f32 %v1833_v39, %v868_v7  ;;  %v807_v3 = vadd.f32 1e-05, %v775_v9  ;;  %v873_v7 = vmul.f32 %v2821_v50, %v3751_v20 }
 0x28a   : > { %2294 = vst [vmem:[%s4152_s16 + $0x40] sm:$0xff] %v2230_v33  ;;  %v2232_v17 = vadd.f32 %v2168_v62, %v2024_v48  ;;  %v776_v62 = vmul.f32 0.00390625, %v712_v22  ;;  %v874_v48 = vmul.f32 %v2821_v50, %v3754_v4 }
 0x28b   : > { %2295 = vst [vmem:[%s4152_s16 + $0x48] sm:$0xff] %v2231_v8  ;;  %v2233_v53 = vadd.f32 %v2169_v54, %v2026_v35  ;;  %v1836_v16 = vpop.f32.mrb[44].mxu1  ;;  %v2029_v63 = vpop.f32.mrb[44].mxu0  ;;  %2832 = vrsqrt.f32 %v807_v3 }
 0x28c   : > { %2296 = vst [vmem:[%s4152_s16 + $0x50] sm:$0xff] %v2232_v17  ;;  %v1837_v49 = vadd.f32 %v1836_v16, %v4128_v25  ;;  %v1838_v51 = vpop.f32.mrb[45].mxu1  ;;  %v2031_v36 = vpop.f32.mrb[45].mxu0  ;;  %v2030_v37 = vadd.f32 %v2029_v63, %v4134_v46  ;;  %v875_v17 = vmul.f32 %v2823_v32, %v3757_v10 }
 0x28d   : > { %2297 = vst [vmem:[%s4152_s16 + $0x58] sm:$0xff] %v2233_v53  ;;  %v1839_v59 = vadd.f32 %v1838_v51, %v4132_v42  ;;  %v1840_v56 = vpop.f32.mrb[46].mxu1  ;;  %v2033_v38 = vpop.f32.mrb[46].mxu0  ;;  %v2032_v2 = vadd.f32 %v2031_v36, %v4136_v55  ;;  %v777_v51 = vmul.f32 0.00390625, %v715_v30 }
 0x28e   : > { %v2170_v41 = vmul.f32 %v1837_v49, %v869_v47  ;;  %v1841_v23 = vadd.f32 %v1840_v56, %v4128_v25  ;;  %v1842_v34 = vpop.f32.mrb[47].mxu1  ;;  %v2035_v26 = vpop.f32.mrb[47].mxu0  ;;  %v2034_v40 = vadd.f32 %v2033_v38, %v4134_v46  ;;  %v876_v47 = vmul.f32 %v2823_v32, %v3760_v11 }
 0x28f   : > { %v2171_v14 = vmul.f32 %v1839_v59, %v870_v44  ;;  %v1843_v5 = vadd.f32 %v1842_v34, %v4132_v42  ;;  %v2036_v13 = vadd.f32 %v2035_v26, %v4136_v55  ;;  %v2825_v35 = vpop.eup %2824  ;;  %v808_v44 = vadd.f32 1e-05, %v776_v62  ;;  %v718_v50 = vpop.xlane.xlu1 %717 }
 0x290   : > { %v2234_v21 = vadd.f32 %v2170_v41, %v2030_v37  ;;  %v2172_v57 = vmul.f32 %v1841_v23, %v871_v27  ;;  %v2827_v63 = vpop.eup %2826  ;;  %v721_v41 = vpop.xlane.xlu0 %720  ;;  %v809_v34 = vadd.f32 1e-05, %v777_v51  ;;  %v877_v26 = vmul.f32 %v2825_v35, %v3771_v0 }
 0x291   : > { %v2235_v15 = vadd.f32 %v2171_v14, %v2032_v2  ;;  %v2173_v24 = vmul.f32 %v1843_v5, %v872_v6  ;;  %2834 = vrsqrt.f32 %v808_v44  ;;  %v778_v6 = vmul.f32 0.00390625, %v718_v50 }
 0x292   : > { %2298 = vst [vmem:[%s4152_s16 + $0x60] sm:$0xff] %v2234_v21  ;;  %v2236_v52 = vadd.f32 %v2172_v57, %v2034_v40  ;;  %v878_v5 = vmul.f32 %v2825_v35, %v3774_v58  ;;  %v2829_v40 = vpop.eup %2828  ;;  %v779_v3 = vmul.f32 0.00390625, %v721_v41  ;;  %2836 = vrsqrt.f32 %v809_v34  ;;  %v4640_v34 = vld [vmem:[#allocation41_spill] sm:$0xff] }
 0x293   : > { %2299 = vst [vmem:[%s4152_s16 + $0x68] sm:$0xff] %v2235_v15  ;;  %v2237_v61 = vadd.f32 %v2173_v24, %v2036_v13  ;;  %v1846_v45 = vpop.f32.mrb[48].mxu1  ;;  %v2039_v12 = vpop.f32.mrb[48].mxu0  ;;  %v879_v24 = vmul.f32 %v2827_v63, %v3777_v18 }
 0x294   : > { %2300 = vst [vmem:[%s4152_s16 + $0x70] sm:$0xff] %v2236_v52  ;;  %v1847_v39 = vadd.f32 %v1846_v45, %v4128_v25  ;;  %v1848_v31 = vpop.f32.mrb[49].mxu1  ;;  %v2041_v33 = vpop.f32.mrb[49].mxu0  ;;  %v2040_v60 = vadd.f32 %v2039_v12, %v4134_v46 }
 0x295   : > { %2301 = vst [vmem:[%s4152_s16 + $0x78] sm:$0xff] %v2237_v61  ;;  %v1849_v28 = vadd.f32 %v1848_v31, %v4132_v42  ;;  %v1850_v8 = vpop.f32.mrb[50].mxu1  ;;  %v2043_v54 = vpop.f32.mrb[50].mxu0  ;;  %v2042_v4 = vadd.f32 %v2041_v33, %v4136_v55  ;;  %v4636_v61 = vld [vmem:[#allocation37_spill] sm:$0xff]  ;;  %v810_v31 = vadd.f32 1e-05, %v778_v6 }
 0x296   : > { %v2174_v43 = vmul.f32 %v1847_v39, %v873_v7  ;;  %v1851_v20 = vadd.f32 %v1850_v8, %v4128_v25  ;;  %v1852_v53 = vpop.f32.mrb[51].mxu1  ;;  %v2045_v16 = vpop.f32.mrb[51].mxu0  ;;  %v2044_v10 = vadd.f32 %v2043_v54, %v4134_v46  ;;  %v880_v45 = vmul.f32 %v2827_v63, %v4636_v61 }
 0x297   : > { %v2175_v1 = vmul.f32 %v1849_v28, %v874_v48  ;;  %v1853_v49 = vadd.f32 %v1852_v53, %v4132_v42  ;;  %v2046_v38 = vadd.f32 %v2045_v16, %v4136_v55  ;;  %v2831_v30 = vpop.eup %2830  ;;  %v724_v28 = vpop.xlane.xlu1 %723  ;;  %2838 = vrsqrt.f32 %v810_v31 }
 0x298   : > { %v2238_v36 = vadd.f32 %v2174_v43, %v2040_v60  ;;  %v2176_v29 = vmul.f32 %v1851_v20, %v875_v17  ;;  %v727_v8 = vpop.xlane.xlu0 %726  ;;  %v811_v17 = vadd.f32 1e-05, %v779_v3  ;;  %v4637_v20 = vld [vmem:[#allocation38_spill] sm:$0xff] }
 0x299   : > { %v2239_v59 = vadd.f32 %v2175_v1, %v2042_v4  ;;  %v2177_v56 = vmul.f32 %v1853_v49, %v876_v47  ;;  %v881_v53 = vmul.f32 %v2829_v40, %v4637_v20  ;;  %v780_v4 = vmul.f32 0.00390625, %v724_v28  ;;  %v4638_v47 = vld [vmem:[#allocation39_spill] sm:$0xff] }
 0x29a   : > { %2302 = vst [vmem:[%s4152_s16 + $0x80] sm:$0xff] %v2238_v36  ;;  %v2240_v37 = vadd.f32 %v2176_v29, %v2044_v10  ;;  %v882_v49 = vmul.f32 %v2829_v40, %v4638_v47  ;;  %v2833_v10 = vpop.eup %2832  ;;  %2840 = vrsqrt.f32 %v811_v17 }
 0x29b   : > { %2303 = vst [vmem:[%s4152_s16 + $0x88] sm:$0xff] %v2239_v59  ;;  %v2241_v11 = vadd.f32 %v2177_v56, %v2046_v38  ;;  %v1856_v27 = vpop.f32.mrb[52].mxu1  ;;  %v2049_v23 = vpop.f32.mrb[52].mxu0  ;;  %v4639_v56 = vld [vmem:[#allocation40_spill] sm:$0xff] }
 0x29c   : > { %2304 = vst [vmem:[%s4152_s16 + $0x90] sm:$0xff] %v2240_v37  ;;  %v1857_v32 = vadd.f32 %v1856_v27, %v4128_v25  ;;  %v1858_v14 = vpop.f32.mrb[53].mxu1  ;;  %v2051_v2 = vpop.f32.mrb[53].mxu0  ;;  %v2050_v15 = vadd.f32 %v2049_v23, %v4134_v46  ;;  %v883_v38 = vmul.f32 %v2831_v30, %v4639_v56 }
 0x29d   : > { %2305 = vst [vmem:[%s4152_s16 + $0x98] sm:$0xff] %v2241_v11  ;;  %v1859_v9 = vadd.f32 %v1858_v14, %v4132_v42  ;;  %v1860_v21 = vpop.f32.mrb[54].mxu1  ;;  %v2053_v57 = vpop.f32.mrb[54].mxu0  ;;  %v2052_v58 = vadd.f32 %v2051_v2, %v4136_v55  ;;  %v781_v14 = vmul.f32 0.00390625, %v727_v8  ;;  %v4643_v8 = vld [vmem:[#allocation44_spill] sm:$0xff] }
 0x29e   : > { %v2178_v19 = vmul.f32 %v1857_v32, %v877_v26  ;;  %v1861_v0 = vadd.f32 %v1860_v21, %v4128_v25  ;;  %v1862_v13 = vpop.f32.mrb[55].mxu1  ;;  %v2055_v22 = vpop.f32.mrb[55].mxu0  ;;  %v2054_v18 = vadd.f32 %v2053_v57, %v4134_v46  ;;  %v884_v26 = vmul.f32 %v2831_v30, %v4640_v34 }
 0x29f   : > { %v2179_v52 = vmul.f32 %v1859_v9, %v878_v5  ;;  %v1863_v12 = vadd.f32 %v1862_v13, %v4132_v42  ;;  %v2056_v48 = vadd.f32 %v2055_v22, %v4136_v55  ;;  %v2835_v11 = vpop.eup %2834  ;;  %v812_v9 = vadd.f32 1e-05, %v780_v4 }
 0x2a0   : > { %v2242_v7 = vadd.f32 %v2178_v19, %v2050_v15  ;;  %v2180_v39 = vmul.f32 %v1861_v0, %v879_v24  ;;  %v730_v19 = vpop.xlane.xlu1 %729  ;;  %v733_v15 = vpop.xlane.xlu0 %732  ;;  %v813_v30 = vadd.f32 1e-05, %v781_v14 }
 0x2a1   : > { %v2243_v33 = vadd.f32 %v2179_v52, %v2052_v58  ;;  %v2181_v62 = vmul.f32 %v1863_v12, %v880_v45  ;;  %v4641_v52 = vld [vmem:[#allocation42_spill] sm:$0xff]  ;;  %2842 = vrsqrt.f32 %v812_v9  ;;  %v782_v3 = vmul.f32 0.00390625, %v730_v19 }
 0x2a2   : > { %2306 = vst [vmem:[%s4152_s16 + $0xa0] sm:$0xff] %v2242_v7  ;;  %v2244_v54 = vadd.f32 %v2180_v39, %v2054_v18  ;;  %v885_v58 = vmul.f32 %v2833_v10, %v4641_v52  ;;  %v4642_v7 = vld [vmem:[#allocation43_spill] sm:$0xff]  ;;  %v783_v4 = vmul.f32 0.00390625, %v733_v15  ;;  %2844 = vrsqrt.f32 %v813_v30  ;;  %v4647_v15 = vld [vmem:[#allocation48_spill] sm:$0xff] }
 0x2a3   : > { %2307 = vst [vmem:[%s4152_s16 + $0xa8] sm:$0xff] %v2243_v33  ;;  %v2245_v35 = vadd.f32 %v2181_v62, %v2056_v48  ;;  %v1866_v43 = vpop.f32.mrb[56].mxu1  ;;  %v2059_v60 = vpop.f32.mrb[56].mxu0  ;;  %v886_v39 = vmul.f32 %v2833_v10, %v4642_v7 }
 0x2a4   : > { %2308 = vst [vmem:[%s4152_s16 + $0xb0] sm:$0xff] %v2244_v54  ;;  %v1867_v16 = vadd.f32 %v1866_v43, %v4128_v25  ;;  %v1868_v63 = vpop.f32.mrb[57].mxu1  ;;  %v2061_v1 = vpop.f32.mrb[57].mxu0  ;;  %v2060_v59 = vadd.f32 %v2059_v60, %v4134_v46  ;;  %v887_v54 = vmul.f32 %v2835_v11, %v4643_v8 }
 0x2a5   : > { %2309 = vst [vmem:[%s4152_s16 + $0xb8] sm:$0xff] %v2245_v35  ;;  %v1869_v51 = vadd.f32 %v1868_v63, %v4132_v42  ;;  %v1870_v36 = vpop.f32.mrb[58].mxu1  ;;  %v2063_v29 = vpop.f32.mrb[58].mxu0  ;;  %v2062_v23 = vadd.f32 %v2061_v1, %v4136_v55 }
 0x2a6   : > { %v2182_v44 = vmul.f32 %v1867_v16, %v881_v53  ;;  %v1871_v50 = vadd.f32 %v1870_v36, %v4128_v25  ;;  %v1872_v41 = vpop.f32.mrb[59].mxu1  ;;  %v2065_v37 = vpop.f32.mrb[59].mxu0  ;;  %v2064_v5 = vadd.f32 %v2063_v29, %v4134_v46  ;;  %v4644_v16 = vld [vmem:[#allocation45_spill] sm:$0xff]  ;;  %v814_v36 = vadd.f32 1e-05, %v782_v3 }
 0x2a7   : > { %v2183_v27 = vmul.f32 %v1869_v51, %v882_v49  ;;  %v1873_v32 = vadd.f32 %v1872_v41, %v4132_v42  ;;  %v2066_v40 = vadd.f32 %v2065_v37, %v4136_v55  ;;  %v2837_v62 = vpop.eup %2836  ;;  %v888_v63 = vmul.f32 %v2835_v11, %v4644_v16  ;;  %v739_v56 = vpop.xlane.xlu0 %738 }
 0x2a8   : > { %v2246_v2 = vadd.f32 %v2182_v44, %v2060_v59  ;;  %v2184_v6 = vmul.f32 %v1871_v50, %v883_v38  ;;  %v2839_v17 = vpop.eup %2838  ;;  %v736_v59 = vpop.xlane.xlu1 %735  ;;  %v815_v11 = vadd.f32 1e-05, %v783_v4  ;;  %2846 = vrsqrt.f32 %v814_v36 }
 0x2a9   : > { %v2247_v21 = vadd.f32 %v2183_v27, %v2062_v23  ;;  %v2185_v57 = vmul.f32 %v1873_v32, %v884_v26  ;;  %v4645_v27 = vld [vmem:[#allocation46_spill] sm:$0xff]  ;;  %v784_v14 = vmul.f32 0.00390625, %v736_v59  ;;  %v785_v3 = vmul.f32 0.00390625, %v739_v56  ;;  %v4651_v56 = vld [vmem:[#allocation52_spill] sm:$0xff] }
 0x2aa   : > { %2310 = vst [vmem:[%s4152_s16 + $0xc0] sm:$0xff] %v2246_v2  ;;  %v2248_v24 = vadd.f32 %v2184_v6, %v2064_v5  ;;  %v889_v23 = vmul.f32 %v2837_v62, %v4645_v27  ;;  %v4646_v2 = vld [vmem:[#allocation47_spill] sm:$0xff]  ;;  %2848 = vrsqrt.f32 %v815_v11 }
 0x2ab   : > { %2311 = vst [vmem:[%s4152_s16 + $0xc8] sm:$0xff] %v2247_v21  ;;  %v2249_v0 = vadd.f32 %v2185_v57, %v2066_v40  ;;  %v1876_v13 = vpop.f32.mrb[60].mxu1  ;;  %v2069_v22 = vpop.f32.mrb[60].mxu0  ;;  %v890_v6 = vmul.f32 %v2837_v62, %v4646_v2 }
 0x2ac   : > { %2312 = vst [vmem:[%s4152_s16 + $0xd0] sm:$0xff] %v2248_v24  ;;  %v1877_v61 = vadd.f32 %v1876_v13, %v4128_v25  ;;  %v1878_v45 = vpop.f32.mrb[61].mxu1  ;;  %v2071_v12 = vpop.f32.mrb[61].mxu0  ;;  %v2070_v28 = vadd.f32 %v2069_v22, %v4134_v46  ;;  %v891_v24 = vmul.f32 %v2839_v17, %v4647_v15 }
 0x2ad   : > { %2313 = vst [vmem:[%s4152_s16 + $0xd8] sm:$0xff] %v2249_v0  ;;  %v1879_v18 = vadd.f32 %v1878_v45, %v4132_v42  ;;  %v1880_v31 = vpop.f32.mrb[62].mxu1  ;;  %v2073_v33 = vpop.f32.mrb[62].mxu0  ;;  %v2072_v53 = vadd.f32 %v2071_v12, %v4136_v55 }
 0x2ae   : > { %v2186_v48 = vmul.f32 %v1877_v61, %v885_v58  ;;  %v1881_v35 = vadd.f32 %v1880_v31, %v4128_v25  ;;  %v1882_v43 = vpop.f32.mrb[63].mxu1  ;;  %v2075_v60 = vpop.f32.mrb[63].mxu0  ;;  %v2074_v51 = vadd.f32 %v2073_v33, %v4134_v46  ;;  %v4648_v61 = vld [vmem:[#allocation49_spill] sm:$0xff]  ;;  %v816_v31 = vadd.f32 1e-05, %v784_v14 }
 0x2af   : > { %v2187_v20 = vmul.f32 %v1879_v18, %v886_v39  ;;  %v1883_v1 = vadd.f32 %v1882_v43, %v4132_v42  ;;  %v2076_v44 = vadd.f32 %v2075_v60, %v4136_v55  ;;  %v2841_v57 = vpop.eup %2840  ;;  %v892_v45 = vmul.f32 %v2839_v17, %v4648_v61  ;;  %v745_v8 = vpop.xlane.xlu0 %744 }
 0x2b0   : > { %v2250_v47 = vadd.f32 %v2186_v48, %v2070_v28  ;;  %v2188_v49 = vmul.f32 %v1881_v35, %v887_v54  ;;  %v2843_v30 = vpop.eup %2842  ;;  %v742_v28 = vpop.xlane.xlu1 %741  ;;  %v817_v17 = vadd.f32 1e-05, %v785_v3  ;;  %2850 = vrsqrt.f32 %v816_v31 }
 0x2b1   : > { %v2251_v29 = vadd.f32 %v2187_v20, %v2072_v53  ;;  %v2189_v10 = vmul.f32 %v1883_v1, %v888_v63  ;;  %v4649_v20 = vld [vmem:[#allocation50_spill] sm:$0xff]  ;;  %v786_v4 = vmul.f32 0.00390625, %v742_v28  ;;  %v787_v14 = vmul.f32 0.00390625, %v745_v8  ;;  %v4655_v8 = vld [vmem:[#allocation20_spill] sm:$0xff] }
 0x2b2   : > { %2314 = vst [vmem:[%s4152_s16 + $0xe0] sm:$0xff] %v2250_v47  ;;  %v2252_v38 = vadd.f32 %v2188_v49, %v2074_v51  ;;  %v893_v53 = vmul.f32 %v2841_v57, %v4649_v20  ;;  %v4650_v47 = vld [vmem:[#allocation51_spill] sm:$0xff]  ;;  %2852 = vrsqrt.f32 %v817_v17 }
 0x2b3   : > { %2315 = vst [vmem:[%s4152_s16 + $0xe8] sm:$0xff] %v2251_v29  ;;  %v2253_v50 = vadd.f32 %v2189_v10, %v2076_v44  ;;  %v1886_v41 = vpop.f32.mrb[64].mxu1  ;;  %v2079_v37 = vpop.f32.mrb[64].mxu0  ;;  %v894_v49 = vmul.f32 %v2841_v57, %v4650_v47 }
 0x2b4   : > { %2316 = vst [vmem:[%s4152_s16 + $0xf0] sm:$0xff] %v2252_v38  ;;  %v1887_v34 = vadd.f32 %v1886_v41, %v4128_v25  ;;  %v1888_v26 = vpop.f32.mrb[65].mxu1  ;;  %v2081_v32 = vpop.f32.mrb[65].mxu0  ;;  %v2080_v19 = vadd.f32 %v2079_v37, %v4134_v46  ;;  %v895_v38 = vmul.f32 %v2843_v30, %v4651_v56 }
 0x2b5   : > { %2317 = vst [vmem:[%s4152_s16 + $0xf8] sm:$0xff] %v2253_v50  ;;  %v1889_v5 = vadd.f32 %v1888_v26, %v4132_v42  ;;  %v1890_v9 = vpop.f32.mrb[66].mxu1  ;;  %v2083_v21 = vpop.f32.mrb[66].mxu0  ;;  %v2082_v58 = vadd.f32 %v2081_v32, %v4136_v55 }
 0x2b6   : > { %v2190_v40 = vmul.f32 %v1887_v34, %v889_v23  ;;  %v1891_v0 = vadd.f32 %v1890_v9, %v4128_v25  ;;  %v1892_v13 = vpop.f32.mrb[67].mxu1  ;;  %v2085_v22 = vpop.f32.mrb[67].mxu0  ;;  %v2084_v18 = vadd.f32 %v2083_v21, %v4134_v46  ;;  %v4652_v34 = vld [vmem:[#allocation17_spill] sm:$0xff]  ;;  %v818_v9 = vadd.f32 1e-05, %v786_v4 }
 0x2b7   : > { %v2191_v52 = vmul.f32 %v1889_v5, %v890_v6  ;;  %v1893_v12 = vadd.f32 %v1892_v13, %v4132_v42  ;;  %v2086_v48 = vadd.f32 %v2085_v22, %v4136_v55  ;;  %v2845_v10 = vpop.eup %2844  ;;  %v896_v26 = vmul.f32 %v2843_v30, %v4652_v34  ;;  %v751_v15 = vpop.xlane.xlu0 %750 }
 0x2b8   : > { %v2254_v7 = vadd.f32 %v2190_v40, %v2080_v19  ;;  %v2192_v39 = vmul.f32 %v1891_v0, %v891_v24  ;;  %v2847_v11 = vpop.eup %2846  ;;  %v748_v19 = vpop.xlane.xlu1 %747  ;;  %v819_v30 = vadd.f32 1e-05, %v787_v14  ;;  %2854 = vrsqrt.f32 %v818_v9  ;;  %v4658_v14 = vld [vmem:[#allocation23_spill] sm:$0xff] }
 0x2b9   : > { %v2255_v33 = vadd.f32 %v2191_v52, %v2082_v58  ;;  %v2193_v62 = vmul.f32 %v1893_v12, %v892_v45  ;;  %v4653_v52 = vld [vmem:[#allocation18_spill] sm:$0xff]  ;;  %v788_v3 = vmul.f32 0.00390625, %v748_v19  ;;  %v789_v4 = vmul.f32 0.00390625, %v751_v15  ;;  %v4659_v19 = vld [vmem:[#allocation24_spill] sm:$0xff] }
 0x2ba   : > { %2318 = vst [vmem:[%s4152_s16 + $0x100] sm:$0xff] %v2254_v7  ;;  %v2256_v54 = vadd.f32 %v2192_v39, %v2084_v18  ;;  %v897_v58 = vmul.f32 %v2845_v10, %v4653_v52  ;;  %v4654_v7 = vld [vmem:[#allocation19_spill] sm:$0xff]  ;;  %2856 = vrsqrt.f32 %v819_v30 }
 0x2bb   : > { %2319 = vst [vmem:[%s4152_s16 + $0x108] sm:$0xff] %v2255_v33  ;;  %v2257_v35 = vadd.f32 %v2193_v62, %v2086_v48  ;;  %v1896_v43 = vpop.f32.mrb[68].mxu1  ;;  %v2089_v60 = vpop.f32.mrb[68].mxu0  ;;  %v898_v39 = vmul.f32 %v2845_v10, %v4654_v7 }
 0x2bc   : > { %2320 = vst [vmem:[%s4152_s16 + $0x110] sm:$0xff] %v2256_v54  ;;  %v1897_v16 = vadd.f32 %v1896_v43, %v4128_v25  ;;  %v1898_v63 = vpop.f32.mrb[69].mxu1  ;;  %v2091_v1 = vpop.f32.mrb[69].mxu0  ;;  %v2090_v59 = vadd.f32 %v2089_v60, %v4134_v46  ;;  %v899_v54 = vmul.f32 %v2847_v11, %v4655_v8 }
 0x2bd   : > { %2321 = vst [vmem:[%s4152_s16 + $0x118] sm:$0xff] %v2257_v35  ;;  %v1899_v51 = vadd.f32 %v1898_v63, %v4132_v42  ;;  %v1900_v36 = vpop.f32.mrb[70].mxu1  ;;  %v2093_v29 = vpop.f32.mrb[70].mxu0  ;;  %v2092_v23 = vadd.f32 %v2091_v1, %v4136_v55 }
 0x2be   : > { %v2194_v44 = vmul.f32 %v1897_v16, %v893_v53  ;;  %v1901_v50 = vadd.f32 %v1900_v36, %v4128_v25  ;;  %v1902_v41 = vpop.f32.mrb[71].mxu1  ;;  %v2095_v37 = vpop.f32.mrb[71].mxu0  ;;  %v2094_v5 = vadd.f32 %v2093_v29, %v4134_v46  ;;  %v4656_v16 = vld [vmem:[#allocation21_spill] sm:$0xff]  ;;  %v820_v36 = vadd.f32 1e-05, %v788_v3 }
 0x2bf   : > { %v2195_v27 = vmul.f32 %v1899_v51, %v894_v49  ;;  %v1903_v32 = vadd.f32 %v1902_v41, %v4132_v42  ;;  %v2096_v40 = vadd.f32 %v2095_v37, %v4136_v55  ;;  %v2849_v62 = vpop.eup %2848  ;;  %v900_v63 = vmul.f32 %v2847_v11, %v4656_v16  ;;  %v757_v56 = vpop.xlane.xlu0 %756  ;;  %v4657_v11 = vld [vmem:[#allocation22_spill] sm:$0xff] }
 0x2c0   : > { %v2258_v2 = vadd.f32 %v2194_v44, %v2090_v59  ;;  %v2196_v6 = vmul.f32 %v1901_v50, %v895_v38  ;;  %v2851_v17 = vpop.eup %2850  ;;  %v754_v59 = vpop.xlane.xlu1 %753  ;;  %2858 = vrsqrt.f32 %v820_v36 }
 0x2c1   : > { %v2259_v21 = vadd.f32 %v2195_v27, %v2092_v23  ;;  %v2197_v57 = vmul.f32 %v1903_v32, %v896_v26  ;;  %v901_v27 = vmul.f32 %v2849_v62, %v4657_v11  ;;  %v821_v32 = vadd.f32 1e-05, %v789_v4 }
 0x2c2   : > { %2322 = vst [vmem:[%s4152_s16 + $0x120] sm:$0xff] %v2258_v2  ;;  %v2260_v24 = vadd.f32 %v2196_v6, %v2094_v5  ;;  %v902_v2 = vmul.f32 %v2849_v62, %v4658_v14  ;;  %v903_v15 = vmul.f32 %v2851_v17, %v4659_v19 }
 0x2c3   : > { %2323 = vst [vmem:[%s4152_s16 + $0x128] sm:$0xff] %v2259_v21  ;;  %v2261_v0 = vadd.f32 %v2197_v57, %v2096_v40  ;;  %v1906_v13 = vpop.f32.mrb[72].mxu1  ;;  %v2099_v22 = vpop.f32.mrb[72].mxu0  ;;  %2860 = vrsqrt.f32 %v821_v32 }
 0x2c4   : > { %2324 = vst [vmem:[%s4152_s16 + $0x130] sm:$0xff] %v2260_v24  ;;  %v1907_v61 = vadd.f32 %v1906_v13, %v4128_v25  ;;  %v1908_v45 = vpop.f32.mrb[73].mxu1  ;;  %v2101_v12 = vpop.f32.mrb[73].mxu0  ;;  %v2100_v28 = vadd.f32 %v2099_v22, %v4134_v46 }
 0x2c5   : > { %2325 = vst [vmem:[%s4152_s16 + $0x138] sm:$0xff] %v2261_v0  ;;  %v1909_v18 = vadd.f32 %v1908_v45, %v4132_v42  ;;  %v1910_v31 = vpop.f32.mrb[74].mxu1  ;;  %v2103_v33 = vpop.f32.mrb[74].mxu0  ;;  %v2102_v53 = vadd.f32 %v2101_v12, %v4136_v55  ;;  %v790_v12 = vmul.f32 0.00390625, %v754_v59 }
 0x2c6   : > { %v2198_v48 = vmul.f32 %v1907_v61, %v897_v58  ;;  %v1911_v35 = vadd.f32 %v1910_v31, %v4128_v25  ;;  %v1912_v43 = vpop.f32.mrb[75].mxu1  ;;  %v2105_v60 = vpop.f32.mrb[75].mxu0  ;;  %v2104_v51 = vadd.f32 %v2103_v33, %v4134_v46  ;;  %v4660_v58 = vld [vmem:[#allocation25_spill] sm:$0xff] }
 0x2c7   : > { %v2199_v20 = vmul.f32 %v1909_v18, %v898_v39  ;;  %v1913_v1 = vadd.f32 %v1912_v43, %v4132_v42  ;;  %v2106_v44 = vadd.f32 %v2105_v60, %v4136_v55  ;;  %v2853_v21 = vpop.eup %2852  ;;  %v904_v61 = vmul.f32 %v2851_v17, %v4660_v58  ;;  %v4661_v60 = vld [vmem:[#allocation26_spill] sm:$0xff] }
 0x2c8   : > { %v2262_v47 = vadd.f32 %v2198_v48, %v2100_v28  ;;  %v2200_v49 = vmul.f32 %v1911_v35, %v899_v54  ;;  %v2855_v22 = vpop.eup %2854  ;;  %v791_v18 = vmul.f32 0.00390625, %v757_v56  ;;  %v760_v48 = vpop.xlane.xlu1 %759  ;;  %v822_v43 = vadd.f32 1e-05, %v790_v12 }
 0x2c9   : > { %v2263_v29 = vadd.f32 %v2199_v20, %v2102_v53  ;;  %v2201_v10 = vmul.f32 %v1913_v1, %v900_v63  ;;  %v905_v17 = vmul.f32 %v2853_v21, %v4661_v60  ;;  %v4662_v1 = vld [vmem:[#allocation27_spill] sm:$0xff]  ;;  %v2857_v36 = vpop.eup %2856 }
 0x2ca   : > { %2326 = vst [vmem:[%s4152_s16 + $0x140] sm:$0xff] %v2262_v47  ;;  %v2264_v38 = vadd.f32 %v2200_v49, %v2104_v51  ;;  %v823_v63 = vadd.f32 1e-05, %v791_v18  ;;  %v906_v4 = vmul.f32 %v2853_v21, %v4662_v1  ;;  %2862 = vrsqrt.f32 %v822_v43 }
 0x2cb   : > { %2327 = vst [vmem:[%s4152_s16 + $0x148] sm:$0xff] %v2263_v29  ;;  %v2265_v50 = vadd.f32 %v2201_v10, %v2106_v44  ;;  %v1916_v41 = vpop.f32.mrb[76].mxu1  ;;  %v2109_v37 = vpop.f32.mrb[76].mxu0  ;;  %v4663_v44 = vld [vmem:[#allocation28_spill] sm:$0xff] }
 0x2cc   : > { %2328 = vst [vmem:[%s4152_s16 + $0x150] sm:$0xff] %v2264_v38  ;;  %v1917_v23 = vadd.f32 %v1916_v41, %v4128_v25  ;;  %v1918_v34 = vpop.f32.mrb[77].mxu1  ;;  %v2111_v26 = vpop.f32.mrb[77].mxu0  ;;  %v2110_v40 = vadd.f32 %v2109_v37, %v4134_v46  ;;  %v907_v59 = vmul.f32 %v2855_v22, %v4663_v44  ;;  %2864 = vrsqrt.f32 %v823_v63 }
 0x2cd   : > { %2329 = vst [vmem:[%s4152_s16 + $0x158] sm:$0xff] %v2265_v50  ;;  %v1919_v6 = vadd.f32 %v1918_v34, %v4132_v42  ;;  %v1920_v5 = vpop.f32.mrb[78].mxu1  ;;  %v2113_v9 = vpop.f32.mrb[78].mxu0  ;;  %v2112_v52 = vadd.f32 %v2111_v26, %v4136_v55 }
 0x2ce   : > { %v2202_v57 = vmul.f32 %v1917_v23, %v901_v27  ;;  %v1921_v24 = vadd.f32 %v1920_v5, %v4128_v25  ;;  %v1922_v0 = vpop.f32.mrb[79].mxu1  ;;  %v2115_v13 = vpop.f32.mrb[79].mxu0  ;;  %v2114_v39 = vadd.f32 %v2113_v9, %v4134_v46  ;;  %v4664_v27 = vld [vmem:[#allocation29_spill] sm:$0xff] }
 0x2cf   : > { %v2203_v30 = vmul.f32 %v1919_v6, %v902_v2  ;;  %v1923_v45 = vadd.f32 %v1922_v0, %v4132_v42  ;;  %v2116_v62 = vadd.f32 %v2115_v13, %v4136_v55  ;;  %v2859_v41 = vpop.eup %2858  ;;  %v908_v23 = vmul.f32 %v2855_v22, %v4664_v27 }
 0x2d0   : > { %v2266_v3 = vadd.f32 %v2202_v57, %v2110_v40  ;;  %v2204_v7 = vmul.f32 %v1921_v24, %v903_v15  ;;  %v792_v2 = vmul.f32 0.00390625, %v760_v48  ;;  %v4665_v15 = vld [vmem:[#allocation30_spill] sm:$0xff]  ;;  %v2861_v48 = vpop.eup %2860 }
 0x2d1   : > { %v2267_v31 = vadd.f32 %v2203_v30, %v2112_v52  ;;  %v2205_v33 = vmul.f32 %v1923_v45, %v904_v61  ;;  %v909_v24 = vmul.f32 %v2857_v36, %v4665_v15  ;;  %v4666_v52 = vld [vmem:[#allocation31_spill] sm:$0xff] }
 0x2d2   : > { %2330 = vst [vmem:[%s4152_s16 + $0x160] sm:$0xff] %v2266_v3  ;;  %v2268_v28 = vadd.f32 %v2204_v7, %v2114_v39  ;;  %v824_v30 = vadd.f32 1e-05, %v792_v2  ;;  %v910_v58 = vmul.f32 %v2857_v36, %v4666_v52  ;;  %v4667_v39 = vld [vmem:[#allocation32_spill] sm:$0xff]  ;;  %v4669_v36 = vld [vmem:[#allocation53_spill] sm:$0xff] }
 0x2d3   : > { %2331 = vst [vmem:[%s4152_s16 + $0x168] sm:$0xff] %v2267_v31  ;;  %v2269_v8 = vadd.f32 %v2205_v33, %v2116_v62  ;;  %v1926_v54 = vpop.f32.mrb[80].mxu1  ;;  %v2119_v35 = vpop.f32.mrb[80].mxu0  ;;  %v911_v18 = vmul.f32 %v2859_v41, %v4667_v39 }
 0x2d4   : > { %2332 = vst [vmem:[%s4152_s16 + $0x170] sm:$0xff] %v2268_v28  ;;  %v1927_v20 = vadd.f32 %v1926_v54, %v4128_v25  ;;  %v1928_v53 = vpop.f32.mrb[81].mxu1  ;;  %v2121_v16 = vpop.f32.mrb[81].mxu0  ;;  %v2120_v10 = vadd.f32 %v2119_v35, %v4134_v46  ;;  %v4668_v54 = vld [vmem:[#allocation33_spill] sm:$0xff]  ;;  %2866 = vrsqrt.f32 %v824_v30 }
 0x2d5   : > { %2333 = vst [vmem:[%s4152_s16 + $0x178] sm:$0xff] %v2269_v8  ;;  %v1929_v47 = vadd.f32 %v1928_v53, %v4132_v42  ;;  %v1930_v49 = vpop.f32.mrb[82].mxu1  ;;  %v2123_v51 = vpop.f32.mrb[82].mxu0  ;;  %v2122_v11 = vadd.f32 %v2121_v16, %v4136_v55  ;;  %v912_v35 = vmul.f32 %v2859_v41, %v4668_v54  ;;  %v4675_v54 = vld [vmem:[#allocation57_spill] sm:$0xff] }
 0x2d6   : > { %v2206_v29 = vmul.f32 %v1927_v20, %v905_v17  ;;  %v1931_v56 = vadd.f32 %v1930_v49, %v4128_v25  ;;  %v1932_v38 = vpop.f32.mrb[83].mxu1  ;;  %v2125_v50 = vpop.f32.mrb[83].mxu0  ;;  %v2124_v14 = vadd.f32 %v2123_v51, %v4134_v46 }
 0x2d7   : > { %v2207_v37 = vmul.f32 %v1929_v47, %v906_v4  ;;  %v1933_v34 = vadd.f32 %v1932_v38, %v4132_v42  ;;  %v2126_v9 = vadd.f32 %v2125_v50, %v4136_v55  ;;  %v2863_v1 = vpop.eup %2862 }
 0x2d8   : > { %v2270_v26 = vadd.f32 %v2206_v29, %v2120_v10  ;;  %v2208_v32 = vmul.f32 %v1931_v56, %v907_v59  ;;  %v913_v29 = vmul.f32 %v2861_v48, %v4669_v36  ;;  %v4670_v56 = vld [vmem:[#allocation54_spill] sm:$0xff]  ;;  %v2865_v2 = vpop.eup %2864 }
 0x2d9   : > { %v2271_v6 = vadd.f32 %v2207_v37, %v2122_v11  ;;  %v2209_v5 = vmul.f32 %v1933_v34, %v908_v23  ;;  %v914_v38 = vmul.f32 %v2861_v48, %v4670_v56  ;;  %v4671_v23 = vld [vmem:[#allocation34_spill] sm:$0xff] }
 0x2da   : > { %2334 = vst [vmem:[%s4152_s16 + $0x180] sm:$0xff] %v2270_v26  ;;  %v2272_v21 = vadd.f32 %v2208_v32, %v2124_v14  ;;  %v915_v34 = vmul.f32 %v2863_v1, %v4671_v23 }
 0x2db   : > { %2335 = vst [vmem:[%s4152_s16 + $0x188] sm:$0xff] %v2271_v6  ;;  %v2273_v57 = vadd.f32 %v2209_v5, %v2126_v9  ;;  %v1936_v40 = vpop.f32.mrb[84].mxu1  ;;  %v2129_v19 = vpop.f32.mrb[84].mxu0  ;;  %v4672_v9 = vld [vmem:[#allocation35_spill] sm:$0xff] }
 0x2dc   : > { %2336 = vst [vmem:[%s4152_s16 + $0x190] sm:$0xff] %v2272_v21  ;;  %v1937_v0 = vadd.f32 %v1936_v40, %v4128_v25  ;;  %v1938_v13 = vpop.f32.mrb[85].mxu1  ;;  %v2131_v22 = vpop.f32.mrb[85].mxu0  ;;  %v2130_v7 = vadd.f32 %v2129_v19, %v4134_v46  ;;  %v916_v21 = vmul.f32 %v2863_v1, %v4672_v9 }
 0x2dd   : > { %2337 = vst [vmem:[%s4152_s16 + $0x198] sm:$0xff] %v2273_v57  ;;  %v1939_v61 = vadd.f32 %v1938_v13, %v4132_v42  ;;  %v1940_v45 = vpop.f32.mrb[86].mxu1  ;;  %v2133_v12 = vpop.f32.mrb[86].mxu0  ;;  %v2132_v8 = vadd.f32 %v2131_v22, %v4136_v55 }
 0x2de   : > { %v2210_v3 = vmul.f32 %v1937_v0, %v909_v24  ;;  %v1941_v31 = vadd.f32 %v1940_v45, %v4128_v25  ;;  %v1942_v33 = vpop.f32.mrb[87].mxu1  ;;  %v2135_v62 = vpop.f32.mrb[87].mxu0  ;;  %v2134_v20 = vadd.f32 %v2133_v12, %v4134_v46  ;;  %v4673_v45 = vld [vmem:[#allocation55_spill] sm:$0xff] }
 0x2df   : > { %v2211_v28 = vmul.f32 %v1939_v61, %v910_v58  ;;  %v1943_v43 = vadd.f32 %v1942_v33, %v4132_v42  ;;  %v2136_v63 = vadd.f32 %v2135_v62, %v4136_v55  ;;  %v2867_v30 = vpop.eup %2866  ;;  %v917_v12 = vmul.f32 %v2865_v2, %v4673_v45 }
 0x2e0   : > { %v2274_v60 = vadd.f32 %v2210_v3, %v2130_v7  ;;  %v2212_v17 = vmul.f32 %v1941_v31, %v911_v18  ;;  %v4674_v18 = vld [vmem:[#allocation56_spill] sm:$0xff] }
 0x2e1   : > { %v2275_v53 = vadd.f32 %v2211_v28, %v2132_v8  ;;  %v2213_v16 = vmul.f32 %v1943_v43, %v912_v35  ;;  %v918_v31 = vmul.f32 %v2865_v2, %v4674_v18  ;;  %v919_v35 = vmul.f32 %v2867_v30, %v4675_v54 }
 0x2e2   : > { %2338 = vst [vmem:[%s4152_s16 + $0x1a0] sm:$0xff] %v2274_v60  ;;  %v2276_v4 = vadd.f32 %v2212_v17, %v2134_v20 }
 0x2e3   : > { %2339 = vst [vmem:[%s4152_s16 + $0x1a8] sm:$0xff] %v2275_v53  ;;  %v2277_v47 = vadd.f32 %v2213_v16, %v2136_v63  ;;  %v1946_v49 = vpop.f32.mrb[88].mxu1  ;;  %v2139_v51 = vpop.f32.mrb[88].mxu0  ;;  %v4676_v16 = vld [vmem:[#allocation36_spill] sm:$0xff] }
 0x2e4   : > { %2340 = vst [vmem:[%s4152_s16 + $0x1b0] sm:$0xff] %v2276_v4  ;;  %v1947_v10 = vadd.f32 %v1946_v49, %v4128_v25  ;;  %v1948_v44 = vpop.f32.mrb[89].mxu1  ;;  %v2141_v59 = vpop.f32.mrb[89].mxu0  ;;  %v2140_v27 = vadd.f32 %v2139_v51, %v4134_v46  ;;  %v920_v63 = vmul.f32 %v2867_v30, %v4676_v16 }
 0x2e5   : > { %2341 = vst [vmem:[%s4152_s16 + $0x1b8] sm:$0xff] %v2277_v47  ;;  %v1949_v50 = vadd.f32 %v1948_v44, %v4132_v42  ;;  %v1950_v41 = vpop.f32.mrb[90].mxu1  ;;  %v2143_v37 = vpop.f32.mrb[90].mxu0  ;;  %v2142_v5 = vadd.f32 %v2141_v59, %v4136_v55 }
 0x2e6   : > { %v2214_v11 = vmul.f32 %v1947_v10, %v913_v29  ;;  %v1951_v26 = vadd.f32 %v1950_v41, %v4128_v25  ;;  %v1952_v32 = vpop.f32.mrb[91].mxu1  ;;  %v2145_v14 = vpop.f32.mrb[91].mxu0  ;;  %v2144_v15 = vadd.f32 %v2143_v37, %v4134_v46 }
 0x2e7   : > { %v2215_v6 = vmul.f32 %v1949_v50, %v914_v38  ;;  %v1953_v57 = vadd.f32 %v1952_v32, %v4132_v42  ;;  %v2146_v13 = vadd.f32 %v2145_v14, %v4136_v55 }
 0x2e8   : > { %v2278_v40 = vadd.f32 %v2214_v11, %v2140_v27  ;;  %v2216_v19 = vmul.f32 %v1951_v26, %v915_v34 }
 0x2e9   : > { %v2279_v24 = vadd.f32 %v2215_v6, %v2142_v5  ;;  %v2217_v0 = vmul.f32 %v1953_v57, %v916_v21 }
 0x2ea   : > { %2342 = vst [vmem:[%s4152_s16 + $0x1c0] sm:$0xff] %v2278_v40  ;;  %v2280_v22 = vadd.f32 %v2216_v19, %v2144_v15 }
 0x2eb   : > { %2343 = vst [vmem:[%s4152_s16 + $0x1c8] sm:$0xff] %v2279_v24  ;;  %v2281_v52 = vadd.f32 %v2217_v0, %v2146_v13  ;;  %v1956_v58 = vpop.f32.mrb[92].mxu1  ;;  %v2149_v61 = vpop.f32.mrb[92].mxu0 }
 0x2ec   : > { %2344 = vst [vmem:[%s4152_s16 + $0x1d0] sm:$0xff] %v2280_v22  ;;  %v1957_v3 = vadd.f32 %v1956_v58, %v4128_v25  ;;  %v1958_v7 = vpop.f32.mrb[93].mxu1  ;;  %v2151_v39 = vpop.f32.mrb[93].mxu0  ;;  %v2150_v8 = vadd.f32 %v2149_v61, %v4134_v46 }
 0x2ed   : > { %2345 = vst [vmem:[%s4152_s16 + $0x1d8] sm:$0xff] %v2281_v52  ;;  %v1959_v33 = vadd.f32 %v1958_v7, %v4132_v42  ;;  %v1960_v62 = vpop.f32.mrb[94].mxu1  ;;  %v2153_v48 = vpop.f32.mrb[94].mxu0  ;;  %v2152_v53 = vadd.f32 %v2151_v39, %v4136_v55 }
 0x2ee   : > { %v2218_v28 = vmul.f32 %v1957_v3, %v917_v12  ;;  %v1961_v43 = vadd.f32 %v1960_v62, %v4128_v25  ;;  %v1962_v60 = vpop.f32.mrb[95].mxu1  ;;  %v2155_v17 = vpop.f32.mrb[95].mxu0  ;;  %v2154_v25 = vadd.f32 %v2153_v48, %v4134_v46 }
 0x2ef   : > { %v2219_v20 = vmul.f32 %v1959_v33, %v918_v31  ;;  %v1963_v1 = vadd.f32 %v1962_v60, %v4132_v42  ;;  %v2156_v36 = vadd.f32 %v2155_v17, %v4136_v55 }
 0x2f0   : > { %v2282_v4 = vadd.f32 %v2218_v28, %v2150_v8  ;;  %v2220_v47 = vmul.f32 %v1961_v43, %v919_v35 }
 0x2f1   : > { %v2283_v49 = vadd.f32 %v2219_v20, %v2152_v53  ;;  %v2221_v51 = vmul.f32 %v1963_v1, %v920_v63 }
 0x2f2   : > { %2346 = vst [vmem:[%s4152_s16 + $0x1e0] sm:$0xff] %v2282_v4  ;;  %v2284_v29 = vadd.f32 %v2220_v47, %v2154_v25 }
 0x2f3   : > { %2347 = vst [vmem:[%s4152_s16 + $0x1e8] sm:$0xff] %v2283_v49  ;;  %v2285_v42 = vadd.f32 %v2221_v51, %v2156_v36 }
 0x2f4   : > { %2348 = vst [vmem:[%s4152_s16 + $0x1f0] sm:$0xff] %v2284_v29 }
 0x2f5   : > { %2349 = vst [vmem:[%s4152_s16 + $0x1f8] sm:$0xff] %v2285_v42 }
 0x2f6   : > { %2997 = shalt.err (!%p2994_p5)
}
 0x2f7   : > { %s2998_s0 = scalar_lea.hbm %s4400_s13, 8192  ;;  %s3002_s15 = scalar_lea.hbm %s4455_s6, 16384 }
 0x2f8   : > { %p2999_p9 = scmp.ne.s32.totalorder %s4400_s13, %s2998_s0  ;;  %p3003_p11 = scmp.lt.u32.totalorder %s4400_s13, %s4455_s6 }
 0x2f9   : > { %p3004_p2 = scmp.lt.u32.totalorder %s3002_s15, %s2998_s0  ;;  %p3006_p1 = scmp.lt.u32.totalorder %s2998_s0, %s4400_s13 }
 0x2fa   : > { %p3000_p0 = pnand %p2999_p9, %p4677_p13 }
 0x2fb   : > { %p3005_p12 = por %p3004_p2, %p3003_p11 }
 0x2fc   : > { %p3001_p8 = pneg %p3000_p0 }
 0x2fd   : > { %p3007_p6 = por %p3006_p1, %p3005_p12 }
 0x2ff   : > { %p3008_p10 = pnand %p3007_p6, %p3001_p8 }
 0x301   : > { %3011 = shalt.err (!%p3008_p10)
}
 0x302   : > { %s3074_s14 = smov 256   ;;  %s3075_s11 = smov 16  }
 0x303   : > { %2617 = dma.vmem_to_hbm [thread:$0]  (%p4677_p13), %s4402_s20, 8192, %s4400_s13, %s2351_s25, %s3074_s14, %s3074_s14, %s3075_s11  }
 0x304 PF: > { %s2380_s16 = sand.u32 1, %s3050_s21   ;;  %p4678_p4 = scmp.ne.s32.totalorder %s4532_s28, 0 }
 0x305   : > { %p4679_p7 = scmp.ge.s32.totalorder %s3062_s24, 2  ;;  %s2381_s2 = scalar_lea.sflag [#allocation4], %s2380_s16 }
 0x307   : > { %p2634_p3 = pnand %p4679_p7, %p4678_p4 }
 0x309   : > { %3045 = dma.done.wait (!%p2634_p3), %s2381_s2, 8192  }
 0x30a   : > { %3047 = vsyncadd (!%p2634_p3), %s2381_s2, 4294959104  ;;  %s4680_s7 = sld [smem:[#allocation16_spill]]  ;;  %p23_p5 = scmp.ge.s32.totalorder %s3227_s9, 4  }
 0x30b   : > { %s4681_s21 = smov %s3054_s22  ;;  %s4682_s22 = smov %s3058_s23 }
 0x30c   : > { %s4684_s24 = smov %s3227_s9  ;;  %25 = sbr.rel (!%p23_p5) target bundleno = 12 (0xc), region = 110 }
 0x310   : > { %s4683_s23 = smov %s4680_s7 }
 0x313   :  { %2386 = vsyncpa [#allocation3], 1 }
 0x314   :  { %2388 = vsyncpa [#allocation3 + $0x1], 1 }
 0x315   :  { %2389 = vsyncpa [#allocation6], 1 }
 0x316   :  { %2391 = vsyncpa [#allocation6 + $0x1], 1 }
 0x317   :  { %2392 = vsyncpa [#allocation9], 1 }
 0x318   :  { %2393 = vsyncpa [#allocation4], 1 }
 0x319   :  { %2395 = vsyncpa [#allocation4 + $0x1], 1 }

</bundles_post_ra>
